<compile_context>
chip_gen: v6e
topology: v6e:2x2x1
jax: 0.10.0
libtpu: 0.0.40
codegen_flags: <defaults>
</compile_context>

<pallas_src>
import jax
import jax.numpy as jnp
from jax.experimental import pallas as pl
from jax.experimental.pallas import tpu as pltpu

C_IN = 324
HIDDEN = 256
NEG_SLOPE = 0.1


def _leaky_relu(x):
    # Equivalent to where(x > 0, x, 0.1 * x) for slope < 1.
    return jnp.maximum(x, NEG_SLOPE * x)


def resolve_kernel(x_ref, w1_ref, b1_ref, w2_ref, b2_ref, w3_ref, b3_ref, o_ref):
    # x_ref : (C_IN, tn)       f32   (batch dim squeezed away by the BlockSpec)
    # w1_ref: (HIDDEN, C_IN)   bf16    b1_ref: (HIDDEN, 1) f32
    # w2_ref: (HIDDEN, HIDDEN) bf16    b2_ref: (HIDDEN, 1) f32
    # w3_ref: (HIDDEN, 1)      f32     b3_ref: (1, 1)      f32
    # o_ref : (1, tn)          f32
    x = x_ref[...].astype(jnp.bfloat16)

    h1 = jnp.dot(w1_ref[...], x, preferred_element_type=jnp.float32)
    h1 = _leaky_relu(h1 + b1_ref[...])

    h2 = jnp.dot(w2_ref[...], h1.astype(jnp.bfloat16),
                 preferred_element_type=jnp.float32)
    h2 = _leaky_relu(h2 + b2_ref[...])

    # Last layer has a single output channel: lane-broadcast multiply (VPU) +
    # sublane reduction (XLU) instead of a degenerate 1-row matmul.
    h3 = jnp.sum(h2 * w3_ref[...], axis=0, keepdims=True) + b3_ref[...]
    o_ref[...] = h3.astype(o_ref.dtype)


def _predictor_pallas(feat, params, *, tn_target=1024):
    """feat: (B, C_IN, N) f32 -> (B, 1, N) f32 via the fused 324->256->256->1 MLP."""
    w1, b1, w2, b2, w3, b3 = params
    B, C, N = feat.shape
    assert C == C_IN

    # Lane tile over N: multiple of 128, capped by tn_target and the
    # 128-rounded problem size.  Pad N so any N works with a big tile.
    tn = min(tn_target, ((N + 127) // 128) * 128)
    n_pad = pl.cdiv(N, tn) * tn
    if n_pad != N:
        feat = jnp.pad(feat, ((0, 0), (0, 0), (0, n_pad - N)))

    grid = (B, n_pad // tn)
    out = pl.pallas_call(
        resolve_kernel,
        out_shape=jax.ShapeDtypeStruct((B, 1, n_pad), jnp.float32),
        grid_spec=pltpu.PrefetchScalarGridSpec(
            num_scalar_prefetch=0,
            grid=grid,
            in_specs=[
                # NCW-native input block: channels on sublanes, N on lanes.
                pl.BlockSpec((None, C_IN, tn), lambda b, j: (b, 0, j)),
                pl.BlockSpec((HIDDEN, C_IN), lambda b, j: (0, 0)),
                pl.BlockSpec((HIDDEN, 1), lambda b, j: (0, 0)),
                pl.BlockSpec((HIDDEN, HIDDEN), lambda b, j: (0, 0)),
                pl.BlockSpec((HIDDEN, 1), lambda b, j: (0, 0)),
                pl.BlockSpec((HIDDEN, 1), lambda b, j: (0, 0)),
                pl.BlockSpec((1, 1), lambda b, j: (0, 0)),
            ],
            out_specs=pl.BlockSpec((None, 1, tn), lambda b, j: (b, 0, j)),
        ),
        compiler_params=pltpu.CompilerParams(
            dimension_semantics=("parallel", "parallel")),
    )(feat, w1, b1, w2, b2, w3, b3)

    if n_pad != N:
        out = out[:, :, :N]
    return out


def init_resolvenet_params(key):
    """PyTorch-default Conv1d init; weights squeezed to 2D (out_ch, in_ch)."""
    ks = jax.random.split(key, 6)

    def unif(k, shape, fan_in):
        bound = 1.0 / jnp.sqrt(float(fan_in))
        return jax.random.uniform(k, shape, jnp.float32, -bound, bound)

    w1 = unif(ks[0], (HIDDEN, C_IN), C_IN)        # conv1: 324 -> 256
    b1 = unif(ks[1], (HIDDEN, 1), C_IN)
    w2 = unif(ks[2], (HIDDEN, HIDDEN), HIDDEN)    # conv2: 256 -> 256
    b2 = unif(ks[3], (HIDDEN, 1), HIDDEN)
    w3 = unif(ks[4], (HIDDEN, 1), HIDDEN)         # conv3: 256 -> 1 (stored (in, 1))
    b3 = unif(ks[5], (1, 1), HIDDEN)

    kernel_params = (w1.astype(jnp.bfloat16), b1,
                     w2.astype(jnp.bfloat16), b2,
                     w3, b3)
    ref_params = (w1, b1, w2, b2, w3, b3)
    return kernel_params, ref_params


@jax.jit
def resolvenet_forward(feat, w1, b1, w2, b2, w3, b3):
    """Matches ResolveNet.forward(feat) with occ_g=None: returns (total_loss, occ_e_)."""
    occ_e_ = _predictor_pallas(feat, (w1, b1, w2, b2, w3, b3))
    # occ_g is None -> no loss term.
    # TODO(synk): the occ_g/free_g branch (sigmoid/round metrics + balanced BCE
    # compute_loss) is training-only plumbing and is not implemented here.
    total_loss = jnp.float32(0.0)
    return total_loss, occ_e_


def _reference_forward(feat, w1, b1, w2, b2, w3, b3):
    """Plain-JAX f32 reference of the same 1x1-conv MLP (NCW layout)."""
    h = jnp.einsum('oc,bcn->bon', w1, feat) + b1[None]
    h = jnp.maximum(h, NEG_SLOPE * h)
    h = jnp.einsum('oc,bcn->bon', w2, h) + b2[None]
    h = jnp.maximum(h, NEG_SLOPE * h)
    o = jnp.einsum('co,bcn->bon', w3, h) + b3[None]
    return o


if __name__ == "__main__":
    key = jax.random.PRNGKey(0)
    kp, kx = jax.random.split(key)

    kernel_params, ref_params = init_resolvenet_params(kp)

    # Small shapes consistent with the module: feat is (B, 324, N).
    B, N = 2, 512   # grid = (2, 1): two parallel steps (keeps both v7x TCs busy)
    feat = jax.random.normal(kx, (B, C_IN, N), jnp.float32)

    total_loss, occ_e_ = resolvenet_forward(feat, *kernel_params)
    jax.block_until_ready((total_loss, occ_e_))

    ref = _reference_forward(feat, *ref_params)
    assert occ_e_.shape == (B, 1, N)
    # bf16 matmul operands (f32 accumulation) -> relaxed tolerance vs f32 ref.
    assert jnp.allclose(occ_e_, ref, atol=2e-2, rtol=2e-2)
    assert float(total_loss) == 0.0

    print("KERNEL_OK")
</pallas_src>

<mosaic_0001>
module attributes {stable_mosaic.version = 11 : i64} {
  func.func @resolve_kernel(%arg0: i32, %arg1: i32, %arg2: memref<1x324x512xf32, #tpu.memory_space<vmem>>, %arg3: memref<256x324xbf16, #tpu.memory_space<vmem>>, %arg4: memref<256x1xf32, #tpu.memory_space<vmem>>, %arg5: memref<256x256xbf16, #tpu.memory_space<vmem>>, %arg6: memref<256x1xf32, #tpu.memory_space<vmem>>, %arg7: memref<256x1xf32, #tpu.memory_space<vmem>>, %arg8: memref<1x1xf32, #tpu.memory_space<vmem>>, %arg9: memref<1x1x512xf32, #tpu.memory_space<vmem>>) attributes {dimension_semantics = [#tpu.dimension_semantics<parallel>, #tpu.dimension_semantics<parallel>], iteration_bounds = array<i64: 2, 1>, scalar_prefetch = 0 : i64, scratch_operands = 0 : i64, tpu.core_type = #tpu.core_type<tc>, window_params = [{transform_indices = @transform_0, window_bounds = array<i64: 1, 324, 512>}, {pipeline_mode = #tpu.pipeline_mode<synchronous>, transform_indices = @transform_1, window_bounds = array<i64: 256, 324>}, {pipeline_mode = #tpu.pipeline_mode<synchronous>, transform_indices = @transform_2, window_bounds = array<i64: 256, 1>}, {pipeline_mode = #tpu.pipeline_mode<synchronous>, transform_indices = @transform_3, window_bounds = array<i64: 256, 256>}, {pipeline_mode = #tpu.pipeline_mode<synchronous>, transform_indices = @transform_4, window_bounds = array<i64: 256, 1>}, {pipeline_mode = #tpu.pipeline_mode<synchronous>, transform_indices = @transform_5, window_bounds = array<i64: 256, 1>}, {pipeline_mode = #tpu.pipeline_mode<synchronous>, transform_indices = @transform_6, window_bounds = array<i64: 1, 1>}, {transform_indices = @transform_7, window_bounds = array<i64: 1, 1, 512>}]} {
    %c0 = arith.constant 0 : index
    %c0_0 = arith.constant 0 : index
    %c0_1 = arith.constant 0 : index
    %0 = vector.load %arg2[%c0, %c0_0, %c0_1] : memref<1x324x512xf32, #tpu.memory_space<vmem>>, vector<1x324x512xf32>
    %1 = vector.shape_cast %0 : vector<1x324x512xf32> to vector<324x512xf32>
    %2 = arith.truncf %1 : vector<324x512xf32> to vector<324x512xbf16>
    %c0_2 = arith.constant 0 : index
    %c0_3 = arith.constant 0 : index
    %3 = vector.load %arg3[%c0_2, %c0_3] : memref<256x324xbf16, #tpu.memory_space<vmem>>, vector<256x324xbf16>
    %cst = arith.constant dense<0.000000e+00> : vector<256x512xf32>
    %4 = tpu.matmul %3, %2, %cst {dimension_numbers = #tpu.dot_dimension_numbers<[1], [0], [0], [1], [0, 0, 1, 1], [], []>} : vector<256x324xbf16>, vector<324x512xbf16>, vector<256x512xf32> -> vector<256x512xf32>
    %c0_4 = arith.constant 0 : index
    %c0_5 = arith.constant 0 : index
    %5 = vector.load %arg4[%c0_4, %c0_5] : memref<256x1xf32, #tpu.memory_space<vmem>>, vector<256x1xf32>
    %6 = vector.broadcast %5 : vector<256x1xf32> to vector<256x512xf32>
    %7 = arith.addf %4, %6 : vector<256x512xf32>
    %cst_6 = arith.constant 1.000000e-01 : f32
    %8 = vector.broadcast %cst_6 : f32 to vector<256x512xf32>
    %9 = arith.mulf %8, %7 : vector<256x512xf32>
    %10 = arith.maximumf %7, %9 : vector<256x512xf32>
    %c0_7 = arith.constant 0 : index
    %c0_8 = arith.constant 0 : index
    %11 = vector.load %arg5[%c0_7, %c0_8] : memref<256x256xbf16, #tpu.memory_space<vmem>>, vector<256x256xbf16>
    %12 = arith.truncf %10 : vector<256x512xf32> to vector<256x512xbf16>
    %cst_9 = arith.constant dense<0.000000e+00> : vector<256x512xf32>
    %13 = tpu.matmul %11, %12, %cst_9 {dimension_numbers = #tpu.dot_dimension_numbers<[1], [0], [0], [1], [0, 0, 1, 1], [], []>} : vector<256x256xbf16>, vector<256x512xbf16>, vector<256x512xf32> -> vector<256x512xf32>
    %c0_10 = arith.constant 0 : index
    %c0_11 = arith.constant 0 : index
    %14 = vector.load %arg6[%c0_10, %c0_11] : memref<256x1xf32, #tpu.memory_space<vmem>>, vector<256x1xf32>
    %15 = vector.broadcast %14 : vector<256x1xf32> to vector<256x512xf32>
    %16 = arith.addf %13, %15 : vector<256x512xf32>
    %cst_12 = arith.constant 1.000000e-01 : f32
    %17 = vector.broadcast %cst_12 : f32 to vector<256x512xf32>
    %18 = arith.mulf %17, %16 : vector<256x512xf32>
    %19 = arith.maximumf %16, %18 : vector<256x512xf32>
    %c0_13 = arith.constant 0 : index
    %c0_14 = arith.constant 0 : index
    %20 = vector.load %arg7[%c0_13, %c0_14] : memref<256x1xf32, #tpu.memory_space<vmem>>, vector<256x1xf32>
    %21 = vector.broadcast %20 : vector<256x1xf32> to vector<256x512xf32>
    %22 = arith.mulf %19, %21 : vector<256x512xf32>
    %cst_15 = arith.constant dense<0.000000e+00> : vector<512xf32>
    %23 = vector.multi_reduction <add>, %22, %cst_15 [0] : vector<256x512xf32> to vector<512xf32>
    %24 = vector.shape_cast %23 : vector<512xf32> to vector<1x512xf32>
    %c0_16 = arith.constant 0 : index
    %c0_17 = arith.constant 0 : index
    %25 = vector.load %arg8[%c0_16, %c0_17] : memref<1x1xf32, #tpu.memory_space<vmem>>, vector<1x1xf32>
    %26 = vector.broadcast %25 : vector<1x1xf32> to vector<1x512xf32>
    %27 = arith.addf %24, %26 : vector<1x512xf32>
    %c0_18 = arith.constant 0 : index
    %c0_19 = arith.constant 0 : index
    %c0_20 = arith.constant 0 : index
    %28 = vector.load %arg9[%c0_18, %c0_19, %c0_20] : memref<1x1x512xf32, #tpu.memory_space<vmem>>, vector<1x1x512xf32>
    %29 = vector.shape_cast %28 : vector<1x1x512xf32> to vector<1x512xf32>
    %30 = vector.shape_cast %27 : vector<1x512xf32> to vector<1x1x512xf32>
    tpu.vector_store %arg9[%c0_18, %c0_19, %c0_20], %30 {strides = array<i32>} : memref<1x1x512xf32, #tpu.memory_space<vmem>>, vector<1x1x512xf32>,
    return
  }
  func.func @transform_0(%arg0: i32, %arg1: i32) -> (i32, i32, i32) {
    %c0_i32 = arith.constant 0 : i32
    %c0_i32_0 = arith.constant 0 : i32
    return %arg0, %c0_i32, %arg1 : i32, i32, i32
  }
  func.func @transform_1(%arg0: i32, %arg1: i32) -> (i32, i32) {
    %c0_i32 = arith.constant 0 : i32
    %c0_i32_0 = arith.constant 0 : i32
    %c0_i32_1 = arith.constant 0 : i32
    return %c0_i32, %c0_i32_0 : i32, i32
  }
  func.func @transform_2(%arg0: i32, %arg1: i32) -> (i32, i32) {
    %c0_i32 = arith.constant 0 : i32
    %c0_i32_0 = arith.constant 0 : i32
    %c0_i32_1 = arith.constant 0 : i32
    return %c0_i32, %c0_i32_0 : i32, i32
  }
  func.func @transform_3(%arg0: i32, %arg1: i32) -> (i32, i32) {
    %c0_i32 = arith.constant 0 : i32
    %c0_i32_0 = arith.constant 0 : i32
    %c0_i32_1 = arith.constant 0 : i32
    return %c0_i32, %c0_i32_0 : i32, i32
  }
  func.func @transform_4(%arg0: i32, %arg1: i32) -> (i32, i32) {
    %c0_i32 = arith.constant 0 : i32
    %c0_i32_0 = arith.constant 0 : i32
    %c0_i32_1 = arith.constant 0 : i32
    return %c0_i32, %c0_i32_0 : i32, i32
  }
  func.func @transform_5(%arg0: i32, %arg1: i32) -> (i32, i32) {
    %c0_i32 = arith.constant 0 : i32
    %c0_i32_0 = arith.constant 0 : i32
    %c0_i32_1 = arith.constant 0 : i32
    return %c0_i32, %c0_i32_0 : i32, i32
  }
  func.func @transform_6(%arg0: i32, %arg1: i32) -> (i32, i32) {
    %c0_i32 = arith.constant 0 : i32
    %c0_i32_0 = arith.constant 0 : i32
    %c0_i32_1 = arith.constant 0 : i32
    return %c0_i32, %c0_i32_0 : i32, i32
  }
  func.func @transform_7(%arg0: i32, %arg1: i32) -> (i32, i32, i32) {
    %c0_i32 = arith.constant 0 : i32
    %c0_i32_0 = arith.constant 0 : i32
    return %arg0, %c0_i32, %arg1 : i32, i32, i32
  }
}

</mosaic_0001>

<bundles_post_ra>
// kernel: resolvenet_forward.1
= control target key start
LH: loop header
LB: loop body
LE: loop exit
PB: predicated region body
PF: predicated region fallthrough
CT: control target
= control target key end

     0   :  { %s6938_s0 = inlined_call_operand.vmem [shape: f32[2,324,512], index: 0, kind: input, shape index: {}]   ;;  %s6939_s1 = inlined_call_operand.vmem [shape: bf16[256,324], index: 1, kind: input, shape index: {}]   ;;  %s6940_s2 = inlined_call_operand.vmem [shape: f32[256,1], index: 2, kind: input, shape index: {}]   ;;  %s6941_s3 = inlined_call_operand.vmem [shape: bf16[256,256], index: 3, kind: input, shape index: {}]   ;;  %s6942_s4 = inlined_call_operand.vmem [shape: f32[256,1], index: 4, kind: input, shape index: {}]   ;;  %s6943_s5 = inlined_call_operand.vmem [shape: f32[256,1], index: 5, kind: input, shape index: {}]   ;;  %s6944_s6 = inlined_call_operand.<no memory space> [shape: f32[1,1], index: 6, kind: input, shape index: {}]   ;;  %s6945_s7 = inlined_call_operand.hbm [shape: f32[2,1,512], index: 7, kind: output, shape index: {}]  }
   0x1   :  { %v12_v0 = vstv %s6944_s6 }
   0x2   :  { %13 = vst [vmem:[#allocation2] sm:$0x1] %v12_v0 }
   0x3   :  { %14 = vsyncpa [#allocation4], 0 }
   0x4   :  { %16 = vsyncpa [#allocation4 + $0x1], 0  ;;  %s4304_s26 = smov 0   ;;  %s4306_s27 = smov 0  }
   0x5   :  { %s4308_s28 = smov 0   ;;  %s4310_s29 = smov 0  }
   0x6   :  { %s4312_s30 = smov 0   ;;  %s4314_s8 = smov 0  }
   0x7 LB: > { %s3844_s6 = sadd.s32 4294967295, %s4256_s8   ;;  %s3845_s9 = sadd.s32 4294967294, %s4256_s8   ;;  %s4256_s8 = sphi %s4314_s8, %s22_s8   ;;  %s4252_s30 = sphi %s4312_s30, %s7482_s30   ;;  %s4248_s29 = sphi %s4310_s29, %s7481_s29   ;;  %s4244_s28 = sphi %s4308_s28, %s7480_s28   ;;  %s4240_s27 = sphi %s4306_s27, %s7479_s27   ;;  %s4236_s26 = sphi %s4304_s26, %s7478_s26  }
   0x8   : > { %s34_s10 = sadd.s32 1, %s4252_s30  ;;  %s197_s11 = sadd.s32 1, %s4244_s28 }
   0x9   : > { %p36_p0 = scmp.ge.s32.totalorder %s34_s10, 2  ;;  %p207_p1 = scmp.ne.s32.totalorder %s4244_s28, %s4240_s27 }
   0xa   : > { %p208_p2 = scmp.eq.s32.totalorder %s3844_s6, 1  ;;  %p213_p3 = scmp.ne.s32.totalorder %s4240_s27, %s4236_s26 }
   0xb   : > { %s7484_s10 = smov (%p36_p0, %s34_s10), 0  ;;  %p214_p5 = scmp.eq.s32.totalorder %s3845_s9, 1 }
   0xc   : > { %p4344_p4 = por %p208_p2, %p207_p1  ;;  %s192_s13 = ssub.s32 %s4252_s30, %s7484_s10 }
   0xd   : > { %p3848_p6 = scmp.ge.s32.totalorder %s4256_s8, 1  ;;  %p195_p7 = scmp.eq.s32.totalorder %s192_s13, 0 }
   0xe   : > { %p4351_p8 = por %p214_p5, %p213_p3  ;;  %p263_p9 = scmp.lt.s32.totalorder %s4256_s8, 3 }
   0xf   : > { %s4357_s15 = scalar_select %p195_p7, %s4244_s28, %s197_s11  }
  0x10   : > { %p264_p10 = pnand %p3848_p6, %p263_p9 }
  0x12   : > { %267 = sbr.rel (%p264_p10) target bundleno = 941 (0x3ad), region = 48 }
  0x17   : > { %p300_p11 = scmp.lt.s32.totalorder %s4248_s29, 1  ;;  %v6950_v1 = vmov 0   ;;  %vm1104_vm0 = vcmask 1041408   ;;  %vm1055_vm1 = vcmask 556032   ;;  %s296_s6 = sand.u32 1, %s4240_s27  }
  0x18   : > { %1342 = vmatprep.mubr.bf16.mxu1 %v6950_v1  ;;  %4061 = vset.pattern.permute.xlu0 %v6950_v1  ;;  %s3849_s9 = sshll.u32 %s296_s6, 2  ;;  %s3970_s11 = sshll.u32 %s4248_s29, 6 }
  0x19   : > { %s301_s16 = scalar_select %p300_p11, %s4248_s29, 1  ;;  %4062 = vset.pattern.permute.xlu1 %v6950_v1 }
  0x1a   : > { %s298_s13 = scalar_lea.vmem [#allocation3], %s3849_s9  ;;  %s3766_s18 = scalar_lea.hbm %s6945_s7, %s3970_s11 }
  0x1b   : > { %s4003_s17 = smul.u32 1312, %s301_s16  ;;  %s3768_s16 = sshll.u32 %s298_s13, 4  ;;  %s3769_s16 = int_to_ptr.vmem [resolvable:$true] %s3768_s16 }
  0x1c   : > { %s3752_s19 = scalar_lea.sflag [#allocation4], %s296_s6  ;;  %s4180_s21 = scalar_lea.vmem %s3769_s16, 64 }
  0x1d   : > { %s4367_s20 = scalar_lea.vmem %s6938_s0, %s4003_s17  ;;  %p4181_p12 = scmp.ne.s32.totalorder %s3769_s16, %s4180_s21 }
  0x1e   : > { %v368_v2 = vld [vmem:[%s4367_s20 + $0x1c8] sm:$0xff]  ;;  %v367_v7 = vld [vmem:[%s4367_s20 + $0x1c0] sm:$0xff]  ;;  %s4260_s22 = smov [#allocation3]  }
  0x1f   : > { %v372_v3 = vld [vmem:[%s4367_s20 + $0x1e8] sm:$0xff]  ;;  %v371_v8 = vld [vmem:[%s4367_s20 + $0x1e0] sm:$0xff]  ;;  %p4182_p13 = pnand %p4181_p12, %p4344_p4  ;;  %s4184_s29 = sshll.u32 %s4260_s22, 4  ;;  %s4185_s29 = int_to_ptr.vmem [resolvable:$false] %s4184_s29 }
  0x20   : > { %v472_v4 = vld [vmem:[%s4367_s20 + $0x508] sm:$0xf]  ;;  %v504_v5 = vpack.c.bf16 %v372_v3, %v368_v2  ;;  %v471_v9 = vld [vmem:[%s4367_s20 + $0x500] sm:$0xf]  ;;  %v503_v10 = vpack.c.bf16 %v371_v8, %v367_v7  ;;  %s4186_s23 = scalar_lea.vmem %s4185_s29, 128  ;;  %p4187_p1 = scmp.lt.s32.totalorder %s3769_s16, %s4185_s29 }
  0x21   : > { %v556_v6 = vpack.c.bf16 %v472_v4, %v472_v4  ;;  %v555_v11 = vpack.c.bf16 %v471_v9, %v471_v9  ;;  %v360_v12 = vld [vmem:[%s4367_s20 + $0x188] sm:$0xff]  ;;  %v359_v17 = vld [vmem:[%s4367_s20 + $0x180] sm:$0xff]  ;;  %p4183_p0 = pneg %p4182_p13  ;;  %p4188_p2 = scmp.lt.s32.totalorder %s4186_s23, %s4180_s21 }
  0x22   : > { %v364_v13 = vld [vmem:[%s4367_s20 + $0x1a8] sm:$0xff]  ;;  %1117 = vmatprep.subr.bf16.mxu0 %v504_v5  ;;  %v363_v18 = vld [vmem:[%s4367_s20 + $0x1a0] sm:$0xff] }
  0x23   : > { %v464_v14 = vld [vmem:[%s4367_s20 + $0x4c8] sm:$0xff]  ;;  %3899 = vmatprep.subr.msk.bf16.mxu1 %vm1104_vm0, %v556_v6  ;;  %v500_v15 = vpack.c.bf16 %v364_v13, %v360_v12  ;;  %1118 = vmatpush1.bf16.msra.mxu0 %v503_v10  ;;  %v1106_v19 = vsel %vm1104_vm0, %v555_v11, 0  ;;  %v499_v21 = vpack.c.bf16 %v363_v18, %v359_v17  ;;  %v463_v22 = vld [vmem:[%s4367_s20 + $0x4c0] sm:$0xff]  ;;  %p4189_p3 = por %p4188_p2, %p4187_p1 }
  0x24   : > { %v468_v16 = vld [vmem:[%s4367_s20 + $0x4e8] sm:$0xff]  ;;  %v467_v23 = vld [vmem:[%s4367_s20 + $0x4e0] sm:$0xff]  ;;  %1317 = vmatpush1.bf16.msra.mxu1 %v1106_v19 }
  0x25   : > { %v552_v20 = vpack.c.bf16 %v468_v16, %v464_v14  ;;  %v352_v24 = vld [vmem:[%s4367_s20 + $0x148] sm:$0xff]  ;;  %1119 = vmatprep.subr.bf16.mxu0 %v500_v15  ;;  %v551_v25 = vpack.c.bf16 %v467_v23, %v463_v22  ;;  %v351_v31 = vld [vmem:[%s4367_s20 + $0x140] sm:$0xff]  ;;  %p4190_p5 = pnand %p4189_p3, %p4183_p0 }
  0x26   : > { %v356_v26 = vld [vmem:[%s4367_s20 + $0x168] sm:$0xff]  ;;  %v355_v32 = vld [vmem:[%s4367_s20 + $0x160] sm:$0xff] }
  0x27   : > { %v456_v27 = vld [vmem:[%s4367_s20 + $0x488] sm:$0xff]  ;;  %1318 = vmatprep.subr.bf16.mxu1 %v552_v20  ;;  %v496_v29 = vpack.c.bf16 %v356_v26, %v352_v24  ;;  %v455_v33 = vld [vmem:[%s4367_s20 + $0x480] sm:$0xff]  ;;  %1120 = vmatpush1.bf16.msra.mxu0 %v499_v21  ;;  %v495_v37 = vpack.c.bf16 %v355_v32, %v351_v31 }
  0x28   : > { %v460_v28 = vld [vmem:[%s4367_s20 + $0x4a8] sm:$0xff]  ;;  %v459_v34 = vld [vmem:[%s4367_s20 + $0x4a0] sm:$0xff]  ;;  %1319 = vmatpush1.bf16.msra.mxu1 %v551_v25 }
  0x29   : > { %v548_v30 = vpack.c.bf16 %v460_v28, %v456_v27  ;;  %v344_v35 = vld [vmem:[%s4367_s20 + $0x108] sm:$0xff]  ;;  %1121 = vmatprep.subr.bf16.mxu0 %v496_v29  ;;  %v547_v40 = vpack.c.bf16 %v459_v34, %v455_v33  ;;  %v343_v42 = vld [vmem:[%s4367_s20 + $0x100] sm:$0xff]  ;;  %v370_v33 = vld [vmem:[%s4367_s20 + $0x1d8] sm:$0xff] }
  0x2a   : > { %v348_v36 = vld [vmem:[%s4367_s20 + $0x128] sm:$0xff]  ;;  %v347_v43 = vld [vmem:[%s4367_s20 + $0x120] sm:$0xff]  ;;  %v374_v34 = vld [vmem:[%s4367_s20 + $0x1f8] sm:$0xff] }
  0x2b   : > { %v448_v38 = vld [vmem:[%s4367_s20 + $0x448] sm:$0xff]  ;;  %v492_v41 = vpack.c.bf16 %v348_v36, %v344_v35  ;;  %v447_v44 = vld [vmem:[%s4367_s20 + $0x440] sm:$0xff]  ;;  %1320 = vmatprep.subr.bf16.mxu1 %v548_v30  ;;  %1122 = vmatpush1.bf16.msra.mxu0 %v495_v37  ;;  %v491_v51 = vpack.c.bf16 %v347_v43, %v343_v42  ;;  %v369_v35 = vld [vmem:[%s4367_s20 + $0x1d0] sm:$0xff]  ;;  %v506_v37 = vpack.c.bf16 %v374_v34, %v370_v33 }
  0x2c   : > { %v452_v39 = vld [vmem:[%s4367_s20 + $0x468] sm:$0xff]  ;;  %v451_v46 = vld [vmem:[%s4367_s20 + $0x460] sm:$0xff]  ;;  %1321 = vmatpush1.bf16.msra.mxu1 %v547_v40  ;;  %v362_v43 = vld [vmem:[%s4367_s20 + $0x198] sm:$0xff] }
  0x2d   : > { %v544_v45 = vpack.c.bf16 %v452_v39, %v448_v38  ;;  %v336_v47 = vld [vmem:[%s4367_s20 + $0xc8] sm:$0xff]  ;;  %1123 = vmatprep.subr.bf16.mxu0 %v492_v41  ;;  %v543_v52 = vpack.c.bf16 %v451_v46, %v447_v44  ;;  %v335_v54 = vld [vmem:[%s4367_s20 + $0xc0] sm:$0xff]  ;;  %v373_v38 = vld [vmem:[%s4367_s20 + $0x1f0] sm:$0xff] }
  0x2e   : > { %v340_v48 = vld [vmem:[%s4367_s20 + $0xe8] sm:$0xff]  ;;  %v339_v55 = vld [vmem:[%s4367_s20 + $0xe0] sm:$0xff]  ;;  %v505_v42 = vpack.c.bf16 %v373_v38, %v369_v35  ;;  %v361_v46 = vld [vmem:[%s4367_s20 + $0x190] sm:$0xff] }
  0x2f   : > { %v440_v49 = vld [vmem:[%s4367_s20 + $0x408] sm:$0xff]  ;;  %v488_v53 = vpack.c.bf16 %v340_v48, %v336_v47  ;;  %v439_v56 = vld [vmem:[%s4367_s20 + $0x400] sm:$0xff]  ;;  %1322 = vmatprep.subr.bf16.mxu1 %v544_v45  ;;  %1124 = vmatpush1.bf16.msra.mxu0 %v491_v51  ;;  %v487_v61 = vpack.c.bf16 %v339_v55, %v335_v54  ;;  %v366_v45 = vld [vmem:[%s4367_s20 + $0x1b8] sm:$0xff] }
  0x30   : > { %v444_v50 = vld [vmem:[%s4367_s20 + $0x428] sm:$0xff]  ;;  %v443_v58 = vld [vmem:[%s4367_s20 + $0x420] sm:$0xff]  ;;  %1323 = vmatpush1.bf16.msra.mxu1 %v543_v52  ;;  %v365_v47 = vld [vmem:[%s4367_s20 + $0x1b0] sm:$0xff] }
  0x31   : > { %v540_v57 = vpack.c.bf16 %v444_v50, %v440_v49  ;;  %v328_v59 = vld [vmem:[%s4367_s20 + $0x88] sm:$0xff]  ;;  %1125 = vmatprep.subr.bf16.mxu0 %v488_v53  ;;  %v539_v62 = vpack.c.bf16 %v443_v58, %v439_v56  ;;  %v327_v0 = vld [vmem:[%s4367_s20 + $0x80] sm:$0xff]  ;;  %v502_v49 = vpack.c.bf16 %v366_v45, %v362_v43  ;;  %v501_v50 = vpack.c.bf16 %v365_v47, %v361_v46  ;;  %v354_v51 = vld [vmem:[%s4367_s20 + $0x158] sm:$0xff] }
  0x32   : > { %v332_v60 = vld [vmem:[%s4367_s20 + $0xa8] sm:$0xff]  ;;  %v331_v2 = vld [vmem:[%s4367_s20 + $0xa0] sm:$0xff]  ;;  %v358_v52 = vld [vmem:[%s4367_s20 + $0x178] sm:$0xff] }
  0x33   : > { %v484_v63 = vpack.c.bf16 %v332_v60, %v328_v59  ;;  %1324 = vmatprep.subr.bf16.mxu1 %v540_v57  ;;  %v320_v3 = vld [vmem:[%s4367_s20 + $0x48] sm:$0xff]  ;;  %1126 = vmatpush1.bf16.msra.mxu0 %v487_v61  ;;  %v483_v6 = vpack.c.bf16 %v331_v2, %v327_v0  ;;  %v319_v8 = vld [vmem:[%s4367_s20 + $0x40] sm:$0xff]  ;;  %v353_v53 = vld [vmem:[%s4367_s20 + $0x150] sm:$0xff]  ;;  %v498_v55 = vpack.c.bf16 %v358_v52, %v354_v51 }
  0x34   : > { %v324_v4 = vld [vmem:[%s4367_s20 + $0x68] sm:$0xff]  ;;  %1325 = vmatpush1.bf16.msra.mxu1 %v539_v62  ;;  %v323_v9 = vld [vmem:[%s4367_s20 + $0x60] sm:$0xff]  ;;  %v357_v56 = vld [vmem:[%s4367_s20 + $0x170] sm:$0xff] }
  0x35   : > { %v4063_v5 = vld [vmem:[%s6939_s1 + $0x8] ss:$12 sps:$4 sm:$0xff]   ;;  %1127 = vmatprep.subr.bf16.mxu0 %v484_v63  ;;  %v480_v7 = vpack.c.bf16 %v324_v4, %v320_v3  ;;  %v479_v12 = vpack.c.bf16 %v323_v9, %v319_v8  ;;  %v311_v14 = vld [vmem:[%s4367_s20] sm:$0xff]  ;;  %1503 = vmatprep.subr.bf16.mxu1 %v506_v37  ;;  %v4066_v60 = vld [vmem:[%s6939_s1 + $0x50] ss:$12 sps:$4 sm:$0xff]   ;;  %v497_v2 = vpack.c.bf16 %v357_v56, %v353_v53 }
  0x36   : > { %v312_v10 = vld [vmem:[%s4367_s20 + $0x8] sm:$0xff]  ;;  %v315_v15 = vld [vmem:[%s4367_s20 + $0x20] sm:$0xff]  ;;  %v346_v3 = vld [vmem:[%s4367_s20 + $0x118] sm:$0xff] }
  0x37   : > { %v316_v11 = vld [vmem:[%s4367_s20 + $0x28] sm:$0xff]  ;;  %3900 = vmatmul.mubr.msk.bf16.vlgmr.msra.gmra.mxu1 %vm1055_vm1, %v4063_v5  ;;  %1128 = vmatpush1.bf16.msra.mxu0 %v483_v6  ;;  %v431_v19 = vld [vmem:[%s4367_s20 + $0x3c0] sm:$0xff]  ;;  %v475_v20 = vpack.c.bf16 %v315_v15, %v311_v14  ;;  %v350_v4 = vld [vmem:[%s4367_s20 + $0x138] sm:$0xff] }
  0x38   : > { %1129 = vmatprep.subr.bf16.mxu0 %v480_v7  ;;  %1352 = vmatprep.mubr.bf16.mxu1 %v6950_v1  ;;  %v476_v13 = vpack.c.bf16 %v316_v11, %v312_v10  ;;  %v432_v16 = vld [vmem:[%s4367_s20 + $0x3c8] sm:$0xff]  ;;  %v4435_v21 = vld [vmem:[%s6939_s1 + $0x4] ss:$12 sps:$4 sm:$0xff]   ;;  %v338_v10 = vld [vmem:[%s4367_s20 + $0xd8] sm:$0xff]  ;;  %v494_v14 = vpack.c.bf16 %v350_v4, %v346_v3 }
  0x39   : > { %v436_v17 = vld [vmem:[%s4367_s20 + $0x3e8] sm:$0xff]  ;;  %v435_v23 = vld [vmem:[%s4367_s20 + $0x3e0] sm:$0xff]  ;;  %1149 = vmatprep.mubr.bf16.mxu0 %v4435_v21  ;;  %1504 = vmatpush1.bf16.msra.mxu1 %v505_v42  ;;  %v345_v7 = vld [vmem:[%s4367_s20 + $0x110] sm:$0xff] }
  0x3a   : > { %v4064_v18 = vld [vmem:[%s6939_s1 + $0x20] ss:$12 sps:$4 sm:$0xff]   ;;  %v536_v22 = vpack.c.bf16 %v436_v17, %v432_v16  ;;  %v535_v27 = vpack.c.bf16 %v435_v23, %v431_v19  ;;  %v4065_v32 = vld [vmem:[%s6939_s1 + $0x38] ss:$12 sps:$4 sm:$0xff]   ;;  %1505 = vmatprep.subr.bf16.mxu1 %v502_v49  ;;  %v349_v8 = vld [vmem:[%s4367_s20 + $0x130] sm:$0xff] }
  0x3b   : > { %1130 = vmatpush1.bf16.msra.mxu0 %v479_v12  ;;  %v424_v24 = vld [vmem:[%s4367_s20 + $0x388] sm:$0xff]  ;;  %v423_v26 = vld [vmem:[%s4367_s20 + $0x380] sm:$0xff]  ;;  %v342_v11 = vld [vmem:[%s4367_s20 + $0xf8] sm:$0xff]  ;;  %v493_v17 = vpack.c.bf16 %v349_v8, %v345_v7 }
  0x3c   : > { %1131 = vmatprep.subr.bf16.mxu0 %v476_v13  ;;  %v428_v25 = vld [vmem:[%s4367_s20 + $0x3a8] sm:$0xff]  ;;  %v427_v28 = vld [vmem:[%s4367_s20 + $0x3a0] sm:$0xff]  ;;  %v637_v12 = vld [vmem:[%s6940_s2 + $0x70] sm:$0xff]  ;;  %v490_v19 = vpack.c.bf16 %v342_v11, %v338_v10 }
  0x3d   : > { %v416_v29 = vld [vmem:[%s4367_s20 + $0x348] sm:$0xff]  ;;  %v532_v30 = vpack.c.bf16 %v428_v25, %v424_v24  ;;  %v415_v36 = vld [vmem:[%s4367_s20 + $0x340] sm:$0xff]  ;;  %v531_v39 = vpack.c.bf16 %v427_v28, %v423_v26  ;;  %1506 = vmatpush1.bf16.msra.mxu1 %v501_v50  ;;  %727 = vperm.xlu0 %4061, %v637_v12   ;;  %v638_v23 = vld [vmem:[%s6940_s2 + $0x78] sm:$0xff] }
  0x3e   : > { %v420_v31 = vld [vmem:[%s4367_s20 + $0x368] sm:$0xff]  ;;  %v419_v40 = vld [vmem:[%s4367_s20 + $0x360] sm:$0xff]  ;;  %1507 = vmatprep.subr.bf16.mxu1 %v498_v55  ;;  %v330_v28 = vld [vmem:[%s4367_s20 + $0x98] sm:$0xff] }
  0x3f   : > { %3901 = vmatmul.mubr.msk.bf16.gmra.mxu1 %vm1055_vm1, %v4064_v18  ;;  %1132 = vmatpush1.bf16.msra.mxu0 %v475_v20  ;;  %v408_v41 = vld [vmem:[%s4367_s20 + $0x308] sm:$0xff]  ;;  %v528_v44 = vpack.c.bf16 %v420_v31, %v416_v29  ;;  %v527_v54 = vpack.c.bf16 %v419_v40, %v415_v36  ;;  %v407_v58 = vld [vmem:[%s4367_s20 + $0x300] sm:$0xff]  ;;  %v337_v20 = vld [vmem:[%s4367_s20 + $0xd0] sm:$0xff] }
  0x40   : > { %1133 = vmatprep.subr.bf16.mxu0 %v536_v22  ;;  %1362 = vmatprep.mubr.bf16.mxu1 %v6950_v1  ;;  %v412_v48 = vld [vmem:[%s4367_s20 + $0x328] sm:$0xff]  ;;  %v411_v59 = vld [vmem:[%s4367_s20 + $0x320] sm:$0xff]  ;;  %v341_v22 = vld [vmem:[%s4367_s20 + $0xf0] sm:$0xff] }
  0x41   : > { %v524_v57 = vpack.c.bf16 %v412_v48, %v408_v41  ;;  %v400_v61 = vld [vmem:[%s4367_s20 + $0x2c8] sm:$0xff]  ;;  %v399_v63 = vld [vmem:[%s4367_s20 + $0x2c0] sm:$0xff]  ;;  %v523_v5 = vpack.c.bf16 %v411_v59, %v407_v58  ;;  %1508 = vmatpush1.bf16.msra.mxu1 %v497_v2  ;;  %v334_v29 = vld [vmem:[%s4367_s20 + $0xb8] sm:$0xff]  ;;  %732 = vperm.xlu0 %4061, %v638_v23   ;;  %v489_v31 = vpack.c.bf16 %v341_v22, %v337_v20 }
  0x42   : > { %v404_v62 = vld [vmem:[%s4367_s20 + $0x2e8] sm:$0xff]  ;;  %v403_v0 = vld [vmem:[%s4367_s20 + $0x2e0] sm:$0xff]  ;;  %1509 = vmatprep.subr.bf16.mxu1 %v494_v14  ;;  %v633_v34 = vld [vmem:[%s6940_s2 + $0x50] sm:$0xff]  ;;  %v486_v43 = vpack.c.bf16 %v334_v29, %v330_v28 }
  0x43   : > { %1134 = vmatpush2.bf16.msra.mxu0 %v535_v27  ;;  %v392_v6 = vld [vmem:[%s4367_s20 + $0x288] sm:$0xff]  ;;  %v520_v9 = vpack.c.bf16 %v404_v62, %v400_v61  ;;  %v391_v15 = vld [vmem:[%s4367_s20 + $0x280] sm:$0xff]  ;;  %v519_v18 = vpack.c.bf16 %v403_v0, %v399_v63  ;;  %v333_v36 = vld [vmem:[%s4367_s20 + $0xb0] sm:$0xff] }
  0x44   : > { %1135 = vmatprep.subr.bf16.mxu0 %v532_v30  ;;  %v396_v13 = vld [vmem:[%s4367_s20 + $0x2a8] sm:$0xff]  ;;  %v395_v16 = vld [vmem:[%s4367_s20 + $0x2a0] sm:$0xff]  ;;  %v326_v40 = vld [vmem:[%s4367_s20 + $0x78] sm:$0xff] }
  0x45   : > { %v516_v24 = vpack.c.bf16 %v396_v13, %v392_v6  ;;  %v384_v25 = vld [vmem:[%s4367_s20 + $0x248] sm:$0xff]  ;;  %v383_v30 = vld [vmem:[%s4367_s20 + $0x240] sm:$0xff]  ;;  %1510 = vmatpush1.bf16.msra.mxu1 %v493_v17  ;;  %v515_v35 = vpack.c.bf16 %v395_v16, %v391_v15  ;;  %707 = vperm.xlu0 %4061, %v633_v34   ;;  %v321_v45 = vld [vmem:[%s4367_s20 + $0x50] sm:$0xff] }
  0x46   : > { %v4067_v26 = vld [vmem:[%s6939_s1 + $0x68] ss:$12 sps:$4 sm:$0xff]   ;;  %v635_v33 = vld [vmem:[%s6940_s2 + $0x60] sm:$0xff]  ;;  %1511 = vmatprep.subr.bf16.mxu1 %v490_v19  ;;  %v473_v56 = vld [vmem:[%s4367_s20 + $0x510] sm:$0xf] }
  0x47   : > { %3902 = vmatmul.mubr.msk.bf16.gmra.mxu1 %vm1055_vm1, %v4065_v32  ;;  %1136 = vmatpush2.bf16.msra.mxu0 %v531_v39  ;;  %v388_v27 = vld [vmem:[%s4367_s20 + $0x268] sm:$0xff]  ;;  %v329_v32 = vld [vmem:[%s4367_s20 + $0x90] sm:$0xff]  ;;  %v387_v38 = vld [vmem:[%s4367_s20 + $0x260] sm:$0xff]  ;;  %v557_v4 = vpack.c.bf16 %v473_v56, %v473_v56 }
  0x48   : > { %1137 = vmatprep.subr.bf16.mxu0 %v528_v44  ;;  %1372 = vmatprep.mubr.bf16.mxu1 %v6950_v1  ;;  %v512_v37 = vpack.c.bf16 %v388_v27, %v384_v25  ;;  %v322_v39 = vld [vmem:[%s4367_s20 + $0x58] sm:$0xff]  ;;  %v376_v41 = vld [vmem:[%s4367_s20 + $0x208] sm:$0xff]  ;;  %v485_v44 = vpack.c.bf16 %v333_v36, %v329_v32  ;;  %v511_v47 = vpack.c.bf16 %v387_v38, %v383_v30  ;;  %v325_v49 = vld [vmem:[%s4367_s20 + $0x70] sm:$0xff] }
  0x49   : > { %717 = vperm.xlu1 %4062, %v635_v33   ;;  %v380_v42 = vld [vmem:[%s4367_s20 + $0x228] sm:$0xff]  ;;  %1512 = vmatpush1.bf16.msra.mxu1 %v489_v31  ;;  %v482_v48 = vpack.c.bf16 %v326_v40, %v322_v39  ;;  %v631_v50 = vld [vmem:[%s6940_s2 + $0x40] sm:$0xff]  ;;  %v481_v58 = vpack.c.bf16 %v325_v49, %v321_v45  ;;  %v318_v59 = vld [vmem:[%s4367_s20 + $0x38] sm:$0xff]  ;;  %v1112_v16 = vsel %vm1104_vm0, %v557_v4, 0 }
  0x4a   : > { %v636_v46 = vld [vmem:[%s6940_s2 + $0x68] sm:$0xff]  ;;  %v508_v51 = vpack.c.bf16 %v380_v42, %v376_v41  ;;  %v375_v52 = vld [vmem:[%s4367_s20 + $0x200] sm:$0xff]  ;;  %1513 = vmatprep.subr.bf16.mxu1 %v486_v43  ;;  %697 = vperm.xlu0 %4061, %v631_v50   ;;  %v313_v62 = vld [vmem:[%s4367_s20 + $0x10] sm:$0xff] }
  0x4b   : > { %1138 = vmatpush2.bf16.msra.mxu0 %v527_v54  ;;  %v379_v53 = vld [vmem:[%s4367_s20 + $0x220] sm:$0xff]  ;;  %v474_v54 = vld [vmem:[%s4367_s20 + $0x518] sm:$0xf]  ;;  %v317_v63 = vld [vmem:[%s4367_s20 + $0x30] sm:$0xff] }
  0x4c   : > { %1139 = vmatprep.subr.bf16.mxu0 %v524_v57  ;;  %v4534_v55 = vld [vmem:[%s6939_s1 + $0x80] ss:$12 sps:$4 sm:$0xff]   ;;  %v314_v57 = vld [vmem:[%s4367_s20 + $0x18] sm:$0xff]  ;;  %v507_v61 = vpack.c.bf16 %v379_v53, %v375_v52  ;;  %v629_v0 = vld [vmem:[%s6940_s2 + $0x30] sm:$0xff]  ;;  %v558_v3 = vpack.c.bf16 %v474_v54, %v474_v54  ;;  %v477_v11 = vpack.c.bf16 %v317_v63, %v313_v62 }
  0x4d   : > { %722 = vperm.xlu1 %4062, %v636_v46   ;;  %1514 = vmatpush1.bf16.msra.mxu1 %v485_v44  ;;  %v4550_v2 = vld [vmem:[%s6939_s1] ss:$12 sps:$4 sm:$0xff]   ;;  %v4556_v6 = vld [vmem:[%s6939_s1 + $0x1c] ss:$12 sps:$4 sm:$0xff]   ;;  %v478_v7 = vpack.c.bf16 %v318_v59, %v314_v57  ;;  %v433_v13 = vld [vmem:[%s4367_s20 + $0x3d0] sm:$0xff] }
  0x4e   : > { %1515 = vmatprep.subr.bf16.mxu1 %v482_v48  ;;  %v438_v8 = vld [vmem:[%s4367_s20 + $0x3f8] sm:$0xff]  ;;  %687 = vperm.xlu0 %4061, %v629_v0   ;;  %v437_v14 = vld [vmem:[%s4367_s20 + $0x3f0] sm:$0xff]  ;;  %v627_v19 = vld [vmem:[%s6940_s2 + $0x20] sm:$0xff] }
  0x4f   : > { %3903 = vmatmul.mubr.msk.bf16.gmra.mxu1 %vm1055_vm1, %v4066_v60  ;;  %1140 = vmatpush2.bf16.msra.mxu0 %v523_v5  ;;  %v634_v60 = vld [vmem:[%s6940_s2 + $0x58] sm:$0xff]  ;;  %v465_v20 = vld [vmem:[%s4367_s20 + $0x4d0] sm:$0xff]  ;;  %v623_v45 = vld [vmem:[%s6940_s2] sm:$0xff] }
  0x50   : > { %1141 = vmatprep.subr.bf16.mxu0 %v520_v9  ;;  %1382 = vmatprep.mubr.bf16.mxu1 %v6950_v1  ;;  %v434_v5 = vld [vmem:[%s4367_s20 + $0x3d8] sm:$0xff]  ;;  %v632_v9 = vld [vmem:[%s6940_s2 + $0x48] sm:$0xff]  ;;  %v469_v23 = vld [vmem:[%s4367_s20 + $0x4f0] sm:$0xff] }
  0x51   : > { %712 = vperm.xlu1 %4062, %v634_v60   ;;  %v466_v10 = vld [vmem:[%s4367_s20 + $0x4d8] sm:$0xff]  ;;  %1516 = vmatpush1.bf16.msra.mxu1 %v481_v58  ;;  %v538_v17 = vpack.c.bf16 %v438_v8, %v434_v5  ;;  %v425_v28 = vld [vmem:[%s4367_s20 + $0x390] sm:$0xff]  ;;  %v553_v30 = vpack.c.bf16 %v469_v23, %v465_v20  ;;  %v624_v56 = vld [vmem:[%s6940_s2 + $0x8] sm:$0xff] }
  0x52   : > { %v470_v12 = vld [vmem:[%s4367_s20 + $0x4f8] sm:$0xff]  ;;  %1517 = vmatprep.subr.bf16.mxu1 %v478_v7  ;;  %v429_v29 = vld [vmem:[%s4367_s20 + $0x3b0] sm:$0xff]  ;;  %677 = vperm.xlu0 %4061, %v627_v19   ;;  %v651_v63 = vld [vmem:[%s6940_s2 + $0xe0] sm:$0xff] }
  0x53   : > { %1142 = vmatpush2.bf16.msra.mxu0 %v519_v18  ;;  %v426_v15 = vld [vmem:[%s4367_s20 + $0x398] sm:$0xff]  ;;  %v554_v22 = vpack.c.bf16 %v470_v12, %v466_v10  ;;  %v4600_v34 = vld [vmem:[%s6939_s1 + $0x34] ss:$12 sps:$4 sm:$0xff]  }
  0x54   : > { %1143 = vmatprep.subr.bf16.mxu0 %v516_v24  ;;  %v430_v18 = vld [vmem:[%s4367_s20 + $0x3b8] sm:$0xff]  ;;  %v537_v24 = vpack.c.bf16 %v437_v14, %v433_v13  ;;  %v625_v36 = vld [vmem:[%s6940_s2 + $0x10] sm:$0xff] }
  0x55   : > { %702 = vperm.xlu1 %4062, %v632_v9   ;;  %1518 = vmatpush1.bf16.msra.mxu1 %v477_v11  ;;  %v630_v25 = vld [vmem:[%s6940_s2 + $0x38] sm:$0xff]  ;;  %v534_v27 = vpack.c.bf16 %v430_v18, %v426_v15  ;;  %v417_v39 = vld [vmem:[%s4367_s20 + $0x350] sm:$0xff] }
  0x56   : > { %1519 = vmatprep.subr.bf16.mxu1 %v538_v17  ;;  %v418_v31 = vld [vmem:[%s4367_s20 + $0x358] sm:$0xff]  ;;  %v421_v40 = vld [vmem:[%s4367_s20 + $0x370] sm:$0xff]  ;;  %667 = vperm.xlu0 %4061, %v625_v36  }
  0x57   : > { %3904 = vmatmul.mubr.msk.bf16.gmra.mxu1 %vm1055_vm1, %v4067_v26  ;;  %1144 = vmatpush2.bf16.msra.mxu0 %v515_v35  ;;  %v4585_v26 = vld [vmem:[%s6939_s1 + $0x98] ss:$12 sps:$4 sm:$0xff]   ;;  %v533_v35 = vpack.c.bf16 %v429_v29, %v425_v28  ;;  %v4618_v43 = vld [vmem:[%s6939_s1 + $0xb0] ss:$12 sps:$4 sm:$0xff]   ;;  %v529_v44 = vpack.c.bf16 %v421_v40, %v417_v39  ;;  %v4661_v0 = vld [vmem:[%s6939_s1 + $0xc8] ss:$12 sps:$4 sm:$0xff]  }
  0x58   : > { %1145 = vmatprep.subr.bf16.mxu0 %v512_v37  ;;  %1392 = vmatprep.mubr.bf16.mxu1 %v6950_v1  ;;  %v422_v32 = vld [vmem:[%s4367_s20 + $0x378] sm:$0xff]  ;;  %v628_v37 = vld [vmem:[%s6940_s2 + $0x28] sm:$0xff]  ;;  %v409_v46 = vld [vmem:[%s4367_s20 + $0x310] sm:$0xff] }
  0x59   : > { %v4595_v33 = vld [vmem:[%s6939_s1 + $0x18] ss:$12 sps:$4 sm:$0xff]   ;;  %692 = vperm.xlu1 %4062, %v630_v25   ;;  %1520 = vmatpush2.bf16.msra.mxu1 %v537_v24  ;;  %v530_v38 = vpack.c.bf16 %v422_v32, %v418_v31  ;;  %v413_v49 = vld [vmem:[%s4367_s20 + $0x330] sm:$0xff]  ;;  %v4702_v29 = vld [vmem:[%s6939_s1 + $0xe0] ss:$12 sps:$4 sm:$0xff]  }
  0x5a   : > { %1521 = vmatprep.subr.bf16.mxu1 %v534_v27  ;;  %v410_v41 = vld [vmem:[%s4367_s20 + $0x318] sm:$0xff]  ;;  %657 = vperm.xlu0 %4061, %v623_v45   ;;  %v525_v53 = vpack.c.bf16 %v413_v49, %v409_v46  ;;  %v653_v54 = vld [vmem:[%s6940_s2 + $0xf0] sm:$0xff]  ;;  %v4721_v45 = vld [vmem:[%s6939_s1 + $0x60] ss:$12 sps:$4 sm:$0xff]  }
  0x5b   : > { %1146 = vmatpush2.bf16.msra.mxu0 %v511_v47  ;;  %v414_v42 = vld [vmem:[%s4367_s20 + $0x338] sm:$0xff]  ;;  %v401_v59 = vld [vmem:[%s4367_s20 + $0x2d0] sm:$0xff] }
  0x5c   : > { %1147 = vmatprep.subr.bf16.mxu0 %v508_v51  ;;  %v626_v47 = vld [vmem:[%s6940_s2 + $0x18] sm:$0xff]  ;;  %v526_v48 = vpack.c.bf16 %v414_v42, %v410_v41  ;;  %v405_v60 = vld [vmem:[%s4367_s20 + $0x2f0] sm:$0xff] }
  0x5d   : > { %682 = vperm.xlu1 %4062, %v628_v37   ;;  %1522 = vmatpush2.bf16.msra.mxu1 %v533_v35  ;;  %v402_v50 = vld [vmem:[%s4367_s20 + $0x2d8] sm:$0xff]  ;;  %v521_v7 = vpack.c.bf16 %v405_v60, %v401_v59  ;;  %v457_v10 = vld [vmem:[%s4367_s20 + $0x490] sm:$0xff] }
  0x5e   : > { %1523 = vmatprep.subr.bf16.mxu1 %v530_v38  ;;  %v406_v51 = vld [vmem:[%s4367_s20 + $0x2f8] sm:$0xff]  ;;  %807 = vperm.xlu0 %4061, %v653_v54   ;;  %v461_v11 = vld [vmem:[%s4367_s20 + $0x4b0] sm:$0xff] }
  0x5f   : > { %3905 = vmatmul.mubr.msk.bf16.gmra.mxu1 %vm1055_vm1, %v4534_v55  ;;  %1148 = vmatpush2.bf16.msra.mxu0 %v507_v61  ;;  %v4635_v52 = vld [vmem:[%s6939_s1 + $0x30] ss:$12 sps:$4 sm:$0xff]   ;;  %v4648_v57 = vld [vmem:[%s6939_s1 + $0x4c] ss:$12 sps:$4 sm:$0xff]   ;;  %v522_v58 = vpack.c.bf16 %v406_v51, %v402_v50  ;;  %v549_v14 = vpack.c.bf16 %v461_v11, %v457_v10  ;;  %v4679_v17 = vld [vmem:[%s6939_s1 + $0x48] ss:$12 sps:$4 sm:$0xff]  }
  0x60   : > { %1402 = vmatprep.mubr.bf16.mxu1 %v6950_v1  ;;  %3916 = vmatprep.subr.msk.bf16.mxu0 %vm1104_vm0, %v558_v3  ;;  %v394_v61 = vld [vmem:[%s4367_s20 + $0x298] sm:$0xff]  ;;  %v393_v3 = vld [vmem:[%s4367_s20 + $0x290] sm:$0xff]  ;;  %v643_v50 = vld [vmem:[%s6940_s2 + $0xa0] sm:$0xff] }
  0x61   : > { %672 = vperm.xlu1 %4062, %v626_v47   ;;  %1524 = vmatpush2.bf16.msra.mxu1 %v529_v44  ;;  %v398_v62 = vld [vmem:[%s4367_s20 + $0x2b8] sm:$0xff]  ;;  %v397_v13 = vld [vmem:[%s4367_s20 + $0x2b0] sm:$0xff]  ;;  %v2241_v10 = vld [vmem:[%s6942_s4] sm:$0xff] }
  0x62   : > { %1150 = vmatmul.mubr.bf16.vlgmr.msra.gmra.mxu0 %v4550_v2  ;;  %1525 = vmatprep.subr.bf16.mxu1 %v526_v48  ;;  %v458_v4 = vld [vmem:[%s4367_s20 + $0x498] sm:$0xff]  ;;  %v518_v12 = vpack.c.bf16 %v398_v62, %v394_v61  ;;  %v4684_v18 = vld [vmem:[%s6939_s1 + $0x64] ss:$12 sps:$4 sm:$0xff]   ;;  %v517_v19 = vpack.c.bf16 %v397_v13, %v393_v3  ;;  %v648_v48 = vld [vmem:[%s6940_s2 + $0xc8] sm:$0xff] }
  0x63   : > { %1159 = vmatprep.mubr.bf16.mxu0 %v4556_v6  ;;  %1703 = vmatpush1.bf16.msra.mxu0 %v1112_v16  ;;  %v462_v5 = vld [vmem:[%s4367_s20 + $0x4b8] sm:$0xff]  ;;  %v649_v20 = vld [vmem:[%s6940_s2 + $0xd0] sm:$0xff]  ;;  %v644_v3 = vld [vmem:[%s6940_s2 + $0xa8] sm:$0xff] }
  0x64   : > { %1704 = vmatprep.subr.bf16.mxu0 %v554_v22  ;;  %v654_v8 = vld [vmem:[%s6940_s2 + $0xf8] sm:$0xff]  ;;  %v550_v9 = vpack.c.bf16 %v462_v5, %v458_v4  ;;  %797 = vperm.xlu0 %4061, %v651_v63   ;;  %v652_v22 = vld [vmem:[%s6940_s2 + $0xe8] sm:$0xff]  ;;  %v385_v24 = vld [vmem:[%s4367_s20 + $0x250] sm:$0xff] }
  0x65   : > { %662 = vperm.xlu1 %4062, %v624_v56   ;;  %1526 = vmatpush2.bf16.msra.mxu1 %v525_v53  ;;  %v386_v15 = vld [vmem:[%s4367_s20 + $0x258] sm:$0xff]  ;;  %v389_v25 = vld [vmem:[%s4367_s20 + $0x270] sm:$0xff]  ;;  %v639_v5 = vld [vmem:[%s6940_s2 + $0x80] sm:$0xff] }
  0x66   : > { %1527 = vmatprep.subr.bf16.mxu1 %v522_v58  ;;  %v390_v16 = vld [vmem:[%s4367_s20 + $0x278] sm:$0xff]  ;;  %v513_v31 = vpack.c.bf16 %v389_v25, %v385_v24  ;;  %v377_v32 = vld [vmem:[%s4367_s20 + $0x210] sm:$0xff]  ;;  %v640_v11 = vld [vmem:[%s6940_s2 + $0x88] sm:$0xff] }
  0x67   : > { %3906 = vmatmul.mubr.msk.bf16.gmra.mxu1 %vm1055_vm1, %v4585_v26  ;;  %1705 = vmatpush1.bf16.msra.mxu0 %v553_v30  ;;  %v514_v23 = vpack.c.bf16 %v390_v16, %v386_v15  ;;  %v378_v27 = vld [vmem:[%s4367_s20 + $0x218] sm:$0xff]  ;;  %v647_v30 = vld [vmem:[%s6940_s2 + $0xc0] sm:$0xff]  ;;  %v381_v35 = vld [vmem:[%s4367_s20 + $0x230] sm:$0xff] }
  0x68   : > { %1412 = vmatprep.mubr.bf16.mxu1 %v6950_v1  ;;  %1706 = vmatprep.subr.bf16.mxu0 %v550_v9  ;;  %v382_v28 = vld [vmem:[%s4367_s20 + $0x238] sm:$0xff]  ;;  %v449_v40 = vld [vmem:[%s4367_s20 + $0x450] sm:$0xff]  ;;  %v509_v46 = vpack.c.bf16 %v381_v35, %v377_v32  ;;  %v2246_v24 = vld [vmem:[%s6942_s4 + $0x28] sm:$0xff] }
  0x69   : > { %812 = vperm.xlu1 %4062, %v654_v8   ;;  %1528 = vmatpush2.bf16.msra.mxu1 %v521_v7  ;;  %v650_v36 = vld [vmem:[%s6940_s2 + $0xd8] sm:$0xff]  ;;  %v510_v37 = vpack.c.bf16 %v382_v28, %v378_v27  ;;  %v453_v42 = vld [vmem:[%s4367_s20 + $0x470] sm:$0xff]  ;;  %v4847_v25 = vld [vmem:[%s6939_s1 + $0x140] ss:$12 sps:$4 sm:$0xff]  }
  0x6a   : > { %1160 = vmatmul.mubr.bf16.gmra.mxu0 %v4595_v33  ;;  %1529 = vmatprep.subr.bf16.mxu1 %v518_v12  ;;  %v450_v38 = vld [vmem:[%s4367_s20 + $0x458] sm:$0xff]  ;;  %v545_v44 = vpack.c.bf16 %v453_v42, %v449_v40  ;;  %v645_v47 = vld [vmem:[%s6940_s2 + $0xb0] sm:$0xff]  ;;  %v4853_v27 = vld [vmem:[%s6939_s1 + $0xc0] ss:$12 sps:$4 sm:$0xff]  }
  0x6b   : > { %1169 = vmatprep.mubr.bf16.mxu0 %v4600_v34  ;;  %1707 = vmatpush1.bf16.msra.mxu0 %v549_v14  ;;  %v454_v39 = vld [vmem:[%s4367_s20 + $0x478] sm:$0xff]  ;;  %v441_v58 = vld [vmem:[%s4367_s20 + $0x410] sm:$0xff]  ;;  %v2242_v14 = vld [vmem:[%s6942_s4 + $0x8] sm:$0xff] }
  0x6c   : > { %787 = vperm.xlu0 %4061, %v649_v20   ;;  %v546_v41 = vpack.c.bf16 %v454_v39, %v450_v38  ;;  %v4734_v49 = vld [vmem:[%s6939_s1 + $0x7c] ss:$12 sps:$4 sm:$0xff]   ;;  %v445_v59 = vld [vmem:[%s4367_s20 + $0x430] sm:$0xff]  ;;  %v4751_v60 = vld [vmem:[%s6939_s1 + $0xf8] ss:$12 sps:$4 sm:$0xff]  }
  0x6d   : > { %802 = vperm.xlu1 %4062, %v652_v22   ;;  %1530 = vmatpush2.bf16.msra.mxu1 %v517_v19  ;;  %v442_v51 = vld [vmem:[%s4367_s20 + $0x418] sm:$0xff]  ;;  %v541_v61 = vpack.c.bf16 %v445_v59, %v441_v58  ;;  %v641_v63 = vld [vmem:[%s6940_s2 + $0x90] sm:$0xff]  ;;  %v2245_v19 = vld [vmem:[%s6942_s4 + $0x20] sm:$0xff] }
  0x6e   : > { %1531 = vmatprep.subr.bf16.mxu1 %v514_v23  ;;  %1708 = vmatprep.subr.bf16.mxu0 %v546_v41  ;;  %v446_v53 = vld [vmem:[%s4367_s20 + $0x438] sm:$0xff]  ;;  %v4770_v4 = vld [vmem:[%s6939_s1 + $0x94] ss:$12 sps:$4 sm:$0xff]   ;;  %v4834_v22 = vld [vmem:[%s6939_s1 + $0xc4] ss:$12 sps:$4 sm:$0xff]  }
  0x6f   : > { %3907 = vmatmul.mubr.msk.bf16.gmra.mxu1 %vm1055_vm1, %v4618_v43  ;;  %1709 = vmatpush1.bf16.msra.mxu0 %v545_v44  ;;  %v646_v54 = vld [vmem:[%s6940_s2 + $0xb8] sm:$0xff]  ;;  %v542_v56 = vpack.c.bf16 %v446_v53, %v442_v51  ;;  %v2243_v13 = vld [vmem:[%s6942_s4 + $0x10] sm:$0xff]  ;;  %v2249_v28 = vld [vmem:[%s6942_s4 + $0x40] sm:$0xff] }
  0x70   : > { %1422 = vmatprep.mubr.bf16.mxu1 %v6950_v1  ;;  %777 = vperm.xlu0 %4061, %v647_v30   ;;  %v4757_v62 = vld [vmem:[%s6939_s1 + $0x78] ss:$12 sps:$4 sm:$0xff]   ;;  %v4783_v8 = vld [vmem:[%s6939_s1 + $0x110] ss:$12 sps:$4 sm:$0xff]   ;;  %v4815_v15 = vld [vmem:[%s6939_s1 + $0x128] ss:$12 sps:$4 sm:$0xff]  }
  0x71   : > { %792 = vperm.xlu1 %4062, %v650_v36   ;;  %1532 = vmatpush2.bf16.msra.mxu1 %v513_v31  ;;  %v642_v7 = vld [vmem:[%s6940_s2 + $0x98] sm:$0xff]  ;;  %v4821_v16 = vld [vmem:[%s6939_s1 + $0xa8] ss:$12 sps:$4 sm:$0xff]   ;;  %v2253_v38 = vld [vmem:[%s6942_s4 + $0x60] sm:$0xff] }
  0x72   : > { %1170 = vmatmul.mubr.bf16.gmra.mxu0 %v4635_v52  ;;  %1533 = vmatprep.subr.bf16.mxu1 %v510_v37  ;;  %v4789_v9 = vld [vmem:[%s6939_s1 + $0x90] ss:$12 sps:$4 sm:$0xff]   ;;  %v4802_v12 = vld [vmem:[%s6939_s1 + $0xac] ss:$12 sps:$4 sm:$0xff]   ;;  %v4898_v40 = vld [vmem:[%s6939_s1 + $0xf4] ss:$12 sps:$4 sm:$0xff]  }
  0x73   : > { %1179 = vmatprep.mubr.bf16.mxu0 %v4648_v57  ;;  %1710 = vmatprep.subr.bf16.mxu0 %v542_v56  ;;  %v2244_v20 = vld [vmem:[%s6942_s4 + $0x18] sm:$0xff]  ;;  %v2247_v23 = vld [vmem:[%s6942_s4 + $0x30] sm:$0xff]  ;;  %v2250_v35 = vld [vmem:[%s6942_s4 + $0x48] sm:$0xff] }
  0x74   : > { %767 = vperm.xlu0 %4061, %v645_v47   ;;  %1711 = vmatpush1.bf16.msra.mxu0 %v541_v61  ;;  %v2248_v30 = vld [vmem:[%s6942_s4 + $0x38] sm:$0xff]  ;;  %v2251_v32 = vld [vmem:[%s6942_s4 + $0x50] sm:$0xff]  ;;  %v2254_v42 = vld [vmem:[%s6942_s4 + $0x68] sm:$0xff] }
  0x75   : > { %782 = vperm.xlu1 %4062, %v648_v48   ;;  %1534 = vmatpush2.bf16.msra.mxu1 %v509_v46  ;;  %v4866_v31 = vld [vmem:[%s6939_s1 + $0xdc] ss:$12 sps:$4 sm:$0xff]   ;;  %v4879_v36 = vld [vmem:[%s6939_s1 + $0x158] ss:$12 sps:$4 sm:$0xff]   ;;  %v2255_v41 = vld [vmem:[%s6942_s4 + $0x70] sm:$0xff] }
  0x76   : > { %v4885_v37 = vld [vmem:[%s6939_s1 + $0xd8] ss:$12 sps:$4 sm:$0xff]   ;;  %v4911_v44 = vld [vmem:[%s6939_s1 + $0x170] ss:$12 sps:$4 sm:$0xff]   ;;  %v2258_v53 = vld [vmem:[%s6942_s4 + $0x88] sm:$0xff] }
  0x77   : > { %3908 = vmatmul.mubr.msk.bf16.gmra.mxu1 %vm1055_vm1, %v4661_v0  ;;  %v2252_v39 = vld [vmem:[%s6942_s4 + $0x58] sm:$0xff]  ;;  %v2257_v47 = vld [vmem:[%s6942_s4 + $0x80] sm:$0xff]  ;;  %v2259_v51 = vld [vmem:[%s6942_s4 + $0x90] sm:$0xff] }
  0x78   : > { %1432 = vmatprep.mubr.bf16.mxu1 %v6950_v1  ;;  %757 = vperm.xlu0 %4061, %v643_v50   ;;  %v4917_v46 = vld [vmem:[%s6939_s1 + $0xf0] ss:$12 sps:$4 sm:$0xff]   ;;  %v4930_v50 = vld [vmem:[%s6939_s1 + $0x10c] ss:$12 sps:$4 sm:$0xff]  }
  0x79   : > { %772 = vperm.xlu1 %4062, %v646_v54   ;;  %v2256_v48 = vld [vmem:[%s6942_s4 + $0x78] sm:$0xff]  ;;  %v2261_v54 = vld [vmem:[%s6942_s4 + $0xa0] sm:$0xff]  ;;  %v2263_v59 = vld [vmem:[%s6942_s4 + $0xb0] sm:$0xff] }
  0x7a   : > { %1180 = vmatmul.mubr.bf16.gmra.mxu0 %v4679_v17  ;;  %v2260_v56 = vld [vmem:[%s6942_s4 + $0x98] sm:$0xff]  ;;  %v4956_v58 = vld [vmem:[%s6939_s1 + $0x124] ss:$12 sps:$4 sm:$0xff]   ;;  %v2262_v61 = vld [vmem:[%s6942_s4 + $0xa8] sm:$0xff] }
  0x7b   : > { %1189 = vmatprep.mubr.bf16.mxu0 %v4684_v18 }
  0x7c   : > { %747 = vperm.xlu0 %4061, %v641_v63   ;;  %v2264_v63 = vld [vmem:[%s6942_s4 + $0xb8] sm:$0xff] }
  0x7d   : > { %762 = vperm.xlu1 %4062, %v644_v3   ;;  %v4982_v3 = vld [vmem:[%s6939_s1 + $0x13c] ss:$12 sps:$4 sm:$0xff]  }
  0x7f   : > { %3909 = vmatmul.mubr.msk.bf16.gmra.mxu1 %vm1055_vm1, %v4702_v29 }
  0x80   : > { %1442 = vmatprep.mubr.bf16.mxu1 %v6950_v1  ;;  %737 = vperm.xlu0 %4061, %v639_v5   ;;  %v2267_v5 = vld [vmem:[%s6942_s4 + $0xd0] sm:$0xff] }
  0x81   : > { %752 = vperm.xlu1 %4062, %v642_v7   ;;  %v2266_v7 = vld [vmem:[%s6942_s4 + $0xc8] sm:$0xff] }
  0x82   : > { %1190 = vmatmul.mubr.bf16.gmra.mxu0 %v4721_v45 }
  0x83   : > { %1199 = vmatprep.mubr.bf16.mxu0 %v4734_v49 }
  0x84   : > { %2275 = vperm.xlu0 %4061, %v2241_v10   ;;  %v2268_v10 = vld [vmem:[%s6942_s4 + $0xd8] sm:$0xff] }
  0x85   : > { %742 = vperm.xlu1 %4062, %v640_v11   ;;  %v5008_v11 = vld [vmem:[%s6939_s1 + $0x154] ss:$12 sps:$4 sm:$0xff]  }
  0x87   : > { %3910 = vmatmul.mubr.msk.bf16.gmra.mxu1 %vm1055_vm1, %v4751_v60 }
  0x88   : > { %1452 = vmatprep.mubr.bf16.mxu1 %v6950_v1  ;;  %2285 = vperm.xlu0 %4061, %v2243_v13   ;;  %v3237_v13 = vld [vmem:[%s6943_s5 + $0x10] sm:$0xff] }
  0x89   : > { %2280 = vperm.xlu1 %4062, %v2242_v14   ;;  %v3236_v14 = vld [vmem:[%s6943_s5 + $0x8] sm:$0xff] }
  0x8a   : > { %1200 = vmatmul.mubr.bf16.gmra.mxu0 %v4757_v62 }
  0x8b   : > { %1209 = vmatprep.mubr.bf16.mxu0 %v4770_v4 }
  0x8c   : > { %2295 = vperm.xlu0 %4061, %v2245_v19   ;;  %v3238_v19 = vld [vmem:[%s6943_s5 + $0x18] sm:$0xff] }
  0x8d   : > { %2290 = vperm.xlu1 %4062, %v2244_v20   ;;  %v5034_v20 = vld [vmem:[%s6939_s1 + $0x16c] ss:$12 sps:$4 sm:$0xff]  }
  0x8f   : > { %3911 = vmatmul.mubr.msk.bf16.gmra.mxu1 %vm1055_vm1, %v4783_v8 }
  0x90   : > { %1462 = vmatprep.mubr.bf16.mxu1 %v6950_v1  ;;  %2305 = vperm.xlu0 %4061, %v2247_v23   ;;  %v3241_v23 = vld [vmem:[%s6943_s5 + $0x30] sm:$0xff] }
  0x91   : > { %2300 = vperm.xlu1 %4062, %v2246_v24   ;;  %v3240_v24 = vld [vmem:[%s6943_s5 + $0x28] sm:$0xff] }
  0x92   : > { %1210 = vmatmul.mubr.bf16.gmra.mxu0 %v4789_v9 }
  0x93   : > { %1219 = vmatprep.mubr.bf16.mxu0 %v4802_v12 }
  0x94   : > { %2315 = vperm.xlu0 %4061, %v2249_v28   ;;  %v3242_v28 = vld [vmem:[%s6943_s5 + $0x38] sm:$0xff] }
  0x95   : > { %2310 = vperm.xlu1 %4062, %v2248_v30   ;;  %v3245_v30 = vld [vmem:[%s6943_s5 + $0x50] sm:$0xff] }
  0x97   : > { %3912 = vmatmul.mubr.msk.bf16.gmra.mxu1 %vm1055_vm1, %v4815_v15 }
  0x98   : > { %1472 = vmatprep.mubr.bf16.mxu1 %v6950_v1  ;;  %2325 = vperm.xlu0 %4061, %v2251_v32   ;;  %v3244_v32 = vld [vmem:[%s6943_s5 + $0x48] sm:$0xff] }
  0x99   : > { %2320 = vperm.xlu1 %4062, %v2250_v35   ;;  %v4175_v35 = vld [vmem:[%s6939_s1 + $0x8] ss:$12 sps:$4 sm:$0xff]  }
  0x9a   : > { %1220 = vmatmul.mubr.bf16.gmra.mxu0 %v4821_v16 }
  0x9b   : > { %1229 = vmatprep.mubr.bf16.mxu0 %v4834_v22 }
  0x9c   : > { %2335 = vperm.xlu0 %4061, %v2253_v38   ;;  %v3249_v38 = vld [vmem:[%s6943_s5 + $0x70] sm:$0xff] }
  0x9d   : > { %2330 = vperm.xlu1 %4062, %v2252_v39   ;;  %v3248_v39 = vld [vmem:[%s6943_s5 + $0x68] sm:$0xff] }
  0x9f   : > { %3913 = vmatmul.mubr.msk.bf16.gmra.mxu1 %vm1055_vm1, %v4847_v25 }
  0xa0   : > { %1482 = vmatprep.mubr.bf16.mxu1 %v6950_v1  ;;  %2345 = vperm.xlu0 %4061, %v2255_v41   ;;  %v4176_v41 = vld [vmem:[%s6939_s1 + $0x20] ss:$12 sps:$4 sm:$0xff]  }
  0xa1   : > { %2340 = vperm.xlu1 %4062, %v2254_v42   ;;  %v3253_v42 = vld [vmem:[%s6943_s5 + $0x90] sm:$0xff] }
  0xa2   : > { %1230 = vmatmul.mubr.bf16.gmra.mxu0 %v4853_v27 }
  0xa3   : > { %1239 = vmatprep.mubr.bf16.mxu0 %v4866_v31 }
  0xa4   : > { %2355 = vperm.xlu0 %4061, %v2257_v47   ;;  %v3252_v47 = vld [vmem:[%s6943_s5 + $0x88] sm:$0xff] }
  0xa5   : > { %2350 = vperm.xlu1 %4062, %v2256_v48   ;;  %v4177_v48 = vld [vmem:[%s6939_s1 + $0x38] ss:$12 sps:$4 sm:$0xff]  }
  0xa7   : > { %3914 = vmatmul.mubr.msk.bf16.gmra.mxu1 %vm1055_vm1, %v4879_v36 }
  0xa8   : > { %1492 = vmatprep.mubr.bf16.mxu1 %v6950_v1  ;;  %2365 = vperm.xlu0 %4061, %v2259_v51   ;;  %v3257_v51 = vld [vmem:[%s6943_s5 + $0xb0] sm:$0xff] }
  0xa9   : > { %2360 = vperm.xlu1 %4062, %v2258_v53   ;;  %v3256_v53 = vld [vmem:[%s6943_s5 + $0xa8] sm:$0xff] }
  0xaa   : > { %1240 = vmatmul.mubr.bf16.gmra.mxu0 %v4885_v37 }
  0xab   : > { %1249 = vmatprep.mubr.bf16.mxu0 %v4898_v40 }
  0xac   : > { %2375 = vperm.xlu0 %4061, %v2261_v54   ;;  %v3258_v54 = vld [vmem:[%s6943_s5 + $0xb8] sm:$0xff] }
  0xad   : > { %2370 = vperm.xlu1 %4062, %v2260_v56  }
  0xaf   : > { %3915 = vmatmul.mubr.msk.bf16.gmra.mxu1 %vm1055_vm1, %v4911_v44 }
  0xb0   : > { %1535 = vmatprep.mubr.bf16.mxu1 %v4435_v21  ;;  %v4944_v21 = vld [vmem:[%s6939_s1 + $0x108] ss:$12 sps:$4 sm:$0xff]   ;;  %2385 = vperm.xlu0 %4061, %v2263_v59  }
  0xb1   : > { %2380 = vperm.xlu1 %4062, %v2262_v61   ;;  %v4178_v61 = vld [vmem:[%s6939_s1 + $0x50] ss:$12 sps:$4 sm:$0xff]  }
  0xb2   : > { %1250 = vmatmul.mubr.bf16.gmra.mxu0 %v4917_v46 }
  0xb3   : > { %1259 = vmatprep.mubr.bf16.mxu0 %v4930_v50 }
  0xb5   : > { %2390 = vperm.xlu1 %4062, %v2264_v63   ;;  %v3260_v63 = vld [vmem:[%s6943_s5 + $0xc8] sm:$0xff] }
  0xb7   : > { %1536 = vmatmul.mubr.bf16.vlgmr.msra.gmra.mxu1 %v4550_v2  ;;  %v4970_v2 = vld [vmem:[%s6939_s1 + $0x120] ss:$12 sps:$4 sm:$0xff]  }
  0xb8   : > { %1545 = vmatprep.mubr.bf16.mxu1 %v4556_v6  ;;  %v2265_v6 = vld [vmem:[%s6942_s4 + $0xc0] sm:$0xff] }
  0xb9   : > { %2395 = vperm.xlu0 %4061, %v2265_v6   ;;  %2400 = vperm.xlu1 %4062, %v2266_v7  }
  0xba   : > { %1260 = vmatmul.mubr.bf16.gmra.mxu0 %v4944_v21 }
  0xbb   : > { %1269 = vmatprep.mubr.bf16.mxu0 %v4956_v58 }
  0xbd   : > { %2405 = vperm.xlu0 %4061, %v2267_v5   ;;  %2410 = vperm.xlu1 %4062, %v2268_v10   ;;  %v2270_v10 = vld [vmem:[%s6942_s4 + $0xe8] sm:$0xff] }
  0xbf   : > { %1546 = vmatmul.mubr.bf16.gmra.mxu1 %v4595_v33  ;;  %v4996_v33 = vld [vmem:[%s6939_s1 + $0x138] ss:$12 sps:$4 sm:$0xff]  }
  0xc0   : > { %1555 = vmatprep.mubr.bf16.mxu1 %v4600_v34  ;;  %v3235_v34 = vld [vmem:[%s6943_s5] sm:$0xff] }
  0xc1   : > { %3269 = vperm.xlu0 %4061, %v3235_v34   ;;  %3274 = vperm.xlu1 %4062, %v3236_v14   ;;  %v3261_v34 = vld [vmem:[%s6943_s5 + $0xd0] sm:$0xff] }
  0xc2   : > { %1270 = vmatmul.mubr.bf16.gmra.mxu0 %v4970_v2 }
  0xc3   : > { %1279 = vmatprep.mubr.bf16.mxu0 %v4982_v3 }
  0xc4   : > { %v5141_v6 = vpop.permute.xlu1 %717 }
  0xc5   : > { %3279 = vperm.xlu0 %4061, %v3237_v13   ;;  %3284 = vperm.xlu1 %4062, %v3238_v19   ;;  %7154 = vst [vmem:[#allocation7_spill] sm:$0xff] %v5141_v6  ;;  %v4179_v19 = vld [vmem:[%s6939_s1 + $0x68] ss:$12 sps:$4 sm:$0xff]  }
  0xc7   : > { %1556 = vmatmul.mubr.bf16.gmra.mxu1 %v4635_v52  ;;  %v5022_v52 = vld [vmem:[%s6939_s1 + $0x150] ss:$12 sps:$4 sm:$0xff]  }
  0xc8   : > { %1565 = vmatprep.mubr.bf16.mxu1 %v4648_v57  ;;  %v3239_v57 = vld [vmem:[%s6943_s5 + $0x20] sm:$0xff]  ;;  %v5166_v14 = vpop.permute.xlu1 %722 }
  0xc9   : > { %3289 = vperm.xlu0 %4061, %v3239_v57   ;;  %3294 = vperm.xlu1 %4062, %v3240_v24   ;;  %7156 = vst [vmem:[#allocation9_spill] sm:$0xff] %v5166_v14 }
  0xca   : > { %1280 = vmatmul.mubr.bf16.gmra.mxu0 %v4996_v33 }
  0xcb   : > { %1289 = vmatprep.mubr.bf16.mxu0 %v5008_v11 }
  0xcd   : > { %3299 = vperm.xlu0 %4061, %v3241_v23   ;;  %3304 = vperm.xlu1 %4062, %v3242_v28   ;;  %v5187_v28 = vpop.permute.xlu1 %712 }
  0xce   : > { %7158 = vst [vmem:[#allocation11_spill] sm:$0xff] %v5187_v28 }
  0xcf   : > { %1566 = vmatmul.mubr.bf16.gmra.mxu1 %v4679_v17  ;;  %v5048_v17 = vld [vmem:[%s6939_s1 + $0x168] ss:$12 sps:$4 sm:$0xff]  }
  0xd0   : > { %1575 = vmatprep.mubr.bf16.mxu1 %v4684_v18  ;;  %v3243_v18 = vld [vmem:[%s6943_s5 + $0x40] sm:$0xff] }
  0xd1   : > { %3309 = vperm.xlu0 %4061, %v3243_v18   ;;  %3314 = vperm.xlu1 %4062, %v3244_v32   ;;  %v2272_v32 = vld [vmem:[%s6942_s4 + $0xf8] sm:$0xff] }
  0xd2   : > { %1290 = vmatmul.mubr.bf16.gmra.mxu0 %v5022_v52 }
  0xd3   : > { %1299 = vmatprep.mubr.bf16.mxu0 %v5034_v20 }
  0xd5   : > { %3319 = vperm.xlu0 %4061, %v3245_v30   ;;  %v3263_v30 = vld [vmem:[%s6943_s5 + $0xe0] sm:$0xff] }
  0xd7   : > { %1576 = vmatmul.mubr.bf16.gmra.mxu1 %v4721_v45  ;;  %v3247_v45 = vld [vmem:[%s6943_s5 + $0x60] sm:$0xff] }
  0xd8   : > { %1585 = vmatprep.mubr.bf16.mxu1 %v4734_v49  ;;  %v3246_v49 = vld [vmem:[%s6943_s5 + $0x58] sm:$0xff] }
  0xd9   : > { %3329 = vperm.xlu0 %4061, %v3247_v45   ;;  %3324 = vperm.xlu1 %4062, %v3246_v49  }
  0xda   : > { %1300 = vmatmul.mubr.bf16.gmra.mxu0 %v5048_v17 }
  0xdb   : > { %1728 = vmatprep.mubr.bf16.mxu0 %v6950_v1 }
  0xdd   : > { %3339 = vperm.xlu0 %4061, %v3249_v38   ;;  %3334 = vperm.xlu1 %4062, %v3248_v39   ;;  %v3265_v38 = vld [vmem:[%s6943_s5 + $0xf0] sm:$0xff]  ;;  %v3264_v39 = vld [vmem:[%s6943_s5 + $0xe8] sm:$0xff] }
  0xdf   : > { %1586 = vmatmul.mubr.bf16.gmra.mxu1 %v4757_v62  ;;  %v3251_v62 = vld [vmem:[%s6943_s5 + $0x80] sm:$0xff] }
  0xe0   : > { %1595 = vmatprep.mubr.bf16.mxu1 %v4770_v4  ;;  %v3250_v4 = vld [vmem:[%s6943_s5 + $0x78] sm:$0xff] }
  0xe1   : > { %3349 = vperm.xlu0 %4061, %v3251_v62   ;;  %3344 = vperm.xlu1 %4062, %v3250_v4  }
  0xe2   : > { %3917 = vmatmul.mubr.msk.bf16.vlgmr.msra.gmra.mxu0 %vm1055_vm1, %v4175_v35 }
  0xe3   : > { %1738 = vmatprep.mubr.bf16.mxu0 %v6950_v1 }
  0xe5   : > { %3359 = vperm.xlu0 %4061, %v3253_v42   ;;  %3354 = vperm.xlu1 %4062, %v3252_v47  }
  0xe7   : > { %1596 = vmatmul.mubr.bf16.gmra.mxu1 %v4789_v9  ;;  %v3255_v9 = vld [vmem:[%s6943_s5 + $0xa0] sm:$0xff] }
  0xe8   : > { %1605 = vmatprep.mubr.bf16.mxu1 %v4802_v12  ;;  %v3254_v12 = vld [vmem:[%s6943_s5 + $0x98] sm:$0xff] }
  0xe9   : > { %3369 = vperm.xlu0 %4061, %v3255_v9   ;;  %3364 = vperm.xlu1 %4062, %v3254_v12  }
  0xea   : > { %3918 = vmatmul.mubr.msk.bf16.gmra.mxu0 %vm1055_vm1, %v4176_v41  ;;  %v3266_v41 = vld [vmem:[%s6943_s5 + $0xf8] sm:$0xff] }
  0xeb   : > { %1748 = vmatprep.mubr.bf16.mxu0 %v6950_v1 }
  0xed   : > { %3379 = vperm.xlu0 %4061, %v3257_v51   ;;  %3374 = vperm.xlu1 %4062, %v3256_v53  }
  0xef   : > { %1606 = vmatmul.mubr.bf16.gmra.mxu1 %v4821_v16  ;;  %v5123_v16 = vpop.permute.xlu0 %727 }
  0xf0   : > { %1615 = vmatprep.mubr.bf16.mxu1 %v4834_v22  ;;  %7153 = vst [vmem:[#allocation6_spill] sm:$0xff] %v5123_v16  ;;  %v3259_v22 = vld [vmem:[%s6943_s5 + $0xc0] sm:$0xff] }
  0xf1   : > { %3389 = vperm.xlu0 %4061, %v3259_v22   ;;  %3384 = vperm.xlu1 %4062, %v3258_v54  }
  0xf2   : > { %3919 = vmatmul.mubr.msk.bf16.gmra.mxu0 %vm1055_vm1, %v4177_v48 }
  0xf3   : > { %1758 = vmatprep.mubr.bf16.mxu0 %v6950_v1  ;;  %v5152_v5 = vpop.permute.xlu0 %732 }
  0xf4   : > { %7155 = vst [vmem:[#allocation8_spill] sm:$0xff] %v5152_v5 }
  0xf5   : > { %3394 = vperm.xlu0 %4061, %v3260_v63  }
  0xf7   : > { %v5131_v56 = vpop.f32.mrf.mxu1  ;;  %1616 = vmatmul.mubr.bf16.gmra.mxu1 %v4853_v27  ;;  %v2269_v27 = vld [vmem:[%s6942_s4 + $0xe0] sm:$0xff]  ;;  %v5174_v23 = vpop.permute.xlu0 %707 }
  0xf8   : > { %1625 = vmatprep.mubr.bf16.mxu1 %v4866_v31  ;;  %2415 = vperm.xlu1 %4062, %v2269_v27   ;;  %7157 = vst [vmem:[#allocation10_spill] sm:$0xff] %v5174_v23 }
  0xf9   : > { %v5135_v59 = vpop.f32.mrf.mxu1  ;;  %3399 = vperm.xlu0 %4061, %v3261_v34  }
  0xfa   : > { %3920 = vmatmul.mubr.msk.bf16.gmra.mxu0 %vm1055_vm1, %v4178_v61 }
  0xfb   : > { %v5149_v31 = vpop.f32.mrf.mxu1  ;;  %1768 = vmatprep.mubr.bf16.mxu0 %v6950_v1  ;;  %v5199_v49 = vpop.permute.xlu0 %697 }
  0xfc   : > { %2420 = vperm.xlu1 %4062, %v2270_v10   ;;  %7159 = vst [vmem:[#allocation12_spill] sm:$0xff] %v5199_v49 }
  0xfd   : > { %v5154_v7 = vpop.f32.mrf.mxu1 }
  0xff   : > { %v5162_v13 = vpop.f32.mrf.mxu1  ;;  %1626 = vmatmul.mubr.bf16.gmra.mxu1 %v4885_v37  ;;  %v3262_v37 = vld [vmem:[%s6943_s5 + $0xd8] sm:$0xff]  ;;  %v5218_v4 = vpop.permute.xlu0 %687 }
 0x100   : > { %1635 = vmatprep.mubr.bf16.mxu1 %v4898_v40  ;;  %v2271_v40 = vld [vmem:[%s6942_s4 + $0xf0] sm:$0xff]  ;;  %3404 = vperm.xlu0 %4061, %v3262_v37   ;;  %7161 = vst [vmem:[#allocation14_spill] sm:$0xff] %v5218_v4 }
 0x101   : > { %v5168_v57 = vpop.f32.mrf.mxu1  ;;  %2425 = vperm.xlu1 %4062, %v2271_v40  }
 0x102   : > { %3921 = vmatmul.mubr.msk.bf16.gmra.mxu0 %vm1055_vm1, %v4179_v19 }
 0x103   : > { %v5182_v24 = vpop.f32.mrf.mxu1  ;;  %1778 = vmatprep.mubr.bf16.mxu0 %v6950_v1  ;;  %v5236_v48 = vpop.permute.xlu0 %677 }
 0x104   : > { %3409 = vperm.xlu0 %4061, %v3263_v30   ;;  %7163 = vst [vmem:[#allocation16_spill] sm:$0xff] %v5236_v48 }
 0x105   : > { %v5185_v18 = vpop.f32.mrf.mxu1  ;;  %2430 = vperm.xlu1 %4062, %v2272_v32  }
 0x107   : > { %v5195_v45 = vpop.f32.mrf.mxu1  ;;  %1636 = vmatmul.mubr.bf16.gmra.mxu1 %v4917_v46 }
 0x108   : > { %1645 = vmatprep.mubr.bf16.mxu1 %v4930_v50  ;;  %v5214_v50 = vpop.permute.xlu1 %702  ;;  %3419 = vperm.xlu0 %4061, %v3265_v38  }
 0x109   : > { %v5201_v35 = vpop.f32.mrf.mxu1  ;;  %7160 = vst [vmem:[#allocation13_spill] sm:$0xff] %v5214_v50  ;;  %3414 = vperm.xlu1 %4062, %v3264_v39  }
 0x10a   : > { %3922 = vmatmul.mubr.msk.bf16.gmra.mxu0 %vm1055_vm1, %v4534_v55  ;;  %v3703_v55 = vld [vmem:[#allocation2] sm:$0x1] }
 0x10b   : > { %v5211_v46 = vpop.f32.mrf.mxu1  ;;  %1788 = vmatprep.mubr.bf16.mxu0 %v6950_v1 }
 0x10c   : > { %3706 = vperm.xlu0 %4061, %v3703_v55   ;;  %v5231_v9 = vpop.permute.xlu1 %692 }
 0x10d   : > { %v5216_v62 = vpop.f32.mrf.mxu1  ;;  %3424 = vperm.xlu1 %4062, %v3266_v41   ;;  %7162 = vst [vmem:[#allocation15_spill] sm:$0xff] %v5231_v9 }
 0x10f   : > { %v5223_v42 = vpop.f32.mrf.mxu1  ;;  %1646 = vmatmul.mubr.bf16.gmra.mxu1 %v4944_v21 }
 0x110   : > { %1655 = vmatprep.mubr.bf16.mxu1 %v4956_v58  ;;  %v5244_v58 = vpop.permute.xlu1 %682 }
 0x111   : > { %v5227_v47 = vpop.f32.mrf.mxu1  ;;  %7164 = vst [vmem:[#allocation17_spill] sm:$0xff] %v5244_v58 }
 0x112   : > { %3923 = vmatmul.mubr.msk.bf16.gmra.mxu0 %vm1055_vm1, %v4585_v26  ;;  %v5248_v26 = vpop.permute.xlu0 %667 }
 0x113   : > { %v5233_v12 = vpop.f32.mrf.mxu1  ;;  %1798 = vmatprep.mubr.bf16.mxu0 %v6950_v1  ;;  %7165 = vst [vmem:[#allocation18_spill] sm:$0xff] %v5248_v26 }
 0x114   : > { %v5257_v61 = vpop.permute.xlu1 %672 }
 0x115   : > { %v5238_v51 = vpop.f32.mrf.mxu1  ;;  %7166 = vst [vmem:[#allocation19_spill] sm:$0xff] %v5257_v61 }
 0x117   : > { %v5240_v21 = vpop.f32.mrf.mxu1  ;;  %1656 = vmatmul.mubr.bf16.gmra.mxu1 %v4970_v2 }
 0x118   : > { %1665 = vmatprep.mubr.bf16.mxu1 %v4982_v3  ;;  %v5262_v3 = vpop.permute.xlu0 %657  ;;  %v5273_v19 = vpop.permute.xlu1 %662 }
 0x119   : > { %v5246_v53 = vpop.f32.mrf.mxu1  ;;  %7167 = vst [vmem:[#allocation20_spill] sm:$0xff] %v5262_v3  ;;  %7170 = vst [vmem:[#allocation23_spill] sm:$0xff] %v5273_v19 }
 0x11a   : > { %3924 = vmatmul.mubr.msk.bf16.gmra.mxu0 %vm1055_vm1, %v4618_v43 }
 0x11b   : > { %v5252_v22 = vpop.f32.mrf.mxu1  ;;  %1808 = vmatprep.mubr.bf16.mxu0 %v6950_v1 }
 0x11d   : > { %v5255_v54 = vpop.f32.mrf.mxu1 }
 0x11f   : > { %v5259_v2 = vpop.f32.mrf.mxu1  ;;  %1666 = vmatmul.mubr.bf16.gmra.mxu1 %v4996_v33 }
 0x120   : > { %1675 = vmatprep.mubr.bf16.mxu1 %v5008_v11 }
 0x121   : > { %v5265_v63 = vpop.f32.mrf.mxu1 }
 0x122   : > { %7168 = vst [vmem:[#allocation21_spill] sm:$0xff] %v5265_v63  ;;  %v1151_v27 = vpop.f32.mrf.mxu0  ;;  %3925 = vmatmul.mubr.msk.bf16.gmra.mxu0 %vm1055_vm1, %v4661_v0 }
 0x123   : > { %v1152_v43 = vadd.f32 %v1151_v27, %v5262_v3  ;;  %v5270_v34 = vpop.f32.mrf.mxu1  ;;  %1818 = vmatprep.mubr.bf16.mxu0 %v6950_v1 }
 0x124   : > { %7169 = vst [vmem:[#allocation22_spill] sm:$0xff] %v5270_v34  ;;  %v1153_v10 = vpop.f32.mrf.mxu0 }
 0x125   : > { %v1345_v33 = vadd.f32 %v5131_v56, %v1152_v43  ;;  %v1154_v37 = vadd.f32 %v1153_v10, %v5262_v3  ;;  %v5277_v11 = vpop.f32.mrf.mxu1 }
 0x126   : > { %v1155_v40 = vpop.f32.mrf.mxu0 }
 0x127   : > { %v1347_v30 = vadd.f32 %v5135_v59, %v1154_v37  ;;  %v1156_v0 = vadd.f32 %v1155_v40, %v5273_v19  ;;  %v5281_v32 = vpop.f32.mrf.mxu1  ;;  %1676 = vmatmul.mubr.bf16.gmra.mxu1 %v5022_v52  ;;  %v1889_v38 = vmul.f32 0.1, %v1345_v33 }
 0x128   : > { %v1157_v39 = vpop.f32.mrf.mxu0  ;;  %1685 = vmatprep.mubr.bf16.mxu1 %v5034_v20 }
 0x129   : > { %v1349_v55 = vadd.f32 %v5149_v31, %v1156_v0  ;;  %v1158_v56 = vadd.f32 %v1157_v39, %v5273_v19  ;;  %v5287_v41 = vpop.f32.mrf.mxu1  ;;  %v1890_v59 = vmul.f32 0.1, %v1347_v30  ;;  %v2017_v20 = vmax.f32 %v1345_v33, %v1889_v38 }
 0x12a   : > { %v1161_v27 = vpop.f32.mrf.mxu0  ;;  %3926 = vmatmul.mubr.msk.bf16.gmra.mxu0 %vm1055_vm1, %v4702_v29 }
 0x12b   : > { %v1893_v43 = vmul.f32 0.1, %v1349_v55  ;;  %v1351_v10 = vadd.f32 %v5154_v7, %v1158_v56  ;;  %v1162_v52 = vadd.f32 %v1161_v27, %v5248_v26  ;;  %v5293_v37 = vpop.f32.mrf.mxu1  ;;  %1828 = vmatprep.mubr.bf16.mxu0 %v6950_v1  ;;  %v2018_v34 = vmax.f32 %v1347_v30, %v1890_v59 }
 0x12c   : > { %v1163_v31 = vpop.f32.mrf.mxu0 }
 0x12d   : > { %v2021_v40 = vmax.f32 %v1349_v55, %v1893_v43  ;;  %v1894_v0 = vmul.f32 0.1, %v1351_v10  ;;  %v1355_v39 = vadd.f32 %v5162_v13, %v1162_v52  ;;  %v1164_v19 = vadd.f32 %v1163_v31, %v5248_v26  ;;  %v5298_v3 = vpop.f32.mrf.mxu1 }
 0x12e   : > { %v1165_v29 = vpop.f32.mrf.mxu0 }
 0x12f   : > { %v5300_v63 = vpack.c.bf16 %v2021_v40, %v2017_v20  ;;  %v2022_v7 = vmax.f32 %v1351_v10, %v1894_v0  ;;  %v1357_v56 = vadd.f32 %v5168_v57, %v1164_v19  ;;  %v5303_v27 = vpop.f32.mrf.mxu1  ;;  %1686 = vmatmul.mubr.bf16.gmra.mxu1 %v5048_v17  ;;  %v1166_v33 = vadd.f32 %v1165_v29, %v5257_v61 }
 0x130   : > { %v1167_v38 = vpop.f32.mrf.mxu0  ;;  %v1897_v52 = vmul.f32 0.1, %v1355_v39 }
 0x131   : > { %7171 = vst [vmem:[#allocation24_spill] sm:$0xff] %v5300_v63  ;;  %v1168_v13 = vadd.f32 %v1167_v38, %v5257_v61  ;;  %v5308_v55 = vpop.f32.mrf.mxu1  ;;  %v5310_v43 = vpack.c.bf16 %v2022_v7, %v2018_v34  ;;  %v1359_v30 = vadd.f32 %v5182_v24, %v1166_v33  ;;  %v1898_v10 = vmul.f32 0.1, %v1357_v56 }
 0x132   : > { %v1171_v59 = vpop.f32.mrf.mxu0  ;;  %3927 = vmatmul.mubr.msk.bf16.gmra.mxu0 %vm1055_vm1, %v4751_v60  ;;  %v2025_v29 = vmax.f32 %v1355_v39, %v1897_v52 }
 0x133   : > { %v1361_v57 = vadd.f32 %v5185_v18, %v1168_v13  ;;  %v1172_v17 = vadd.f32 %v1171_v59, %v5236_v48  ;;  %v5317_v19 = vpop.f32.mrf.mxu1  ;;  %1838 = vmatprep.mubr.bf16.mxu0 %v6950_v1  ;;  %v1901_v20 = vmul.f32 0.1, %v1359_v30  ;;  %v5328_v59 = vpop.permute.xlu0 %807  ;;  %v2026_v1 = vmax.f32 %v1357_v56, %v1898_v10 }
 0x134   : > { %v1173_v31 = vpop.f32.mrf.mxu0  ;;  %7172 = vst [vmem:[#allocation25_spill] sm:$0xff] %v5328_v59 }
 0x135   : > { %v1902_v34 = vmul.f32 0.1, %v1361_v57  ;;  %v1365_v40 = vadd.f32 %v5195_v45, %v1172_v17  ;;  %v1174_v24 = vadd.f32 %v1173_v31, %v5236_v48  ;;  %v5322_v0 = vpop.f32.mrf.mxu1  ;;  %v2029_v60 = vmax.f32 %v1359_v30, %v1901_v20  ;;  %v5336_v30 = vpop.permute.xlu1 %812 }
 0x136   : > { %v1175_v7 = vpop.f32.mrf.mxu0  ;;  %7173 = vst [vmem:[#allocation26_spill] sm:$0xff] %v5336_v30 }
 0x137   : > { %v2030_v18 = vmax.f32 %v1361_v57, %v1902_v34  ;;  %v1367_v33 = vadd.f32 %v5201_v35, %v1174_v24  ;;  %v1176_v38 = vadd.f32 %v1175_v7, %v5244_v58  ;;  %v5326_v13 = vpop.f32.mrf.mxu1  ;;  %v5330_v61 = vpack.c.bf16 %v2029_v60, %v2025_v29 }
 0x138   : > { %v1177_v45 = vpop.f32.mrf.mxu0  ;;  %v1905_v17 = vmul.f32 0.1, %v1365_v40 }
 0x139   : > { %v1369_v31 = vadd.f32 %v5211_v46, %v1176_v38  ;;  %v1178_v39 = vadd.f32 %v1177_v45, %v5244_v58  ;;  %v5334_v52 = vpop.f32.mrf.mxu1  ;;  %v5340_v57 = vpack.c.bf16 %v2030_v18, %v2026_v1  ;;  %v1906_v20 = vmul.f32 0.1, %v1367_v33  ;;  %v5350_v1 = vpop.permute.xlu0 %797 }
 0x13a   : > { %v1181_v35 = vpop.f32.mrf.mxu0  ;;  %3928 = vmatmul.mubr.msk.bf16.gmra.mxu0 %vm1055_vm1, %v4783_v8  ;;  %v7174_v46 = vmov 0   ;;  %v2033_v60 = vmax.f32 %v1365_v40, %v1905_v17  ;;  %7176 = vst [vmem:[#allocation28_spill] sm:$0xff] %v5350_v1  ;;  %v5357_v30 = vpop.permute.xlu1 %802 }
 0x13b   : > { %v1909_v56 = vmul.f32 0.1, %v1369_v31  ;;  %v1371_v10 = vadd.f32 %v5216_v62, %v1178_v39  ;;  %v1182_v34 = vadd.f32 %v1181_v35, %v5218_v4  ;;  %v5344_v24 = vpop.f32.mrf.mxu1  ;;  %1848 = vmatprep.mubr.bf16.mxu0 %v7174_v46  ;;  %v2034_v62 = vmax.f32 %v1367_v33, %v1906_v20  ;;  %7177 = vst [vmem:[#allocation29_spill] sm:$0xff] %v5357_v30 }
 0x13c   : > { %v1183_v29 = vpop.f32.mrf.mxu0 }
 0x13d   : > { %v2037_v7 = vmax.f32 %v1369_v31, %v1909_v56  ;;  %v1910_v38 = vmul.f32 0.1, %v1371_v10  ;;  %v1184_v45 = vadd.f32 %v1183_v29, %v5218_v4  ;;  %v5348_v58 = vpop.f32.mrf.mxu1  ;;  %v1375_v8 = vadd.f32 %v5223_v42, %v1182_v34 }
 0x13e   : > { %7175 = vst [vmem:[#allocation27_spill] sm:$0xff] %v5348_v58  ;;  %v1185_v18 = vpop.f32.mrf.mxu0 }
 0x13f   : > { %v5353_v39 = vpack.c.bf16 %v2037_v7, %v2033_v60  ;;  %v2038_v35 = vmax.f32 %v1371_v10, %v1910_v38  ;;  %v5355_v48 = vpop.f32.mrf.mxu1  ;;  %v1377_v40 = vadd.f32 %v5227_v47, %v1184_v45  ;;  %v1186_v17 = vadd.f32 %v1185_v18, %v5231_v9  ;;  %v5373_v47 = vpop.permute.xlu0 %787 }
 0x140   : > { %v1187_v31 = vpop.f32.mrf.mxu0  ;;  %v1913_v42 = vmul.f32 0.1, %v1375_v8  ;;  %7178 = vst [vmem:[#allocation30_spill] sm:$0xff] %v5373_v47  ;;  %v4129_v47 = vld [vmem:[%s6941_s3 + $0x4] ss:$8 sps:$4 sm:$0xff]  }
 0x141   : > { %v1188_v56 = vadd.f32 %v1187_v31, %v5231_v9  ;;  %v5362_v29 = vpop.f32.mrf.mxu1  ;;  %v5364_v4 = vpack.c.bf16 %v2038_v35, %v2034_v62  ;;  %v1379_v33 = vadd.f32 %v5233_v12, %v1186_v17  ;;  %v1914_v60 = vmul.f32 0.1, %v1377_v40  ;;  %v5377_v62 = vpop.permute.xlu1 %792  ;;  %2625 = vmatprep.mubr.bf16.mxu1 %v4129_v47 }
 0x142   : > { %v1191_v20 = vpop.f32.mrf.mxu0  ;;  %3929 = vmatmul.mubr.msk.bf16.gmra.mxu0 %vm1055_vm1, %v4815_v15  ;;  %7180 = vst [vmem:[#allocation32_spill] sm:$0xff] %v5377_v62  ;;  %v2041_v12 = vmax.f32 %v1375_v8, %v1913_v42 }
 0x143   : > { %v1381_v10 = vadd.f32 %v5238_v51, %v1188_v56  ;;  %v5370_v34 = vpop.f32.mrf.mxu1  ;;  %1858 = vmatprep.mubr.bf16.mxu0 %v7174_v46  ;;  %v1917_v7 = vmul.f32 0.1, %v1379_v33  ;;  %v2042_v51 = vmax.f32 %v1377_v40, %v1914_v60  ;;  %v5388_v1 = vpop.permute.xlu0 %777 }
 0x144   : > { %v1193_v38 = vpop.f32.mrf.mxu0  ;;  %7182 = vst [vmem:[#allocation34_spill] sm:$0xff] %v5388_v1 }
 0x145   : > { %v1918_v45 = vmul.f32 0.1, %v1381_v10  ;;  %v5375_v18 = vpop.f32.mrf.mxu1  ;;  %v2045_v35 = vmax.f32 %v1379_v33, %v1917_v7  ;;  %v5397_v40 = vpop.permute.xlu1 %782 }
 0x146   : > { %7179 = vst [vmem:[#allocation31_spill] sm:$0xff] %v5375_v18  ;;  %v1195_v17 = vpop.f32.mrf.mxu0  ;;  %7183 = vst [vmem:[#allocation35_spill] sm:$0xff] %v5397_v40 }
 0x147   : > { %v2046_v15 = vmax.f32 %v1381_v10, %v1918_v45  ;;  %v5379_v31 = vpop.f32.mrf.mxu1  ;;  %v5381_v56 = vpack.c.bf16 %v2045_v35, %v2041_v12  ;;  %v5403_v45 = vpop.permute.xlu0 %767 }
 0x148   : > { %v1197_v9 = vpop.f32.mrf.mxu0  ;;  %7186 = vst [vmem:[#allocation38_spill] sm:$0xff] %v5403_v45 }
 0x149   : > { %v5383_v58 = vpop.f32.mrf.mxu1  ;;  %v5392_v8 = vpack.c.bf16 %v2046_v15, %v2042_v51 }
 0x14a   : > { %7181 = vst [vmem:[#allocation33_spill] sm:$0xff] %v5383_v58  ;;  %v1201_v59 = vpop.f32.mrf.mxu0  ;;  %3930 = vmatmul.mubr.msk.bf16.gmra.mxu0 %vm1055_vm1, %v4847_v25  ;;  %v5407_v25 = vpop.permute.xlu1 %772 }
 0x14b   : > { %v5394_v42 = vpop.f32.mrf.mxu1  ;;  %1868 = vmatprep.mubr.bf16.mxu0 %v7174_v46  ;;  %7188 = vst [vmem:[#allocation40_spill] sm:$0xff] %v5407_v25  ;;  %v5416_v26 = vpop.permute.xlu0 %757 }
 0x14c   : > { %v1203_v33 = vpop.f32.mrf.mxu0  ;;  %7191 = vst [vmem:[#allocation43_spill] sm:$0xff] %v5416_v26 }
 0x14d   : > { %v5399_v10 = vpop.f32.mrf.mxu1 }
 0x14e   : > { %7184 = vst [vmem:[#allocation36_spill] sm:$0xff] %v5399_v10  ;;  %v1205_v60 = vpop.f32.mrf.mxu0  ;;  %v5420_v1 = vpop.permute.xlu1 %762  ;;  %v1192_v10 = vadd.f32 %v1191_v20, %v5199_v49 }
 0x14f   : > { %v5401_v7 = vpop.f32.mrf.mxu1  ;;  %7193 = vst [vmem:[#allocation45_spill] sm:$0xff] %v5420_v1  ;;  %v5431_v18 = vpop.permute.xlu0 %747 }
 0x150   : > { %7185 = vst [vmem:[#allocation37_spill] sm:$0xff] %v5401_v7  ;;  %v1207_v12 = vpop.f32.mrf.mxu0  ;;  %7195 = vst [vmem:[#allocation47_spill] sm:$0xff] %v5431_v18 }
 0x151   : > { %v5405_v35 = vpop.f32.mrf.mxu1 }
 0x152   : > { %7187 = vst [vmem:[#allocation39_spill] sm:$0xff] %v5405_v35  ;;  %v1211_v15 = vpop.f32.mrf.mxu0  ;;  %3931 = vmatmul.mubr.msk.bf16.gmra.mxu0 %vm1055_vm1, %v4879_v36 }
 0x153   : > { %v5411_v51 = vpop.f32.mrf.mxu1  ;;  %1878 = vmatprep.mubr.bf16.mxu0 %v7174_v46  ;;  %v1194_v46 = vadd.f32 %v1193_v38, %v5199_v49  ;;  %v5442_v38 = vpop.permute.xlu1 %752 }
 0x154   : > { %7189 = vst [vmem:[#allocation41_spill] sm:$0xff] %v5411_v51  ;;  %v1213_v58 = vpop.f32.mrf.mxu0  ;;  %7196 = vst [vmem:[#allocation48_spill] sm:$0xff] %v5442_v38 }
 0x155   : > { %v5414_v62 = vpop.f32.mrf.mxu1 }
 0x156   : > { %7190 = vst [vmem:[#allocation42_spill] sm:$0xff] %v5414_v62  ;;  %v1215_v7 = vpop.f32.mrf.mxu0  ;;  %v1196_v62 = vadd.f32 %v1195_v17, %v5214_v50 }
 0x157   : > { %v5418_v40 = vpop.f32.mrf.mxu1  ;;  %v1216_v17 = vadd.f32 %v1215_v7, %v5166_v14 }
 0x158   : > { %7192 = vst [vmem:[#allocation44_spill] sm:$0xff] %v5418_v40  ;;  %v1217_v35 = vpop.f32.mrf.mxu0 }
 0x159   : > { %v5422_v30 = vpop.f32.mrf.mxu1  ;;  %v1218_v40 = vadd.f32 %v1217_v35, %v5166_v14  ;;  %v5447_v35 = vadd.f32 %v5246_v53, %v1194_v46 }
 0x15a   : > { %7194 = vst [vmem:[#allocation46_spill] sm:$0xff] %v5422_v30  ;;  %v1221_v36 = vpop.f32.mrf.mxu0  ;;  %3932 = vmatmul.mubr.msk.bf16.gmra.mxu0 %vm1055_vm1, %v4911_v44  ;;  %v1198_v30 = vadd.f32 %v1197_v9, %v5214_v50  ;;  %v5440_v44 = vadd.f32 %v5240_v21, %v1192_v10  ;;  %v5450_v9 = vadd.f32 %v5252_v22, %v1196_v62 }
 0x15b   : > { %v5429_v51 = vpop.f32.mrf.mxu1  ;;  %2818 = vmatprep.mubr.bf16.mxu0 %v4129_v47  ;;  %v1222_v20 = vadd.f32 %v1221_v36, %v5123_v16  ;;  %v1214_v47 = vadd.f32 %v1213_v58, %v5141_v6  ;;  %v1208_v36 = vadd.f32 %v1207_v12, %v5187_v28  ;;  %v1212_v21 = vadd.f32 %v1211_v15, %v5141_v6  ;;  %v5470_v15 = vpop.permute.xlu0 %737 }
 0x15c   : > { %v1223_v25 = vpop.f32.mrf.mxu0  ;;  %v5458_v10 = vadd.f32 %v5298_v3, %v1218_v40  ;;  %v5463_v46 = vadd.f32 %v5255_v54, %v1198_v30  ;;  %v1204_v22 = vadd.f32 %v1203_v33, %v5174_v23  ;;  %7198 = vst [vmem:[#allocation50_spill] sm:$0xff] %v5470_v15  ;;  %v1206_v3 = vadd.f32 %v1205_v60, %v5187_v28  ;;  %v5488_v60 = vpop.permute.xlu1 %742 }
 0x15d   : > { %v1224_v45 = vadd.f32 %v1223_v25, %v5123_v16  ;;  %v5437_v63 = vpop.f32.mrf.mxu1  ;;  %v1202_v25 = vadd.f32 %v1201_v59, %v5174_v23  ;;  %v1415_v59 = vadd.f32 %v5303_v27, %v1222_v20  ;;  %v5482_v27 = vadd.f32 %v5277_v11, %v1208_v36  ;;  %7200 = vst [vmem:[#allocation52_spill] sm:$0xff] %v5488_v60 }
 0x15e   : > { %v1225_v49 = vpop.f32.mrf.mxu0 }
 0x15f   : > { %v5454_v16 = vpop.f32.mrf.mxu1  ;;  %v1417_v58 = vadd.f32 %v5308_v55, %v1224_v45  ;;  %v1226_v7 = vadd.f32 %v1225_v49, %v5152_v5  ;;  %v1407_v55 = vadd.f32 %v5287_v41, %v1214_v47  ;;  %v5475_v49 = vadd.f32 %v5293_v37, %v1216_v17 }
 0x160   : > { %7197 = vst [vmem:[#allocation49_spill] sm:$0xff] %v5454_v16  ;;  %v1227_v53 = vpop.f32.mrf.mxu0  ;;  %v5479_v40 = vadd.f32 %v5259_v2, %v1202_v25  ;;  %v1405_v41 = vadd.f32 %v5281_v32, %v1212_v21  ;;  %v1942_v37 = vmul.f32 0.1, %v5458_v10  ;;  %v1945_v2 = vmul.f32 0.1, %v1415_v59 }
 0x161   : > { %v1228_v62 = vadd.f32 %v1227_v53, %v5152_v5  ;;  %v5468_v12 = vpop.f32.mrf.mxu1  ;;  %v1419_v54 = vadd.f32 %v5317_v19, %v1226_v7  ;;  %v1946_v19 = vmul.f32 0.1, %v1417_v58  ;;  %v7201_v7 = vld [vmem:[#allocation21_spill] sm:$0xff]  ;;  %v1938_v5 = vmul.f32 0.1, %v1407_v55 }
 0x162   : > { %v1231_v30 = vpop.f32.mrf.mxu0  ;;  %v1397_v53 = vadd.f32 %v7201_v7, %v1204_v22  ;;  %v1941_v32 = vmul.f32 0.1, %v5475_v49  ;;  %v2070_v22 = vmax.f32 %v5458_v10, %v1942_v37  ;;  %v2073_v23 = vmax.f32 %v1415_v59, %v1945_v2 }
 0x163   : > { %v1421_v33 = vadd.f32 %v5322_v0, %v1228_v62  ;;  %v1232_v45 = vadd.f32 %v1231_v30, %v5470_v15  ;;  %v5486_v20 = vpop.f32.mrf.mxu1  ;;  %v1949_v47 = vmul.f32 0.1, %v1419_v54  ;;  %v7202_v62 = vld [vmem:[#allocation22_spill] sm:$0xff]  ;;  %v1929_v59 = vmul.f32 0.1, %v5479_v40 }
 0x164   : > { %7199 = vst [vmem:[#allocation51_spill] sm:$0xff] %v5486_v20  ;;  %v1233_v17 = vpop.f32.mrf.mxu0  ;;  %v5498_v30 = vadd.f32 %v7202_v62, %v1206_v3  ;;  %v2074_v3 = vmax.f32 %v1417_v58, %v1946_v19  ;;  %v1926_v62 = vmul.f32 0.1, %v5463_v46 }
 0x165   : > { %v1950_v25 = vmul.f32 0.1, %v1421_v33  ;;  %v1425_v11 = vadd.f32 %v5326_v13, %v1232_v45  ;;  %v1234_v36 = vadd.f32 %v1233_v17, %v5470_v15  ;;  %v5494_v0 = vpop.f32.mrf.mxu1  ;;  %v2077_v14 = vmax.f32 %v1419_v54, %v1949_v47 }
 0x166   : > { %v1235_v21 = vpop.f32.mrf.mxu0  ;;  %v1934_v17 = vmul.f32 0.1, %v5482_v27  ;;  %v1937_v15 = vmul.f32 0.1, %v1405_v41  ;;  %v1930_v47 = vmul.f32 0.1, %v1397_v53 }
 0x167   : > { %v2078_v6 = vmax.f32 %v1421_v33, %v1950_v25  ;;  %v5502_v28 = vadd.f32 %v5334_v52, %v1234_v36  ;;  %v1236_v13 = vadd.f32 %v1235_v21, %v5488_v60  ;;  %v5505_v45 = vpop.f32.mrf.mxu1  ;;  %v1953_v54 = vmul.f32 0.1, %v1425_v11 }
 0x168   : > { %v5509_v7 = vpop.f32.mrf.mxu0  ;;  %v1933_v25 = vmul.f32 0.1, %v5498_v30  ;;  %v2066_v36 = vmax.f32 %v1407_v55, %v1938_v5  ;;  %v2205_v10 = vpack.c.bf16 %v2077_v14, %v2073_v23  ;;  %v2065_v2 = vmax.f32 %v1405_v41, %v1937_v15 }
 0x169   : > { %7203 = vst [vmem:[#allocation21_spill] sm:$0xff] %v5502_v28  ;;  %v1429_v33 = vadd.f32 %v5344_v24, %v1236_v13  ;;  %v5513_v52 = vpop.f32.mrf.mxu1  ;;  %v2206_v50 = vpack.c.bf16 %v2078_v6, %v2074_v3  ;;  %v2069_v28 = vmax.f32 %v5475_v49, %v1941_v32  ;;  %v2062_v24 = vmax.f32 %v5482_v27, %v1934_v17 }
 0x16a   : > { %v1241_v21 = vpop.f32.mrf.mxu0  ;;  %v2202_v16 = vpack.c.bf16 %v2070_v22, %v2066_v36  ;;  %v2081_v20 = vmax.f32 %v1425_v11, %v1953_v54  ;;  %v1922_v23 = vmul.f32 0.1, %v5447_v35  ;;  %v1925_v49 = vmul.f32 0.1, %v5450_v9 }
 0x16b   : > { %v1957_v58 = vmul.f32 0.1, %v1429_v33  ;;  %v1242_v37 = vadd.f32 %v1241_v21, %v5431_v18  ;;  %v5518_v19 = vpop.f32.mrf.mxu1  ;;  %2593 = vmatprep.subr.bf16.mxu1 %v2206_v50  ;;  %v2058_v32 = vmax.f32 %v1397_v53, %v1930_v47  ;;  %v2061_v50 = vmax.f32 %v5498_v30, %v1933_v25 }
 0x16c   : > { %v1243_v13 = vpop.f32.mrf.mxu0  ;;  %2594 = vmatpush1.bf16.msra.mxu1 %v2205_v10  ;;  %v2201_v15 = vpack.c.bf16 %v2069_v28, %v2065_v2  ;;  %v2054_v17 = vmax.f32 %v5463_v46, %v1926_v62  ;;  %v2057_v53 = vmax.f32 %v5479_v40, %v1929_v59  ;;  %v2050_v28 = vmax.f32 %v5447_v35, %v1922_v23 }
 0x16d   : > { %v2085_v5 = vmax.f32 %v1429_v33, %v1957_v58  ;;  %v1435_v6 = vadd.f32 %v5355_v48, %v1242_v37  ;;  %v1244_v55 = vadd.f32 %v1243_v13, %v5431_v18  ;;  %v5524_v14 = vpop.f32.mrf.mxu1  ;;  %2595 = vmatprep.subr.bf16.mxu1 %v2202_v16  ;;  %v2198_v54 = vpack.c.bf16 %v2062_v24, %v2058_v32 }
 0x16e   : > { %v1245_v27 = vpop.f32.mrf.mxu0  ;;  %v1921_v16 = vmul.f32 0.1, %v5440_v44  ;;  %v2053_v46 = vmax.f32 %v5450_v9, %v1925_v49  ;;  %v2197_v62 = vpack.c.bf16 %v2061_v50, %v2057_v53  ;;  %v2194_v40 = vpack.c.bf16 %v2054_v17, %v2050_v28 }
 0x16f   : > { %v5529_v41 = vpack.c.bf16 %v2085_v5, %v2081_v20  ;;  %v5532_v11 = vadd.f32 %v5362_v29, %v1244_v55  ;;  %v5534_v48 = vpop.f32.mrf.mxu1  ;;  %v1246_v22 = vadd.f32 %v1245_v27, %v5442_v38  ;;  %v1961_v29 = vmul.f32 0.1, %v1435_v6 }
 0x170   : > { %v5538_v3 = vpop.f32.mrf.mxu0  ;;  %2596 = vmatpush1.bf16.msra.mxu1 %v2201_v15  ;;  %v2049_v10 = vmax.f32 %v5440_v44, %v1921_v16 }
 0x171   : > { %v5542_v30 = vpop.f32.mrf.mxu1  ;;  %v1439_v20 = vadd.f32 %v5370_v34, %v1246_v22  ;;  %2597 = vmatprep.subr.bf16.mxu1 %v2198_v54  ;;  %v2089_v34 = vmax.f32 %v1435_v6, %v1961_v29 }
 0x172   : > { %v1251_v33 = vpop.f32.mrf.mxu0  ;;  %v2193_v59 = vpack.c.bf16 %v2053_v46, %v2049_v10  ;;  %v7206_v46 = vld [vmem:[#allocation24_spill] sm:$0xff] }
 0x173   : > { %v1252_v47 = vadd.f32 %v1251_v33, %v5416_v26  ;;  %v5548_v25 = vpop.f32.mrf.mxu1  ;;  %v1965_v36 = vmul.f32 0.1, %v1439_v20 }
 0x174   : > { %v5550_v21 = vpop.f32.mrf.mxu0  ;;  %2598 = vmatpush1.bf16.msra.mxu1 %v2197_v62 }
 0x175   : > { %v1445_v35 = vadd.f32 %v5379_v31, %v1252_v47  ;;  %v5554_v58 = vpop.f32.mrf.mxu1  ;;  %v2093_v37 = vmax.f32 %v1439_v20, %v1965_v36  ;;  %2599 = vmatprep.subr.bf16.mxu1 %v2194_v40 }
 0x176   : > { %v1255_v9 = vpop.f32.mrf.mxu0 }
 0x177   : > { %v1256_v24 = vadd.f32 %v1255_v9, %v5420_v1  ;;  %v1537_v2 = vpop.f32.mrf.mxu1  ;;  %v5557_v13 = vpack.c.bf16 %v2093_v37, %v2089_v34  ;;  %v1969_v55 = vmul.f32 0.1, %v1445_v35  ;;  %v1248_v37 = vadd.f32 %v5538_v3, %v5442_v38 }
 0x178   : > { %v1257_v5 = vpop.f32.mrf.mxu0  ;;  %2600 = vmatpush1.bf16.msra.mxu1 %v2193_v59  ;;  %v5608_v3 = vadd.f32 %v5550_v21, %v5416_v26  ;;  %v7222_v26 = vld [vmem:[#allocation39_spill] sm:$0xff] }
 0x179   : > { %v1449_v23 = vadd.f32 %v5394_v42, %v1256_v24  ;;  %v1539_v44 = vpop.f32.mrf.mxu1  ;;  %2601 = vmatprep.subr.bf16.mxu1 %v5392_v8  ;;  %v2097_v27 = vmax.f32 %v1445_v35, %v1969_v55  ;;  %v1258_v59 = vadd.f32 %v1257_v5, %v5420_v1  ;;  %v7213_v55 = vld [vmem:[#allocation38_spill] sm:$0xff]  ;;  %v7217_v5 = vld [vmem:[#allocation20_spill] sm:$0xff] }
 0x17a   : > { %v1261_v31 = vpop.f32.mrf.mxu0  ;;  %v1538_v1 = vadd.f32 %v1537_v2, %v7217_v5 }
 0x17b   : > { %v1973_v49 = vmul.f32 0.1, %v1449_v23  ;;  %v1541_v6 = vpop.f32.mrf.mxu1 }
 0x17c   : > { %v1263_v32 = vpop.f32.mrf.mxu0  ;;  %2602 = vmatpush1.bf16.msra.mxu1 %v5381_v56 }
 0x17d   : > { %v2101_v50 = vmax.f32 %v1449_v23, %v1973_v49  ;;  %v5561_v15 = vpop.f32.mrf.mxu1  ;;  %2603 = vmatprep.subr.bf16.mxu1 %v5364_v4  ;;  %v1264_v23 = vadd.f32 %v1263_v32, %v7213_v55 }
 0x17e   : > { %v1265_v17 = vpop.f32.mrf.mxu0 }
 0x17f   : > { %v5565_v22 = vpack.c.bf16 %v2101_v50, %v2097_v27  ;;  %v1547_v42 = vpop.f32.mrf.mxu1  ;;  %v5600_v27 = vadd.f32 %v5509_v7, %v5488_v60  ;;  %v7215_v50 = vld [vmem:[#allocation40_spill] sm:$0xff]  ;;  %v1540_v7 = vadd.f32 %v1539_v44, %v7217_v5  ;;  %v5626_v2 = vadd.f32 %v7222_v26, %v1264_v23  ;;  %v7229_v26 = vld [vmem:[#allocation42_spill] sm:$0xff] }
 0x180   : > { %v1267_v54 = vpop.f32.mrf.mxu0  ;;  %2604 = vmatpush1.bf16.msra.mxu1 %v5353_v39 }
 0x181   : > { %v1549_v16 = vpop.f32.mrf.mxu1  ;;  %2605 = vmatprep.subr.bf16.mxu1 %v5340_v57  ;;  %v1268_v32 = vadd.f32 %v1267_v54, %v7215_v50  ;;  %v7223_v54 = vld [vmem:[#allocation34_spill] sm:$0xff] }
 0x182   : > { %v1271_v8 = vpop.f32.mrf.mxu0 }
 0x183   : > { %v1551_v53 = vpop.f32.mrf.mxu1  ;;  %v5643_v23 = vadd.f32 %v7229_v26, %v1268_v32  ;;  %v7232_v26 = vld [vmem:[#allocation19_spill] sm:$0xff] }
 0x184   : > { %v1273_v28 = vpop.f32.mrf.mxu0  ;;  %2606 = vmatpush1.bf16.msra.mxu1 %v5330_v61 }
 0x185   : > { %v5569_v29 = vpop.f32.mrf.mxu1  ;;  %2607 = vmatprep.subr.bf16.mxu1 %v5310_v43 }
 0x186   : > { %7204 = vst [vmem:[#allocation22_spill] sm:$0xff] %v5569_v29  ;;  %v1275_v4 = vpop.f32.mrf.mxu0  ;;  %v5659_v29 = vadd.f32 %v1551_v53, %v7232_v26 }
 0x187   : > { %v5573_v56 = vpop.f32.mrf.mxu1 }
 0x188   : > { %v1277_v20 = vpop.f32.mrf.mxu0  ;;  %2608 = vmatpush1.bf16.msra.mxu1 %v7206_v46  ;;  %v1266_v46 = vadd.f32 %v1265_v17, %v7215_v50  ;;  %v5619_v17 = vadd.f32 %v1261_v31, %v7213_v55  ;;  %v1274_v50 = vadd.f32 %v1273_v28, %v7223_v54  ;;  %v7227_v31 = vld [vmem:[#allocation18_spill] sm:$0xff] }
 0x189   : > { %v5575_v33 = vpop.f32.mrf.mxu1  ;;  %v5636_v5 = vadd.f32 %v1547_v42, %v7227_v31  ;;  %v5651_v42 = vadd.f32 %v1271_v8, %v7223_v54 }
 0x18a   : > { %7205 = vst [vmem:[#allocation53_spill] sm:$0xff] %v5575_v33  ;;  %v5578_v39 = vpop.f32.mrf.mxu0 }
 0x18b   : > { %v5580_v57 = vpop.f32.mrf.mxu1 }
 0x18c   : > { %7207 = vst [vmem:[#allocation24_spill] sm:$0xff] %v5580_v57  ;;  %v1283_v62 = vpop.f32.mrf.mxu0 }
 0x18d   : > { %v5582_v47 = vpop.f32.mrf.mxu1 }
 0x18e   : > { %7208 = vst [vmem:[#allocation54_spill] sm:$0xff] %v5582_v47  ;;  %v1285_v36 = vpop.f32.mrf.mxu0 }
 0x18f   : > { %v5584_v40 = vpop.f32.mrf.mxu1 }
 0x190   : > { %7209 = vst [vmem:[#allocation55_spill] sm:$0xff] %v5584_v40  ;;  %v1287_v61 = vpop.f32.mrf.mxu0  ;;  %v7221_v40 = vld [vmem:[#allocation23_spill] sm:$0xff] }
 0x191   : > { %v5586_v43 = vpop.f32.mrf.mxu1  ;;  %v5623_v21 = vadd.f32 %v1541_v6, %v7221_v40  ;;  %v7228_v6 = vld [vmem:[#allocation25_spill] sm:$0xff] }
 0x192   : > { %7210 = vst [vmem:[#allocation56_spill] sm:$0xff] %v5586_v43  ;;  %v1291_v10 = vpop.f32.mrf.mxu0 }
 0x193   : > { %v5588_v35 = vpop.f32.mrf.mxu1 }
 0x194   : > { %7211 = vst [vmem:[#allocation57_spill] sm:$0xff] %v5588_v35  ;;  %v1293_v34 = vpop.f32.mrf.mxu0  ;;  %v7216_v35 = vld [vmem:[#allocation31_spill] sm:$0xff] }
 0x195   : > { %v5592_v9 = vpop.f32.mrf.mxu1  ;;  %v5604_v43 = vadd.f32 %v7216_v35, %v1248_v37  ;;  %v7220_v35 = vld [vmem:[#allocation29_spill] sm:$0xff] }
 0x196   : > { %7212 = vst [vmem:[#allocation58_spill] sm:$0xff] %v5592_v9  ;;  %v1295_v24 = vpop.f32.mrf.mxu0 }
 0x197   : > { %v5596_v49 = vpop.f32.mrf.mxu1 }
 0x198   : > { %7214 = vst [vmem:[#allocation59_spill] sm:$0xff] %v5596_v49  ;;  %v1297_v18 = vpop.f32.mrf.mxu0  ;;  %v7219_v49 = vld [vmem:[#allocation36_spill] sm:$0xff] }
 0x199   : > { %v5612_v38 = vpop.f32.mrf.mxu1  ;;  %v5615_v9 = vadd.f32 %v7219_v49, %v1258_v59  ;;  %v1298_v37 = vadd.f32 %v1297_v18, %v7220_v35  ;;  %v7226_v49 = vld [vmem:[#allocation41_spill] sm:$0xff]  ;;  %v5639_v18 = vadd.f32 %v1549_v16, %v7227_v31  ;;  %v1296_v31 = vadd.f32 %v1295_v24, %v7220_v35 }
 0x19a   : > { %7218 = vst [vmem:[#allocation31_spill] sm:$0xff] %v5612_v38  ;;  %v1301_v60 = vpop.f32.mrf.mxu0  ;;  %v7224_v38 = vld [vmem:[#allocation35_spill] sm:$0xff]  ;;  %v5633_v44 = vadd.f32 %v7226_v49, %v1266_v46  ;;  %v7231_v49 = vld [vmem:[#allocation32_spill] sm:$0xff] }
 0x19b   : > { %v1276_v47 = vadd.f32 %v1275_v4, %v7224_v38  ;;  %v5630_v59 = vpop.f32.mrf.mxu1  ;;  %v1302_v55 = vadd.f32 %v1301_v60, %v7228_v6  ;;  %v1278_v28 = vadd.f32 %v1277_v20, %v7224_v38  ;;  %v7230_v4 = vld [vmem:[#allocation28_spill] sm:$0xff]  ;;  %v1288_v16 = vadd.f32 %v1287_v61, %v7231_v49  ;;  %v7233_v20 = vld [vmem:[#allocation46_spill] sm:$0xff] }
 0x19c   : > { %7225 = vst [vmem:[#allocation20_spill] sm:$0xff] %v5630_v59  ;;  %v1303_v57 = vpop.f32.mrf.mxu0  ;;  %v1294_v33 = vadd.f32 %v1293_v34, %v7230_v4  ;;  %v5656_v60 = vadd.f32 %v5524_v14, %v1298_v37  ;;  %v5662_v34 = vadd.f32 %v7233_v20, %v1274_v50  ;;  %v7234_v61 = vld [vmem:[#allocation30_spill] sm:$0xff]  ;;  %v1292_v24 = vadd.f32 %v1291_v10, %v7230_v4  ;;  %v7236_v20 = vld [vmem:[#allocation51_spill] sm:$0xff] }
 0x19d   : > { %v1304_v59 = vadd.f32 %v1303_v57, %v7228_v6  ;;  %v5648_v46 = vpop.f32.mrf.mxu1  ;;  %v5665_v57 = vadd.f32 %v5429_v51, %v1276_v47  ;;  %v1284_v54 = vadd.f32 %v1283_v62, %v7234_v61  ;;  %v1495_v14 = vadd.f32 %v5534_v48, %v1302_v55  ;;  %v7235_v37 = vld [vmem:[#allocation26_spill] sm:$0xff] }
 0x19e   : > { %v1305_v32 = vpop.f32.mrf.mxu0  ;;  %v5675_v35 = vadd.f32 %v5437_v63, %v1278_v28  ;;  %v1286_v50 = vadd.f32 %v1285_v36, %v7231_v49  ;;  %v1487_v51 = vadd.f32 %v5513_v52, %v1294_v33  ;;  %v5683_v62 = vadd.f32 %v5494_v0, %v1288_v16 }
 0x19f   : > { %v1497_v8 = vadd.f32 %v5542_v30, %v1304_v59  ;;  %v5668_v38 = vpop.f32.mrf.mxu1  ;;  %v1306_v6 = vadd.f32 %v1305_v32, %v7235_v37  ;;  %v5686_v10 = vadd.f32 %v5518_v19, %v1296_v31  ;;  %v2006_v48 = vmul.f32 0.1, %v5656_v60 }
 0x1a0   : > { %v1307_v53 = vpop.f32.mrf.mxu0  ;;  %v1282_v36 = vadd.f32 %v5578_v39, %v7234_v61  ;;  %v5696_v0 = vadd.f32 %v5468_v12, %v1284_v54  ;;  %v1485_v19 = vadd.f32 %v5505_v45, %v1292_v24  ;;  %v2009_v16 = vmul.f32 0.1, %v1495_v14 }
 0x1a1   : > { %v1308_v30 = vadd.f32 %v1307_v53, %v7235_v37  ;;  %v5680_v47 = vpop.f32.mrf.mxu1  ;;  %v1499_v55 = vadd.f32 %v5548_v25, %v1306_v6  ;;  %v2010_v59 = vmul.f32 0.1, %v1497_v8  ;;  %v5700_v25 = vadd.f32 %v7236_v20, %v1286_v50 }
 0x1a2   : > { %v1730_v63 = vpop.f32.mrf.mxu0  ;;  %v2002_v6 = vmul.f32 0.1, %v1487_v51  ;;  %v2134_v12 = vmax.f32 %v5656_v60, %v2006_v48  ;;  %v5713_v20 = vmul.f32 0.1, %v5675_v35  ;;  %v2001_v37 = vmul.f32 0.1, %v1485_v19 }
 0x1a3   : > { %v1501_v52 = vadd.f32 %v5554_v58, %v1308_v30  ;;  %v5693_v33 = vpop.f32.mrf.mxu1  ;;  %v1731_v28 = vadd.f32 %v1730_v63, %v1538_v1  ;;  %v2013_v31 = vmul.f32 0.1, %v1499_v55  ;;  %v1998_v58 = vmul.f32 0.1, %v5683_v62 }
 0x1a4   : > { %v1732_v32 = vpop.f32.mrf.mxu0  ;;  %v2005_v1 = vmul.f32 0.1, %v5686_v10  ;;  %v2138_v24 = vmax.f32 %v1497_v8, %v2010_v59  ;;  %v2137_v4 = vmax.f32 %v1495_v14, %v2009_v16  ;;  %v1994_v60 = vmul.f32 0.1, %v5696_v0 }
 0x1a5   : > { %v2014_v53 = vmul.f32 0.1, %v1501_v52  ;;  %v5702_v39 = vpop.f32.mrf.mxu1  ;;  %v5704_v61 = vadd.f32 %v1732_v32, %v1540_v7  ;;  %v2141_v54 = vmax.f32 %v1499_v55, %v2013_v31  ;;  %v1891_v63 = vmul.f32 0.1, %v1731_v28  ;;  %v7238_v7 = vld [vmem:[#allocation49_spill] sm:$0xff] }
 0x1a6   : > { %v1734_v45 = vpop.f32.mrf.mxu0  ;;  %v1475_v32 = vadd.f32 %v7238_v7, %v1282_v36  ;;  %v2130_v48 = vmax.f32 %v1487_v51, %v2002_v6  ;;  %v2133_v31 = vmax.f32 %v5686_v10, %v2005_v1  ;;  %v1982_v6 = vmul.f32 0.1, %v5643_v23 }
 0x1a7   : > { %7237 = vst [vmem:[#allocation36_spill] sm:$0xff] %v5704_v61  ;;  %v2142_v30 = vmax.f32 %v1501_v52, %v2014_v53  ;;  %v5709_v49 = vpop.f32.mrf.mxu1  ;;  %v1735_v50 = vadd.f32 %v1734_v45, %v5623_v21  ;;  %v1997_v52 = vmul.f32 0.1, %v5700_v25  ;;  %v2126_v21 = vmax.f32 %v5683_v62, %v1998_v58 }
 0x1a8   : > { %v5716_v61 = vpop.f32.mrf.mxu0  ;;  %v2237_v53 = vpack.c.bf16 %v2141_v54, %v2137_v4  ;;  %v2019_v36 = vmax.f32 %v1731_v28, %v1891_v63  ;;  %v2234_v51 = vpack.c.bf16 %v2134_v12, %v2130_v48  ;;  %v1986_v4 = vmul.f32 0.1, %v5662_v34  ;;  %v7244_v12 = vld [vmem:[#allocation16_spill] sm:$0xff]  ;;  %v7245_v48 = vld [vmem:[#allocation33_spill] sm:$0xff] }
 0x1a9   : > { %7239 = vst [vmem:[#allocation23_spill] sm:$0xff] %v5716_v61  ;;  %v1895_v55 = vmul.f32 0.1, %v1735_v50  ;;  %v5719_v8 = vpop.f32.mrf.mxu1  ;;  %v2238_v59 = vpack.c.bf16 %v2142_v30, %v2138_v24  ;;  %v7241_v24 = vld [vmem:[#allocation44_spill] sm:$0xff]  ;;  %v1993_v61 = vmul.f32 0.1, %v1475_v32  ;;  %v2122_v10 = vmax.f32 %v5696_v0, %v1994_v60 }
 0x1aa   : > { %7240 = vst [vmem:[#allocation39_spill] sm:$0xff] %v5719_v8  ;;  %v1740_v45 = vpop.f32.mrf.mxu0  ;;  %v1465_v30 = vadd.f32 %v7241_v24, %v5651_v42  ;;  %v2129_v8 = vmax.f32 %v1485_v19, %v2001_v37  ;;  %v1989_v1 = vmul.f32 0.1, %v5665_v57  ;;  %v1558_v42 = vadd.f32 %v5573_v56, %v7244_v12 }
 0x1ab   : > { %v2023_v7 = vmax.f32 %v1735_v50, %v1895_v55  ;;  %v5724_v14 = vpop.f32.mrf.mxu1  ;;  %v1741_v16 = vadd.f32 %v1740_v45, %v5636_v5  ;;  %2609 = vmatprep.subr.bf16.mxu1 %v2238_v59  ;;  %v2125_v37 = vmax.f32 %v5700_v25, %v1997_v52  ;;  %v2118_v0 = vmax.f32 %v5675_v35, %v5713_v20  ;;  %v7246_v59 = vld [vmem:[#allocation37_spill] sm:$0xff] }
 0x1ac   : > { %v1742_v62 = vpop.f32.mrf.mxu0  ;;  %2610 = vmatpush2.bf16.msra.mxu1 %v2237_v53  ;;  %v2233_v19 = vpack.c.bf16 %v2133_v31, %v2129_v8  ;;  %v1447_v55 = vadd.f32 %v7245_v48, %v5608_v3  ;;  %v1455_v53 = vadd.f32 %v7246_v59, %v5619_v17  ;;  %v1985_v56 = vmul.f32 0.1, %v1465_v30 }
 0x1ad   : > { %v5732_v28 = vpack.c.bf16 %v2023_v7, %v2019_v36  ;;  %v5734_v58 = vpop.f32.mrf.mxu1  ;;  %v5737_v5 = vadd.f32 %v1742_v62, %v5639_v18  ;;  %2611 = vmatprep.subr.bf16.mxu1 %v2234_v51  ;;  %v1899_v63 = vmul.f32 0.1, %v1741_v16  ;;  %v2230_v18 = vpack.c.bf16 %v2126_v21, %v2122_v10 }
 0x1ae   : > { %v1744_v54 = vpop.f32.mrf.mxu0  ;;  %v2121_v45 = vmax.f32 %v1475_v32, %v1993_v61  ;;  %v1974_v8 = vmul.f32 0.1, %v5615_v9  ;;  %v1978_v35 = vmul.f32 0.1, %v5626_v2  ;;  %v2114_v20 = vmax.f32 %v5662_v34, %v1986_v4 }
 0x1af   : > { %7242 = vst [vmem:[#allocation41_spill] sm:$0xff] %v5732_v28  ;;  %7243 = vst [vmem:[#allocation18_spill] sm:$0xff] %v5737_v5  ;;  %v5745_v50 = vpop.f32.mrf.mxu1  ;;  %v1745_v60 = vadd.f32 %v1744_v54, %v5659_v29  ;;  %v1981_v3 = vmul.f32 0.1, %v5633_v44  ;;  %v2110_v21 = vmax.f32 %v5643_v23, %v1982_v6  ;;  %v2117_v17 = vmax.f32 %v5665_v57, %v1989_v1  ;;  %v7286_v5 = vld [vmem:[#allocation6_spill] sm:$0xff] }
 0x1b0   : > { %v5752_v25 = vpop.f32.mrf.mxu0  ;;  %2612 = vmatpush2.bf16.msra.mxu1 %v2233_v19  ;;  %v2229_v61 = vpack.c.bf16 %v2125_v37, %v2121_v45  ;;  %v2027_v31 = vmax.f32 %v1741_v16, %v1899_v63  ;;  %v2226_v24 = vpack.c.bf16 %v2118_v0, %v2114_v20  ;;  %v1977_v34 = vmul.f32 0.1, %v1455_v53 }
 0x1b1   : > { %v1903_v52 = vmul.f32 0.1, %v1745_v60  ;;  %v5757_v29 = vpop.f32.mrf.mxu1  ;;  %2613 = vmatprep.subr.bf16.mxu1 %v2230_v18  ;;  %v2113_v62 = vmax.f32 %v1465_v30, %v1985_v56  ;;  %v1970_v10 = vmul.f32 0.1, %v1447_v55  ;;  %v2106_v19 = vmax.f32 %v5626_v2, %v1978_v35 }
 0x1b2   : > { %v1750_v32 = vpop.f32.mrf.mxu0  ;;  %v2109_v16 = vmax.f32 %v5633_v44, %v1981_v3  ;;  %v1966_v30 = vmul.f32 0.1, %v5604_v43  ;;  %v2102_v54 = vmax.f32 %v5615_v9, %v1974_v8  ;;  %v2105_v63 = vmax.f32 %v1455_v53, %v1977_v34  ;;  %v7249_v53 = vld [vmem:[#allocation21_spill] sm:$0xff] }
 0x1b3   : > { %v2031_v36 = vmax.f32 %v1745_v60, %v1903_v52  ;;  %v5762_v7 = vpop.f32.mrf.mxu1  ;;  %v5764_v51 = vadd.f32 %v1750_v32, %v1558_v42  ;;  %v2225_v6 = vpack.c.bf16 %v2117_v17, %v2113_v62  ;;  %v7248_v42 = vld [vmem:[#allocation27_spill] sm:$0xff]  ;;  %v2222_v2 = vpack.c.bf16 %v2110_v21, %v2106_v19  ;;  %v5824_v19 = vld [vmem:[%s6941_s3] ss:$8 sps:$4 sm:$0xff]  }
 0x1b4   : > { %v5766_v4 = vpop.f32.mrf.mxu0  ;;  %2614 = vmatpush2.bf16.msra.mxu1 %v2229_v61  ;;  %v1431_v37 = vadd.f32 %v7248_v42, %v5600_v27  ;;  %v1962_v18 = vmul.f32 0.1, %v5532_v11  ;;  %v2098_v44 = vmax.f32 %v1447_v55, %v1970_v10  ;;  %v2221_v59 = vpack.c.bf16 %v2109_v16, %v2105_v63  ;;  %7250 = vst [vmem:[#allocation19_spill] sm:$0xff] %v5824_v19 }
 0x1b5   : > { %v5769_v23 = vpack.c.bf16 %v2031_v36, %v2027_v31  ;;  %v5771_v57 = vpop.f32.mrf.mxu1  ;;  %2615 = vmatprep.subr.bf16.mxu1 %v2226_v24  ;;  %v2094_v45 = vmax.f32 %v5604_v43, %v1966_v30  ;;  %v1954_v20 = vmul.f32 0.1, %v7249_v53 }
 0x1b6   : > { %v5774_v1 = vpop.f32.mrf.mxu0  ;;  %v1958_v27 = vmul.f32 0.1, %v1431_v37  ;;  %v2218_v8 = vpack.c.bf16 %v2102_v54, %v2098_v44  ;;  %v2090_v52 = vmax.f32 %v5532_v11, %v1962_v18  ;;  %v5860_v44 = vld [vmem:[%s6941_s3 + $0x24] ss:$8 sps:$4 sm:$0xff]  }
 0x1b7   : > { %7247 = vst [vmem:[#allocation42_spill] sm:$0xff] %v5769_v23  ;;  %v5780_v0 = vpop.f32.mrf.mxu1  ;;  %v2082_v32 = vmax.f32 %v7249_v53, %v1954_v20  ;;  %7257 = vst [vmem:[#allocation37_spill] sm:$0xff] %v5860_v44  ;;  %v7259_v53 = vld [vmem:[#allocation53_spill] sm:$0xff] }
 0x1b8   : > { %v5782_v60 = vpop.f32.mrf.mxu0  ;;  %2616 = vmatpush2.bf16.msra.mxu1 %v2225_v6  ;;  %v2086_v21 = vmax.f32 %v1431_v37, %v1958_v27  ;;  %v2214_v61 = vpack.c.bf16 %v2094_v45, %v2090_v52  ;;  %v1544_v27 = vadd.f32 %v5561_v15, %v7221_v40  ;;  %v7258_v45 = vld [vmem:[#allocation22_spill] sm:$0xff]  ;;  %v1560_v20 = vadd.f32 %v7259_v53, %v7244_v12  ;;  %v7260_v52 = vld [vmem:[#allocation17_spill] sm:$0xff]  ;;  %v7266_v40 = vld [vmem:[#allocation15_spill] sm:$0xff] }
 0x1b9   : > { %v5785_v48 = vpop.f32.mrf.mxu1  ;;  %2617 = vmatprep.subr.bf16.mxu1 %v2222_v2  ;;  %v5851_v2 = vld [vmem:[%s6941_s3 + $0x10] ss:$8 sps:$4 sm:$0xff]  }
 0x1ba   : > { %v5787_v56 = vpop.f32.mrf.mxu0  ;;  %v2210_v24 = vpack.c.bf16 %v2086_v21, %v2082_v32  ;;  %7255 = vst [vmem:[#allocation16_spill] sm:$0xff] %v5851_v2  ;;  %v7261_v21 = vld [vmem:[#allocation24_spill] sm:$0xff]  ;;  %v7262_v32 = vld [vmem:[#allocation54_spill] sm:$0xff] }
 0x1bb   : > { %v5790_v9 = vpop.f32.mrf.mxu1  ;;  %v7269_v53 = vld [vmem:[#allocation58_spill] sm:$0xff] }
 0x1bc   : > { %v5792_v35 = vpop.f32.mrf.mxu0  ;;  %2618 = vmatpush2.bf16.msra.mxu1 %v2221_v59 }
 0x1bd   : > { %v5796_v55 = vpop.f32.mrf.mxu1  ;;  %2619 = vmatprep.subr.bf16.mxu1 %v2218_v8  ;;  %v1554_v8 = vadd.f32 %v7258_v45, %v7232_v26 }
 0x1be   : > { %v5798_v3 = vpop.f32.mrf.mxu0 }
 0x1bf   : > { %v5800_v17 = vpop.f32.mrf.mxu1  ;;  %v5891_v28 = vadd.f32 %v5752_v25, %v1554_v8  ;;  %v7278_v8 = vld [vmem:[#allocation7_spill] sm:$0xff] }
 0x1c0   : > { %v5802_v43 = vpop.f32.mrf.mxu0  ;;  %2620 = vmatpush2.bf16.msra.mxu1 %v5565_v22 }
 0x1c1   : > { %v5806_v31 = vpop.f32.mrf.mxu1  ;;  %2621 = vmatprep.subr.bf16.mxu1 %v2214_v61  ;;  %v1562_v61 = vadd.f32 %v7261_v21, %v7260_v52  ;;  %v1574_v21 = vadd.f32 %v7269_v53, %v7266_v40  ;;  %7273 = vst [vmem:[#allocation21_spill] sm:$0xff] %v5891_v28  ;;  %v7277_v53 = vld [vmem:[#allocation11_spill] sm:$0xff] }
 0x1c2   : > { %v5808_v36 = vpop.f32.mrf.mxu0  ;;  %v1594_v25 = vadd.f32 %v5702_v39, %v7277_v53 }
 0x1c3   : > { %v5810_v11 = vpop.f32.mrf.mxu1 }
 0x1c4   : > { %v5812_v34 = vpop.f32.mrf.mxu0  ;;  %2622 = vmatpush2.bf16.msra.mxu1 %v5557_v13  ;;  %v5832_v13 = vld [vmem:[%s6941_s3 + $0x14] ss:$8 sps:$4 sm:$0xff]  }
 0x1c5   : > { %v5815_v62 = vpop.f32.mrf.mxu1  ;;  %2623 = vmatprep.subr.bf16.mxu1 %v2210_v24  ;;  %7251 = vst [vmem:[#allocation46_spill] sm:$0xff] %v5832_v13  ;;  %v1564_v24 = vadd.f32 %v7262_v32, %v7260_v52  ;;  %v7272_v32 = vld [vmem:[#allocation31_spill] sm:$0xff] }
 0x1c6   : > { %v5817_v10 = vpop.f32.mrf.mxu0 }
 0x1c7   : > { %v5819_v22 = vpop.f32.mrf.mxu1 }
 0x1c8   : > { %v5826_v16 = vpop.f32.mrf.mxu0  ;;  %2624 = vmatpush2.bf16.msra.mxu1 %v5529_v41 }
 0x1c9   : > { %v5834_v6 = vpop.f32.mrf.mxu1 }
 0x1ca   : > { %7252 = vst [vmem:[#allocation51_spill] sm:$0xff] %v5834_v6  ;;  %v5836_v42 = vpop.f32.mrf.mxu0  ;;  %v7271_v6 = vld [vmem:[#allocation59_spill] sm:$0xff] }
 0x1cb   : > { %v5838_v37 = vpop.f32.mrf.mxu1  ;;  %2626 = vmatmul.mubr.bf16.vlgmr.msra.gmra.mxu1 %v5824_v19  ;;  %v7264_v19 = vld [vmem:[#allocation55_spill] sm:$0xff] }
 0x1cc   : > { %7253 = vst [vmem:[#allocation49_spill] sm:$0xff] %v5838_v37  ;;  %v5841_v30 = vpop.f32.mrf.mxu0  ;;  %2635 = vmatprep.mubr.bf16.mxu1 %v5832_v13  ;;  %v7263_v13 = vld [vmem:[#allocation14_spill] sm:$0xff] }
 0x1cd   : > { %v5844_v54 = vpop.f32.mrf.mxu1  ;;  %v1568_v37 = vadd.f32 %v7264_v19, %v7263_v13 }
 0x1ce   : > { %7254 = vst [vmem:[#allocation44_spill] sm:$0xff] %v5844_v54  ;;  %v5846_v41 = vpop.f32.mrf.mxu0  ;;  %v7267_v54 = vld [vmem:[#allocation57_spill] sm:$0xff] }
 0x1cf   : > { %v5853_v63 = vpop.f32.mrf.mxu1  ;;  %v1572_v26 = vadd.f32 %v7267_v54, %v7266_v40 }
 0x1d0   : > { %7256 = vst [vmem:[#allocation33_spill] sm:$0xff] %v5853_v63  ;;  %v5855_v18 = vpop.f32.mrf.mxu0  ;;  %v7265_v63 = vld [vmem:[#allocation56_spill] sm:$0xff] }
 0x1d1   : > { %v1570_v15 = vadd.f32 %v7265_v63, %v7263_v13  ;;  %v5881_v45 = vpop.f32.mrf.mxu1  ;;  %v7274_v13 = vld [vmem:[#allocation13_spill] sm:$0xff]  ;;  %v7275_v63 = vld [vmem:[#allocation20_spill] sm:$0xff] }
 0x1d2   : > { %v5862_v59 = vpop.f32.mrf.mxu0  ;;  %7268 = vst [vmem:[#allocation27_spill] sm:$0xff] %v5881_v45  ;;  %v5895_v54 = vadd.f32 %v7275_v63, %v7274_v13  ;;  %v1584_v45 = vadd.f32 %v5648_v46, %v7274_v13  ;;  %v5914_v46 = vadd.f32 %v5782_v60, %v1564_v24  ;;  %v7281_v13 = vld [vmem:[#allocation23_spill] sm:$0xff]  ;;  %v7283_v63 = vld [vmem:[#allocation9_spill] sm:$0xff] }
 0x1d3   : > { %2636 = vmatmul.mubr.bf16.gmra.mxu1 %v5851_v2  ;;  %v7270_v2 = vld [vmem:[#allocation12_spill] sm:$0xff]  ;;  %v1602_v39 = vadd.f32 %v5724_v14, %v7283_v63  ;;  %v5945_v14 = vadd.f32 %v5792_v35, %v1570_v15  ;;  %v7290_v15 = vld [vmem:[#allocation47_spill] sm:$0xff] }
 0x1d4   : > { %v1792_v12 = vpop.f32.mrf.mxu0  ;;  %2645 = vmatprep.mubr.bf16.mxu1 %v5860_v44  ;;  %v1578_v52 = vadd.f32 %v7271_v6, %v7270_v2  ;;  %v1580_v19 = vadd.f32 %v7272_v32, %v7270_v2  ;;  %v7276_v44 = vld [vmem:[#allocation10_spill] sm:$0xff]  ;;  %v5907_v2 = vadd.f32 %v5693_v33, %v7277_v53  ;;  %v1598_v32 = vadd.f32 %v5709_v49, %v7278_v8  ;;  %v5930_v53 = vpop.f32.mrf.mxu1  ;;  %v5935_v24 = vld [vmem:[%s6941_s3 + $0x34] ss:$8 sps:$4 sm:$0xff]  }
 0x1d5   : > { %v5901_v23 = vadd.f32 %v5668_v38, %v7276_v44  ;;  %v1590_v6 = vadd.f32 %v5680_v47, %v7276_v44  ;;  %v5919_v38 = vld [vmem:[%s6941_s3 + $0x20] ss:$8 sps:$4 sm:$0xff]   ;;  %v7280_v47 = vld [vmem:[#allocation39_spill] sm:$0xff]  ;;  %v5924_v33 = vadd.f32 %v7281_v13, %v1544_v27  ;;  %v1604_v49 = vadd.f32 %v5734_v58, %v7283_v63  ;;  %7284 = vst [vmem:[#allocation17_spill] sm:$0xff] %v5930_v53 }
 0x1d6   : > { %v1794_v40 = vpop.f32.mrf.mxu0  ;;  %7279 = vst [vmem:[#allocation22_spill] sm:$0xff] %v5919_v38  ;;  %v1600_v44 = vadd.f32 %v7280_v47, %v7278_v8  ;;  %7285 = vst [vmem:[#allocation24_spill] sm:$0xff] %v5935_v24  ;;  %v1608_v8 = vadd.f32 %v5745_v50, %v7286_v5  ;;  %v1610_v27 = vadd.f32 %v5757_v29, %v7286_v5  ;;  %v5942_v47 = vmul.f32 0.1, %v5891_v28  ;;  %v7287_v58 = vld [vmem:[#allocation8_spill] sm:$0xff]  ;;  %v7288_v5 = vld [vmem:[#allocation50_spill] sm:$0xff] }
 0x1d7   : > { %7282 = vst [vmem:[#allocation53_spill] sm:$0xff] %v5924_v33  ;;  %v1612_v13 = vadd.f32 %v5762_v7, %v7287_v58  ;;  %v1614_v63 = vadd.f32 %v5771_v57, %v7287_v58  ;;  %v5952_v53 = vadd.f32 %v5766_v4, %v1560_v20  ;;  %v5955_v50 = vadd.f32 %v5802_v43, %v1574_v21  ;;  %v7289_v4 = vld [vmem:[#allocation52_spill] sm:$0xff]  ;;  %v5980_v20 = vpop.f32.mrf.mxu1 }
 0x1d8   : > { %v1796_v60 = vpop.f32.mrf.mxu0  ;;  %v1618_v29 = vadd.f32 %v5780_v0, %v7288_v5  ;;  %v5960_v28 = vadd.f32 %v5774_v1, %v1562_v61  ;;  %v1620_v35 = vadd.f32 %v5785_v48, %v7288_v5  ;;  %v5965_v7 = vmul.f32 0.1, %v5914_v46 }
 0x1d9   : > { %v1622_v57 = vadd.f32 %v5790_v9, %v7289_v4  ;;  %v5971_v43 = vadd.f32 %v5787_v56, %v1568_v37  ;;  %v5975_v0 = vadd.f32 %v5796_v55, %v7289_v4  ;;  %v5978_v1 = vadd.f32 %v5812_v34, %v1580_v19 }
 0x1da   : > { %v1800_v33 = vpop.f32.mrf.mxu0  ;;  %v5984_v61 = vmul.f32 0.1, %v5945_v14  ;;  %v5987_v9 = vadd.f32 %v5798_v3, %v1572_v26  ;;  %v5989_v56 = vadd.f32 %v1796_v60, %v1604_v49  ;;  %v5993_v55 = vadd.f32 %v5800_v17, %v7290_v15  ;;  %v6011_v17 = vld [vmem:[%s6941_s3 + $0x30] ss:$8 sps:$4 sm:$0xff]  }
 0x1db   : > { %2646 = vmatmul.mubr.bf16.gmra.mxu1 %v5919_v38  ;;  %v5997_v34 = vadd.f32 %v5806_v31, %v7290_v15  ;;  %v6000_v21 = vmul.f32 0.1, %v5955_v50  ;;  %v1801_v19 = vadd.f32 %v1800_v33, %v1608_v8  ;;  %v6003_v5 = vadd.f32 %v5808_v36, %v1578_v52  ;;  %7291 = vst [vmem:[#allocation54_spill] sm:$0xff] %v6011_v17  ;;  %v7292_v31 = vld [vmem:[#allocation48_spill] sm:$0xff]  ;;  %v6023_v52 = vpop.f32.mrf.mxu1 }
 0x1dc   : > { %v1802_v48 = vpop.f32.mrf.mxu0  ;;  %2655 = vmatprep.mubr.bf16.mxu1 %v5935_v24  ;;  %v6006_v3 = vadd.f32 %v5826_v16, %v1584_v45  ;;  %v1793_v26 = vadd.f32 %v1792_v12, %v1600_v44  ;;  %v6015_v60 = vadd.f32 %v5810_v11, %v7292_v31  ;;  %v6018_v33 = vmul.f32 0.1, %v5978_v1  ;;  %7293 = vst [vmem:[#allocation14_spill] sm:$0xff] %v6023_v52  ;;  %v6030_v12 = vld [vmem:[%s6941_s3 + $0x44] ss:$8 sps:$4 sm:$0xff]  }
 0x1dd   : > { %v1803_v37 = vadd.f32 %v1802_v48, %v1610_v27  ;;  %v6021_v36 = vadd.f32 %v5855_v18, %v1594_v25  ;;  %v6025_v16 = vadd.f32 %v1794_v40, %v1602_v39  ;;  %7294 = vst [vmem:[#allocation55_spill] sm:$0xff] %v6030_v12  ;;  %v1944_v44 = vmul.f32 0.1, %v5989_v56 }
 0x1de   : > { %v1804_v58 = vpop.f32.mrf.mxu0  ;;  %v6038_v18 = vadd.f32 %v5841_v30, %v1590_v6  ;;  %v1791_v40 = vadd.f32 %v5862_v59, %v1598_v32  ;;  %v1947_v25 = vmul.f32 0.1, %v1801_v19  ;;  %v6042_v4 = vmul.f32 0.1, %v6006_v3 }
 0x1df   : > { %v1805_v49 = vadd.f32 %v1804_v58, %v1612_v13  ;;  %v1948_v11 = vmul.f32 0.1, %v1803_v37  ;;  %v6035_v13 = vadd.f32 %v5817_v10, %v5895_v54  ;;  %v1940_v48 = vmul.f32 0.1, %v1793_v26  ;;  %v6051_v54 = vpop.f32.mrf.mxu1 }
 0x1e0   : > { %v1806_v45 = vpop.f32.mrf.mxu0  ;;  %v1936_v10 = vmul.f32 0.1, %v6021_v36  ;;  %v1943_v30 = vmul.f32 0.1, %v6025_v16  ;;  %7295 = vst [vmem:[#allocation56_spill] sm:$0xff] %v6051_v54  ;;  %v2072_v32 = vmax.f32 %v5989_v56, %v1944_v44  ;;  %v2075_v24 = vmax.f32 %v1801_v19, %v1947_v25 }
 0x1e1   : > { %v1951_v8 = vmul.f32 0.1, %v1805_v49  ;;  %v1807_v27 = vadd.f32 %v1806_v45, %v1614_v63  ;;  %v6047_v63 = vadd.f32 %v5846_v41, %v5907_v2  ;;  %v2076_v45 = vmax.f32 %v1803_v37, %v1948_v11  ;;  %v6065_v56 = vld [vmem:[%s6941_s3 + $0x40] ss:$8 sps:$4 sm:$0xff]  }
 0x1e2   : > { %v1810_v39 = vpop.f32.mrf.mxu0  ;;  %v6059_v41 = vadd.f32 %v5836_v42, %v5901_v23  ;;  %v1932_v2 = vmul.f32 0.1, %v6038_v18  ;;  %v2068_v54 = vmax.f32 %v1793_v26, %v1940_v48  ;;  %7296 = vst [vmem:[#allocation15_spill] sm:$0xff] %v6065_v56  ;;  %v2064_v37 = vmax.f32 %v6021_v36, %v1936_v10  ;;  %v6070_v42 = vpop.f32.mrf.mxu1 }
 0x1e3   : > { %v1952_v15 = vmul.f32 0.1, %v1807_v27  ;;  %v1811_v58 = vadd.f32 %v1810_v39, %v1618_v29  ;;  %2656 = vmatmul.mubr.bf16.gmra.mxu1 %v6011_v17  ;;  %v2079_v59 = vmax.f32 %v1805_v49, %v1951_v8  ;;  %v1939_v17 = vmul.f32 0.1, %v1791_v40 }
 0x1e4   : > { %v1812_v6 = vpop.f32.mrf.mxu0  ;;  %2665 = vmatprep.mubr.bf16.mxu1 %v6030_v12  ;;  %v2071_v23 = vmax.f32 %v6025_v16, %v1943_v30  ;;  %v2056_v36 = vmax.f32 %v6006_v3, %v6042_v4  ;;  %v1931_v16 = vmul.f32 0.1, %v6059_v41  ;;  %v6089_v4 = vpop.f32.mrf.mxu1 }
 0x1e5   : > { %v2080_v29 = vmax.f32 %v1807_v27, %v1952_v15  ;;  %v6055_v39 = vadd.f32 %v1812_v6, %v1620_v35  ;;  %v1955_v49 = vmul.f32 0.1, %v1811_v58  ;;  %v1935_v35 = vmul.f32 0.1, %v6047_v63 }
 0x1e6   : > { %v1814_v38 = vpop.f32.mrf.mxu0  ;;  %v2207_v44 = vpack.c.bf16 %v2079_v59, %v2075_v24  ;;  %v2204_v27 = vpack.c.bf16 %v2072_v32, %v2068_v54  ;;  %v2060_v24 = vmax.f32 %v6038_v18, %v1932_v2  ;;  %v2067_v25 = vmax.f32 %v1791_v40, %v1939_v17 }
 0x1e7   : > { %v1815_v8 = vadd.f32 %v1814_v38, %v1622_v57  ;;  %v2208_v52 = vpack.c.bf16 %v2080_v29, %v2076_v45  ;;  %v6075_v38 = vld [vmem:[%s6941_s3 + $0x54] ss:$8 sps:$4 sm:$0xff]   ;;  %v1956_v57 = vmul.f32 0.1, %v6055_v39  ;;  %v2083_v15 = vmax.f32 %v1811_v58, %v1955_v49  ;;  %v6110_v49 = vld [vmem:[%s6941_s3 + $0x50] ss:$8 sps:$4 sm:$0xff]  }
 0x1e8   : > { %v1816_v19 = vpop.f32.mrf.mxu0  ;;  %7297 = vst [vmem:[#allocation57_spill] sm:$0xff] %v6075_v38  ;;  %v2063_v3 = vmax.f32 %v6047_v63, %v1935_v35  ;;  %v2200_v18 = vpack.c.bf16 %v2064_v37, %v2060_v24  ;;  %v6097_v6 = vmul.f32 0.1, %v5987_v9  ;;  %v1923_v63 = vmul.f32 0.1, %v6003_v5  ;;  %7299 = vst [vmem:[#allocation12_spill] sm:$0xff] %v6110_v49  ;;  %v6119_v35 = vpop.f32.mrf.mxu1 }
 0x1e9   : > { %v1959_v26 = vmul.f32 0.1, %v1815_v8  ;;  %v1817_v11 = vadd.f32 %v1816_v19, %v5975_v0  ;;  %2786 = vmatprep.subr.bf16.mxu0 %v2208_v52  ;;  %3971 = vmatprep.subr.bf16.mxu1 %v2208_v52  ;;  %v1927_v0 = vmul.f32 0.1, %v6035_v13  ;;  %v2203_v52 = vpack.c.bf16 %v2071_v23, %v2067_v25  ;;  %v6124_v37 = vld [vmem:[%s6941_s3 + $0x64] ss:$8 sps:$4 sm:$0xff]  }
 0x1ea   : > { %v1820_v48 = vpop.f32.mrf.mxu0  ;;  %2787 = vmatpush1.bf16.msra.mxu0 %v2207_v44  ;;  %3987 = vmatpush1.bf16.msra.mxu1 %v2207_v44  ;;  %v2084_v40 = vmax.f32 %v6055_v39, %v1956_v57  ;;  %v1634_v32 = vadd.f32 %v5815_v62, %v7292_v31  ;;  %v2059_v45 = vmax.f32 %v6059_v41, %v1931_v16  ;;  %v7301_v41 = vld [vmem:[#allocation43_spill] sm:$0xff] }
 0x1eb   : > { %v2087_v10 = vmax.f32 %v1815_v8, %v1959_v26  ;;  %v1960_v30 = vmul.f32 0.1, %v1817_v11  ;;  %v6084_v59 = vadd.f32 %v1820_v48, %v5993_v55  ;;  %2666 = vmatmul.mubr.bf16.gmra.mxu1 %v6065_v56  ;;  %2788 = vmatprep.subr.bf16.mxu0 %v2204_v27  ;;  %v2052_v39 = vmax.f32 %v5978_v1, %v6018_v33 }
 0x1ec   : > { %3972 = vmatprep.subr.bf16.mxu1 %v2204_v27  ;;  %v1822_v17 = vpop.f32.mrf.mxu0  ;;  %2675 = vmatprep.mubr.bf16.mxu1 %v6075_v38  ;;  %v2048_v31 = vmax.f32 %v5955_v50, %v6000_v21  ;;  %v1638_v8 = vadd.f32 %v5819_v22, %v7301_v41  ;;  %v2055_v1 = vmax.f32 %v6035_v13, %v1927_v0  ;;  %v1908_v50 = vmul.f32 0.1, %v5952_v53 }
 0x1ed   : > { %v6093_v58 = vpack.c.bf16 %v2087_v10, %v2083_v15  ;;  %v2088_v55 = vmax.f32 %v1817_v11, %v1960_v30  ;;  %v1823_v54 = vadd.f32 %v1822_v17, %v5997_v34  ;;  %v1963_v2 = vmul.f32 0.1, %v6084_v59  ;;  %7302 = vst [vmem:[#allocation31_spill] sm:$0xff] %v6124_v37  ;;  %v6156_v17 = vld [vmem:[%s6941_s3 + $0x60] ss:$8 sps:$4 sm:$0xff]  }
 0x1ee   : > { %v1824_v29 = vpop.f32.mrf.mxu0  ;;  %2789 = vmatpush1.bf16.msra.mxu0 %v2203_v52  ;;  %3988 = vmatpush1.bf16.msra.mxu1 %v2203_v52  ;;  %v2199_v33 = vpack.c.bf16 %v2063_v3, %v2059_v45  ;;  %v2196_v57 = vpack.c.bf16 %v2056_v36, %v2052_v39  ;;  %v1915_v21 = vmul.f32 0.1, %v5971_v43  ;;  %v2044_v22 = vmax.f32 %v5945_v14, %v5984_v61 }
 0x1ef   : > { %7298 = vst [vmem:[#allocation58_spill] sm:$0xff] %v6093_v58  ;;  %v1825_v34 = vadd.f32 %v1824_v29, %v6015_v60  ;;  %2790 = vmatprep.subr.bf16.mxu0 %v2200_v18  ;;  %3973 = vmatprep.subr.bf16.mxu1 %v2200_v18  ;;  %v6112_v62 = vpack.c.bf16 %v2088_v55, %v2084_v40  ;;  %v1964_v23 = vmul.f32 0.1, %v1823_v54  ;;  %v1911_v36 = vmul.f32 0.1, %v5960_v28 }
 0x1f0   : > { %v1826_v60 = vpop.f32.mrf.mxu0  ;;  %v2051_v13 = vmax.f32 %v6003_v5, %v1923_v63  ;;  %v2091_v11 = vmax.f32 %v6084_v59, %v1963_v2  ;;  %v2040_v25 = vmax.f32 %v5914_v46, %v5965_v7  ;;  %v2047_v14 = vmax.f32 %v5987_v9, %v6097_v6  ;;  %v6140_v5 = vpop.f32.mrf.mxu1  ;;  %v7303_v9 = vld [vmem:[#allocation18_spill] sm:$0xff]  ;;  %7304 = vst [vmem:[#allocation13_spill] sm:$0xff] %v6156_v17  ;;  %v7306_v6 = vld [vmem:[#allocation53_spill] sm:$0xff] }
 0x1f1   : > { %7300 = vst [vmem:[#allocation59_spill] sm:$0xff] %v6112_v62  ;;  %v1967_v44 = vmul.f32 0.1, %v1825_v34  ;;  %v1827_v19 = vadd.f32 %v1826_v60, %v1634_v32  ;;  %v2092_v15 = vmax.f32 %v1823_v54, %v1964_v23  ;;  %v2192_v59 = vpack.c.bf16 %v2048_v31, %v2044_v22  ;;  %v7307_v32 = vld [vmem:[#allocation21_spill] sm:$0xff] }
 0x1f2   : > { %v1830_v26 = vpop.f32.mrf.mxu0  ;;  %2791 = vmatpush1.bf16.msra.mxu0 %v2199_v33  ;;  %3989 = vmatpush1.bf16.msra.mxu1 %v2199_v33  ;;  %v2195_v61 = vpack.c.bf16 %v2055_v1, %v2051_v13  ;;  %v1907_v0 = vmul.f32 0.1, %v5764_v51  ;;  %v2043_v46 = vmax.f32 %v5971_v43, %v1915_v21  ;;  %v1900_v3 = vmul.f32 0.1, %v7303_v9  ;;  %v6161_v55 = vpop.f32.mrf.mxu1  ;;  %v7311_v13 = vld [vmem:[#allocation42_spill] sm:$0xff] }
 0x1f3   : > { %v2095_v27 = vmax.f32 %v1825_v34, %v1967_v44  ;;  %v1968_v16 = vmul.f32 0.1, %v1827_v19  ;;  %v6132_v24 = vadd.f32 %v1830_v26, %v1638_v8  ;;  %2676 = vmatmul.mubr.bf16.gmra.mxu1 %v6110_v49  ;;  %2792 = vmatprep.subr.bf16.mxu0 %v2196_v57  ;;  %v2036_v52 = vmax.f32 %v5952_v53, %v1908_v50  ;;  %v6168_v53 = vld [vmem:[%s6941_s3 + $0x74] ss:$8 sps:$4 sm:$0xff]   ;;  %v6191_v44 = vld [vmem:[%s6941_s3 + $0x70] ss:$8 sps:$4 sm:$0xff]  }
 0x1f4   : > { %3974 = vmatprep.subr.bf16.mxu1 %v2196_v57  ;;  %v6142_v48 = vpop.f32.mrf.mxu0  ;;  %2685 = vmatprep.mubr.bf16.mxu1 %v6124_v37  ;;  %v2039_v40 = vmax.f32 %v5960_v28, %v1911_v36  ;;  %v2191_v43 = vpack.c.bf16 %v2047_v14, %v2043_v46  ;;  %7305 = vst [vmem:[#allocation20_spill] sm:$0xff] %v6168_v53  ;;  %v1896_v63 = vmul.f32 0.1, %v7306_v6  ;;  %v7308_v28 = vld [vmem:[#allocation36_spill] sm:$0xff]  ;;  %v6179_v1 = vpop.f32.mrf.mxu1  ;;  %7309 = vst [vmem:[#allocation10_spill] sm:$0xff] %v6191_v44  ;;  %v7329_v37 = vld [vmem:[#allocation34_spill] sm:$0xff] }
 0x1f5   : > { %v6145_v10 = vpack.c.bf16 %v2095_v27, %v2091_v11  ;;  %v2096_v30 = vmax.f32 %v1827_v19, %v1968_v16  ;;  %v2032_v45 = vmax.f32 %v7307_v32, %v5942_v47  ;;  %v2188_v29 = vpack.c.bf16 %v2040_v25, %v2036_v52  ;;  %v6200_v50 = vld [vmem:[%s6941_s3 + $0x84] ss:$8 sps:$4 sm:$0xff]   ;;  %v6217_v36 = vld [vmem:[%s6941_s3 + $0x80] ss:$8 sps:$4 sm:$0xff]   ;;  %v6233_v46 = vld [vmem:[%s6941_s3 + $0x90] ss:$8 sps:$4 sm:$0xff]  }
 0x1f6   : > { %v6149_v7 = vpop.f32.mrf.mxu0  ;;  %2793 = vmatpush1.bf16.msra.mxu0 %v2195_v61  ;;  %3990 = vmatpush1.bf16.msra.mxu1 %v2195_v61  ;;  %v2035_v39 = vmax.f32 %v5764_v51, %v1907_v0  ;;  %v1892_v34 = vmul.f32 0.1, %v7308_v28  ;;  %v2028_v31 = vmax.f32 %v7303_v9, %v1900_v3  ;;  %v2024_v51 = vmax.f32 %v7306_v6, %v1896_v63  ;;  %v6193_v19 = vpop.f32.mrf.mxu1  ;;  %v7312_v16 = vld [vmem:[#allocation41_spill] sm:$0xff]  ;;  %v6224_v61 = vld [vmem:[%s6941_s3 + $0x94] ss:$8 sps:$4 sm:$0xff]   ;;  %v7330_v49 = vld [vmem:[#allocation14_spill] sm:$0xff] }
 0x1f7   : > { %2794 = vmatprep.subr.bf16.mxu0 %v2192_v59  ;;  %3975 = vmatprep.subr.bf16.mxu1 %v2192_v59  ;;  %v6158_v18 = vpack.c.bf16 %v2096_v30, %v2092_v15  ;;  %7310 = vst [vmem:[#allocation11_spill] sm:$0xff] %v6200_v50  ;;  %7313 = vst [vmem:[#allocation7_spill] sm:$0xff] %v6217_v36  ;;  %v6238_v52 = vld [vmem:[%s6941_s3 + $0xa4] ss:$8 sps:$4 sm:$0xff]   ;;  %v6245_v32 = vld [vmem:[%s6941_s3 + $0xa0] ss:$8 sps:$4 sm:$0xff]   ;;  %v1658_v38 = vadd.f32 %v7330_v49, %v7329_v37 }
 0x1f8   : > { %v6163_v54 = vpop.f32.mrf.mxu0  ;;  %v2187_v8 = vpack.c.bf16 %v2039_v40, %v2035_v39  ;;  %v2184_v47 = vpack.c.bf16 %v2032_v45, %v2028_v31  ;;  %v2020_v23 = vmax.f32 %v7308_v28, %v1892_v34  ;;  %v1679_v26 = vpop.f32.mrf.mxu1  ;;  %7314 = vst [vmem:[#allocation39_spill] sm:$0xff] %v6224_v61  ;;  %7315 = vst [vmem:[#allocation23_spill] sm:$0xff] %v6233_v46  ;;  %v6250_v39 = vld [vmem:[%s6941_s3 + $0xb4] ss:$8 sps:$4 sm:$0xff]   ;;  %v7333_v49 = vld [vmem:[#allocation30_spill] sm:$0xff] }
 0x1f9   : > { %7316 = vst [vmem:[#allocation9_spill] sm:$0xff] %v6238_v52  ;;  %7317 = vst [vmem:[#allocation6_spill] sm:$0xff] %v6245_v32  ;;  %v7319_v34 = vld [vmem:[#allocation51_spill] sm:$0xff] }
 0x1fa   : > { %v6174_v2 = vpop.f32.mrf.mxu0  ;;  %2795 = vmatpush1.bf16.msra.mxu0 %v2191_v43  ;;  %3991 = vmatpush1.bf16.msra.mxu1 %v2191_v43  ;;  %v2180_v21 = vpack.c.bf16 %v2024_v51, %v2020_v23  ;;  %v1681_v25 = vpop.f32.mrf.mxu1  ;;  %7318 = vst [vmem:[#allocation8_spill] sm:$0xff] %v6250_v39  ;;  %v6254_v31 = vadd.f32 %v7319_v34, %v7301_v41 }
 0x1fb   : > { %2686 = vmatmul.mubr.bf16.gmra.mxu1 %v6156_v17  ;;  %2796 = vmatprep.subr.bf16.mxu0 %v2188_v29 }
 0x1fc   : > { %3976 = vmatprep.subr.bf16.mxu1 %v2188_v29  ;;  %v6181_v33 = vpop.f32.mrf.mxu0  ;;  %2695 = vmatprep.mubr.bf16.mxu1 %v6168_v53  ;;  %v1683_v30 = vpop.f32.mrf.mxu1 }
 0x1fe   : > { %v6185_v60 = vpop.f32.mrf.mxu0  ;;  %2797 = vmatpush1.bf16.msra.mxu0 %v2187_v8  ;;  %3992 = vmatpush1.bf16.msra.mxu1 %v2187_v8  ;;  %v1687_v9 = vpop.f32.mrf.mxu1  ;;  %v7320_v8 = vld [vmem:[#allocation29_spill] sm:$0xff] }
 0x1ff   : > { %2798 = vmatprep.subr.bf16.mxu0 %v2184_v47  ;;  %3977 = vmatprep.subr.bf16.mxu1 %v2184_v47  ;;  %v1684_v51 = vadd.f32 %v1683_v30, %v7320_v8  ;;  %v7321_v47 = vld [vmem:[#allocation25_spill] sm:$0xff]  ;;  %v7327_v30 = vld [vmem:[#allocation28_spill] sm:$0xff] }
 0x200   : > { %v6195_v57 = vpop.f32.mrf.mxu0  ;;  %v1689_v43 = vpop.f32.mrf.mxu1  ;;  %v1688_v41 = vadd.f32 %v1687_v9, %v7321_v47 }
 0x201   : > { %v1690_v23 = vadd.f32 %v1689_v43, %v7321_v47  ;;  %v1680_v43 = vadd.f32 %v1679_v26, %v7327_v30  ;;  %v7332_v47 = vld [vmem:[#allocation56_spill] sm:$0xff] }
 0x202   : > { %v6202_v22 = vpop.f32.mrf.mxu0  ;;  %2799 = vmatpush1.bf16.msra.mxu0 %v7311_v13  ;;  %3993 = vmatpush1.bf16.msra.mxu1 %v7311_v13  ;;  %v1691_v45 = vpop.f32.mrf.mxu1  ;;  %v7323_v13 = vld [vmem:[#allocation44_spill] sm:$0xff]  ;;  %v1660_v58 = vadd.f32 %v7332_v47, %v7329_v37  ;;  %v6295_v37 = vld [vmem:[%s6941_s3 + $0xc4] ss:$8 sps:$4 sm:$0xff]  }
 0x203   : > { %2696 = vmatmul.mubr.bf16.gmra.mxu1 %v6191_v44  ;;  %2800 = vmatprep.subr.bf16.mxu0 %v2180_v21 }
 0x204   : > { %3978 = vmatprep.subr.bf16.mxu1 %v2180_v21  ;;  %v6207_v11 = vpop.f32.mrf.mxu0  ;;  %2705 = vmatprep.mubr.bf16.mxu1 %v6200_v50  ;;  %v7322_v21 = vld [vmem:[#allocation45_spill] sm:$0xff]  ;;  %v1693_v34 = vpop.f32.mrf.mxu1 }
 0x206   : > { %v6210_v27 = vpop.f32.mrf.mxu0  ;;  %2801 = vmatpush1.bf16.msra.mxu0 %v7312_v16  ;;  %3994 = vmatpush1.bf16.msra.mxu1 %v7312_v16  ;;  %v6261_v16 = vadd.f32 %v7323_v13, %v7322_v21 }
 0x208   : > { %v6219_v14 = vpop.f32.mrf.mxu0 }
 0x20a   : > { %v6226_v15 = vpop.f32.mrf.mxu0 }
 0x20b   : > { %2706 = vmatmul.mubr.bf16.gmra.mxu1 %v6217_v36  ;;  %v7326_v36 = vld [vmem:[#allocation40_spill] sm:$0xff] }
 0x20c   : > { %v1862_v59 = vpop.f32.mrf.mxu0  ;;  %2715 = vmatprep.mubr.bf16.mxu1 %v6224_v61  ;;  %v1654_v50 = vadd.f32 %v5980_v20, %v7326_v36  ;;  %v1682_v20 = vadd.f32 %v1681_v25, %v7320_v8 }
 0x20e   : > { %v1864_v0 = vpop.f32.mrf.mxu0 }
 0x210   : > { %v1866_v3 = vpop.f32.mrf.mxu0 }
 0x212   : > { %v1870_v40 = vpop.f32.mrf.mxu0 }
 0x213   : > { %2716 = vmatmul.mubr.bf16.gmra.mxu1 %v6233_v46  ;;  %v7325_v46 = vld [vmem:[#allocation27_spill] sm:$0xff] }
 0x214   : > { %v1872_v6 = vpop.f32.mrf.mxu0  ;;  %2725 = vmatprep.mubr.bf16.mxu1 %v6238_v52  ;;  %v7324_v52 = vld [vmem:[#allocation38_spill] sm:$0xff] }
 0x215   : > { %v6265_v61 = vadd.f32 %v7325_v46, %v7324_v52  ;;  %v7331_v46 = vld [vmem:[#allocation32_spill] sm:$0xff]  ;;  %v1873_v26 = vadd.f32 %v1872_v6, %v1680_v43 }
 0x216   : > { %v1874_v63 = vpop.f32.mrf.mxu0  ;;  %v1674_v56 = vadd.f32 %v6179_v1, %v7331_v46  ;;  %v1678_v1 = vadd.f32 %v6193_v19, %v7327_v30 }
 0x218   : > { %v1876_v29 = vpop.f32.mrf.mxu0  ;;  %v6290_v25 = vadd.f32 %v1866_v3, %v1674_v56  ;;  %v1871_v19 = vadd.f32 %v1870_v40, %v1678_v1  ;;  %v1668_v3 = vadd.f32 %v6119_v35, %v7333_v49 }
 0x219   : > { %v1877_v17 = vadd.f32 %v1876_v29, %v1684_v51  ;;  %v1875_v29 = vadd.f32 %v1874_v63, %v1682_v20  ;;  %v7334_v51 = vld [vmem:[#allocation35_spill] sm:$0xff] }
 0x21a   : > { %v1880_v28 = vpop.f32.mrf.mxu0  ;;  %v1662_v35 = vadd.f32 %v6070_v42, %v7334_v51 }
 0x21b   : > { %2726 = vmatmul.mubr.bf16.gmra.mxu1 %v6245_v32  ;;  %v7328_v32 = vld [vmem:[#allocation26_spill] sm:$0xff]  ;;  %v1881_v12 = vadd.f32 %v1880_v28, %v1688_v41  ;;  %v2004_v41 = vmul.f32 0.1, %v1873_v26  ;;  %v2007_v43 = vmul.f32 0.1, %v1875_v29 }
 0x21c   : > { %v1882_v44 = vpop.f32.mrf.mxu0  ;;  %2735 = vmatprep.mubr.bf16.mxu1 %v6250_v39  ;;  %v1692_v53 = vadd.f32 %v1691_v45, %v7328_v32  ;;  %v1694_v39 = vadd.f32 %v1693_v34, %v7328_v32  ;;  %v1670_v45 = vadd.f32 %v6140_v5, %v7333_v49  ;;  %v1672_v5 = vadd.f32 %v6161_v55, %v7331_v46 }
 0x21d   : > { %v1883_v13 = vadd.f32 %v1882_v44, %v1690_v23  ;;  %v6284_v44 = vld [vmem:[%s6941_s3 + $0xb0] ss:$8 sps:$4 sm:$0xff]   ;;  %v1664_v23 = vadd.f32 %v6089_v4, %v7334_v51  ;;  %v2011_v56 = vmul.f32 0.1, %v1881_v12  ;;  %v2000_v55 = vmul.f32 0.1, %v6290_v25 }
 0x21e   : > { %v1884_v9 = vpop.f32.mrf.mxu0  ;;  %v1863_v63 = vadd.f32 %v1862_v59, %v1670_v45  ;;  %v1861_v59 = vadd.f32 %v6226_v15, %v1668_v3  ;;  %v2132_v49 = vmax.f32 %v1873_v26, %v2004_v41  ;;  %v2135_v42 = vmax.f32 %v1875_v29, %v2007_v43  ;;  %v7335_v26 = vld [vmem:[#allocation17_spill] sm:$0xff] }
 0x21f   : > { %v1885_v62 = vadd.f32 %v1884_v9, %v1692_v53  ;;  %v2008_v53 = vmul.f32 0.1, %v1877_v17  ;;  %v2012_v6 = vmul.f32 0.1, %v1883_v13  ;;  %v6305_v30 = vadd.f32 %v6219_v14, %v1664_v23 }
 0x220   : > { %v1886_v28 = vpop.f32.mrf.mxu0  ;;  %v2003_v9 = vmul.f32 0.1, %v1871_v19  ;;  %v2139_v47 = vmax.f32 %v1881_v12, %v2011_v56  ;;  %v1853_v14 = vadd.f32 %v6207_v11, %v1660_v58  ;;  %v6327_v12 = vld [vmem:[%s6941_s3 + $0xd4] ss:$8 sps:$4 sm:$0xff]   ;;  %v6330_v58 = vadd.f32 %v6195_v57, %v1654_v50 }
 0x221   : > { %v2015_v32 = vmul.f32 0.1, %v1885_v62  ;;  %v1887_v8 = vadd.f32 %v1886_v28, %v1694_v39  ;;  %v6307_v39 = vadd.f32 %v1864_v0, %v1672_v5  ;;  %v2136_v40 = vmax.f32 %v1877_v17, %v2008_v53  ;;  %v7337_v5 = vld [vmem:[#allocation49_spill] sm:$0xff] }
 0x222   : > { %v2140_v46 = vmax.f32 %v1883_v13, %v2012_v6  ;;  %v1996_v0 = vmul.f32 0.1, %v1863_v63  ;;  %v6321_v17 = vadd.f32 %v6210_v27, %v1662_v35  ;;  %v1992_v11 = vmul.f32 0.1, %v6305_v30 }
 0x223   : > { %v2016_v34 = vmul.f32 0.1, %v1887_v8  ;;  %2736 = vmatmul.mubr.bf16.gmra.mxu1 %v6284_v44  ;;  %v2143_v4 = vmax.f32 %v1885_v62, %v2015_v32  ;;  %v6318_v62 = vld [vmem:[%s6941_s3 + $0xc0] ss:$8 sps:$4 sm:$0xff]   ;;  %v1999_v13 = vmul.f32 0.1, %v6307_v39  ;;  %v2128_v15 = vmax.f32 %v6290_v25, %v2000_v55 }
 0x224   : > { %2745 = vmatprep.mubr.bf16.mxu1 %v6295_v37  ;;  %v2236_v27 = vpack.c.bf16 %v2136_v40, %v2132_v49  ;;  %v1652_v28 = vadd.f32 %v7335_v26, %v7326_v36  ;;  %v1851_v29 = vadd.f32 %v6202_v22, %v1658_v38  ;;  %v1995_v53 = vmul.f32 0.1, %v1861_v59  ;;  %v7336_v32 = vld [vmem:[#allocation33_spill] sm:$0xff] }
 0x225   : > { %v2144_v20 = vmax.f32 %v1887_v8, %v2016_v34  ;;  %v2239_v1 = vpack.c.bf16 %v2143_v4, %v2139_v47  ;;  %v2131_v6 = vmax.f32 %v1871_v19, %v2003_v9  ;;  %v1648_v57 = vadd.f32 %v7336_v32, %v7324_v52  ;;  %v4169_v49 = vld [vmem:[%s6941_s3 + $0xe0] ss:$8 sps:$4 sm:$0xff]  }
 0x226   : > { %v1843_v50 = vadd.f32 %v6181_v33, %v6265_v61  ;;  %v1988_v8 = vmul.f32 0.1, %v1853_v14  ;;  %v2124_v25 = vmax.f32 %v1863_v63, %v1996_v0  ;;  %v1845_v51 = vadd.f32 %v6185_v60, %v1652_v28  ;;  %v7342_v28 = vld [vmem:[#allocation58_spill] sm:$0xff] }
 0x227   : > { %v2240_v45 = vpack.c.bf16 %v2144_v20, %v2140_v46  ;;  %v1991_v36 = vmul.f32 0.1, %v6321_v17  ;;  %v2127_v38 = vmax.f32 %v6307_v39, %v1999_v13  ;;  %v2235_v22 = vpack.c.bf16 %v2135_v42, %v2131_v6  ;;  %v4171_v39 = vld [vmem:[%s6941_s3 + $0xe4] ss:$8 sps:$4 sm:$0xff]   ;;  %v4174_v13 = vld [vmem:[%s6941_s3 + $0xf4] ss:$8 sps:$4 sm:$0xff]  }
 0x228   : > { %v1837_v52 = vadd.f32 %v6163_v54, %v6261_v16  ;;  %v1984_v33 = vmul.f32 0.1, %v6330_v58  ;;  %v2120_v61 = vmax.f32 %v6305_v30, %v1992_v11  ;;  %v2232_v23 = vpack.c.bf16 %v2128_v15, %v2124_v25  ;;  %v6358_v54 = vld [vmem:[%s6941_s3 + $0xd0] ss:$8 sps:$4 sm:$0xff]   ;;  %v6375_v11 = vpop.permute.xlu0 %2275 }
 0x229   : > { %2802 = vmatprep.subr.bf16.mxu0 %v2240_v45  ;;  %3979 = vmatprep.subr.bf16.mxu1 %v2240_v45  ;;  %v1642_v19 = vadd.f32 %v7337_v5, %v7322_v21  ;;  %v1841_v60 = vadd.f32 %v6174_v2, %v1648_v57  ;;  %v1987_v56 = vmul.f32 0.1, %v1851_v29  ;;  %v2123_v3 = vmax.f32 %v1861_v59, %v1995_v53  ;;  %v4172_v15 = vld [vmem:[%s6941_s3 + $0xf0] ss:$8 sps:$4 sm:$0xff]  }
 0x22a   : > { %2803 = vmatpush2.bf16.msra.mxu0 %v2239_v1  ;;  %3995 = vmatpush2.bf16.msra.mxu1 %v2239_v1  ;;  %v1833_v63 = vadd.f32 %v6142_v48, %v6254_v31  ;;  %v1980_v41 = vmul.f32 0.1, %v1843_v50  ;;  %v2116_v34 = vmax.f32 %v1853_v14, %v1988_v8  ;;  %v1983_v16 = vmul.f32 0.1, %v1845_v51  ;;  %7338 = vst [vmem:[#allocation50_spill] sm:$0xff] %v6375_v11  ;;  %v7345_v53 = vld [vmem:[#allocation46_spill] sm:$0xff] }
 0x22b   : > { %2746 = vmatmul.mubr.bf16.gmra.mxu1 %v6318_v62  ;;  %2804 = vmatprep.subr.bf16.mxu0 %v2236_v27  ;;  %v1835_v21 = vadd.f32 %v6149_v7, %v1642_v19  ;;  %v2119_v2 = vmax.f32 %v6321_v17, %v1991_v36  ;;  %v2231_v30 = vpack.c.bf16 %v2127_v38, %v2123_v3  ;;  %v1976_v48 = vmul.f32 0.1, %v1837_v52  ;;  %v7349_v57 = vld [vmem:[#allocation16_spill] sm:$0xff]  ;;  %v7354_v36 = vld [vmem:[#allocation22_spill] sm:$0xff] }
 0x22c   : > { %3980 = vmatprep.subr.bf16.mxu1 %v2236_v27  ;;  %2755 = vmatprep.mubr.bf16.mxu1 %v6327_v12  ;;  %v2112_v31 = vmax.f32 %v6330_v58, %v1984_v33  ;;  %v2228_v43 = vpack.c.bf16 %v2120_v61, %v2116_v34  ;;  %v1979_v4 = vmul.f32 0.1, %v1841_v60  ;;  %v2115_v55 = vmax.f32 %v1851_v29, %v1987_v56  ;;  %v7340_v27 = vld [vmem:[#allocation59_spill] sm:$0xff]  ;;  %v6388_v26 = vpop.permute.xlu0 %2285  ;;  %v7355_v38 = vld [vmem:[#allocation24_spill] sm:$0xff]  ;;  %v7358_v33 = vld [vmem:[#allocation54_spill] sm:$0xff] }
 0x22d   : > { %v1972_v40 = vmul.f32 0.1, %v1833_v63  ;;  %v2108_v46 = vmax.f32 %v1843_v50, %v1980_v41  ;;  %v1975_v7 = vmul.f32 0.1, %v1835_v21  ;;  %v2111_v20 = vmax.f32 %v1845_v51, %v1983_v16  ;;  %7341 = vst [vmem:[#allocation47_spill] sm:$0xff] %v6388_v26  ;;  %v7344_v29 = vld [vmem:[#allocation19_spill] sm:$0xff] }
 0x22e   : > { %2805 = vmatpush2.bf16.msra.mxu0 %v2235_v22  ;;  %3996 = vmatpush2.bf16.msra.mxu1 %v2235_v22  ;;  %v2227_v35 = vpack.c.bf16 %v2119_v2, %v2115_v55  ;;  %v2104_v59 = vmax.f32 %v1837_v52, %v1976_v48  ;;  %v1971_v47 = vmul.f32 0.1, %v6132_v24  ;;  %v2107_v14 = vmax.f32 %v1841_v60, %v1979_v4  ;;  %v7350_v50 = vld [vmem:[#allocation37_spill] sm:$0xff]  ;;  %v7359_v61 = vld [vmem:[#allocation55_spill] sm:$0xff]  ;;  %v7365_v34 = vld [vmem:[#allocation12_spill] sm:$0xff] }
 0x22f   : > { %2806 = vmatprep.subr.bf16.mxu0 %v2232_v23  ;;  %3981 = vmatprep.subr.bf16.mxu1 %v2232_v23  ;;  %v2224_v9 = vpack.c.bf16 %v2112_v31, %v2108_v46  ;;  %v2100_v0 = vmax.f32 %v1833_v63, %v1972_v40  ;;  %v2103_v45 = vmax.f32 %v1835_v21, %v1975_v7  ;;  %v7362_v60 = vld [vmem:[#allocation15_spill] sm:$0xff]  ;;  %v7363_v56 = vld [vmem:[#allocation57_spill] sm:$0xff]  ;;  %v7370_v4 = vld [vmem:[#allocation10_spill] sm:$0xff] }
 0x230   : > { %v2223_v17 = vpack.c.bf16 %v2111_v20, %v2107_v14  ;;  %v2099_v1 = vmax.f32 %v6132_v24, %v1971_v47  ;;  %v6382_v24 = vpop.permute.xlu1 %2280  ;;  %v6396_v6 = vpop.permute.xlu0 %2295  ;;  %v7366_v21 = vld [vmem:[#allocation31_spill] sm:$0xff] }
 0x231   : > { %v2220_v42 = vpack.c.bf16 %v2104_v59, %v2100_v0  ;;  %7339 = vst [vmem:[#allocation52_spill] sm:$0xff] %v6382_v24  ;;  %7346 = vst [vmem:[#allocation43_spill] sm:$0xff] %v6396_v6  ;;  %v7371_v55 = vld [vmem:[#allocation11_spill] sm:$0xff] }
 0x232   : > { %2807 = vmatpush2.bf16.msra.mxu0 %v2231_v30  ;;  %3997 = vmatpush2.bf16.msra.mxu1 %v2231_v30  ;;  %v2219_v58 = vpack.c.bf16 %v2103_v45, %v2099_v1  ;;  %v7368_v30 = vld [vmem:[#allocation13_spill] sm:$0xff]  ;;  %v7375_v20 = vld [vmem:[#allocation7_spill] sm:$0xff] }
 0x233   : > { %2756 = vmatmul.mubr.bf16.gmra.mxu1 %v6358_v54  ;;  %2808 = vmatprep.subr.bf16.mxu0 %v2228_v43 }
 0x234   : > { %3982 = vmatprep.subr.bf16.mxu1 %v2228_v43  ;;  %2765 = vmatprep.mubr.bf16.mxu1 %v4171_v39  ;;  %v6400_v32 = vpop.permute.xlu0 %2305 }
 0x235   : > { %7348 = vst [vmem:[#allocation53_spill] sm:$0xff] %v6400_v32 }
 0x236   : > { %2809 = vmatpush2.bf16.msra.mxu0 %v2227_v35  ;;  %3998 = vmatpush2.bf16.msra.mxu1 %v2227_v35  ;;  %v7376_v35 = vld [vmem:[#allocation39_spill] sm:$0xff] }
 0x237   : > { %2810 = vmatprep.subr.bf16.mxu0 %v2224_v9  ;;  %3983 = vmatprep.subr.bf16.mxu1 %v2224_v9 }
 0x238   : > { %v6406_v25 = vpop.permute.xlu0 %2315 }
 0x239   : > { %7352 = vst [vmem:[#allocation36_spill] sm:$0xff] %v6406_v25 }
 0x23a   : > { %2811 = vmatpush2.bf16.msra.mxu0 %v2223_v17  ;;  %3999 = vmatpush2.bf16.msra.mxu1 %v2223_v17 }
 0x23b   : > { %2766 = vmatmul.mubr.bf16.gmra.mxu1 %v4169_v49  ;;  %2812 = vmatprep.subr.bf16.mxu0 %v2220_v42 }
 0x23c   : > { %3984 = vmatprep.subr.bf16.mxu1 %v2220_v42  ;;  %2775 = vmatprep.mubr.bf16.mxu1 %v4174_v13  ;;  %v6412_v22 = vpop.permute.xlu0 %2325 }
 0x23d   : > { %7356 = vst [vmem:[#allocation41_spill] sm:$0xff] %v6412_v22 }
 0x23e   : > { %2813 = vmatpush2.bf16.msra.mxu0 %v2219_v58  ;;  %4000 = vmatpush2.bf16.msra.mxu1 %v2219_v58 }
 0x23f   : > { %2814 = vmatprep.subr.bf16.mxu0 %v6158_v18  ;;  %3985 = vmatprep.subr.bf16.mxu1 %v6158_v18  ;;  %v6392_v18 = vpop.permute.xlu1 %2290 }
 0x240   : > { %7343 = vst [vmem:[#allocation48_spill] sm:$0xff] %v6392_v18  ;;  %v6418_v23 = vpop.permute.xlu0 %2335 }
 0x241   : > { %7360 = vst [vmem:[#allocation29_spill] sm:$0xff] %v6418_v23 }
 0x242   : > { %2815 = vmatpush2.bf16.msra.mxu0 %v6145_v10  ;;  %4001 = vmatpush2.bf16.msra.mxu1 %v6145_v10 }
 0x243   : > { %2776 = vmatmul.mubr.bf16.gmra.mxu1 %v4172_v15  ;;  %2816 = vmatprep.subr.bf16.mxu0 %v7340_v27  ;;  %v6398_v10 = vpop.permute.xlu1 %2300 }
 0x244   : > { %3986 = vmatprep.subr.bf16.mxu1 %v7340_v27  ;;  %2958 = vmatprep.mubr.bf16.mxu1 %v4171_v39  ;;  %7347 = vst [vmem:[#allocation18_spill] sm:$0xff] %v6398_v10  ;;  %v6422_v19 = vpop.permute.xlu0 %2345  ;;  %v7369_v39 = vld [vmem:[#allocation20_spill] sm:$0xff] }
 0x246   : > { %2817 = vmatpush2.bf16.msra.mxu0 %v7342_v28  ;;  %4002 = vmatpush2.bf16.msra.mxu1 %v7342_v28 }
 0x247   : > { %v6404_v8 = vpop.permute.xlu1 %2310 }
 0x248   : > { %7351 = vst [vmem:[#allocation21_spill] sm:$0xff] %v6404_v8  ;;  %v6428_v63 = vpop.permute.xlu0 %2355 }
 0x249   : > { %2819 = vmatmul.mubr.bf16.vlgmr.msra.gmra.mxu0 %v7344_v29  ;;  %v7380_v29 = vld [vmem:[#allocation9_spill] sm:$0xff] }
 0x24a   : > { %2828 = vmatprep.mubr.bf16.mxu0 %v7345_v53 }
 0x24b   : > { %2959 = vmatmul.mubr.bf16.vlgmr.msra.gmra.mxu1 %v4169_v49  ;;  %v6408_v51 = vpop.permute.xlu1 %2320 }
 0x24c   : > { %2968 = vmatprep.mubr.bf16.mxu1 %v4174_v13  ;;  %7353 = vst [vmem:[#allocation42_spill] sm:$0xff] %v6408_v51  ;;  %v6434_v16 = vpop.permute.xlu0 %2365 }
 0x24d   : > { %7367 = vst [vmem:[#allocation44_spill] sm:$0xff] %v6434_v16 }
 0x24f   : > { %v6414_v52 = vpop.permute.xlu1 %2330 }
 0x250   : > { %7357 = vst [vmem:[#allocation51_spill] sm:$0xff] %v6414_v52  ;;  %v6440_v48 = vpop.permute.xlu0 %2375 }
 0x251   : > { %2829 = vmatmul.mubr.bf16.gmra.mxu0 %v7349_v57 }
 0x252   : > { %2838 = vmatprep.mubr.bf16.mxu0 %v7350_v50 }
 0x253   : > { %2969 = vmatmul.mubr.bf16.gmra.mxu1 %v4172_v15  ;;  %v6420_v5 = vpop.permute.xlu1 %2340  ;;  %v7379_v15 = vld [vmem:[#allocation23_spill] sm:$0xff] }
 0x254   : > { %7361 = vst [vmem:[#allocation25_spill] sm:$0xff] %v6420_v5  ;;  %v6444_v43 = vpop.permute.xlu0 %2385 }
 0x257   : > { %v6426_v3 = vpop.permute.xlu1 %2350 }
 0x258   : > { %7364 = vst [vmem:[#allocation45_spill] sm:$0xff] %v6426_v3  ;;  %v6450_v46 = vpop.permute.xlu0 %2395 }
 0x259   : > { %2839 = vmatmul.mubr.bf16.gmra.mxu0 %v7354_v36  ;;  %7373 = vst [vmem:[#allocation27_spill] sm:$0xff] %v6450_v46 }
 0x25a   : > { %2848 = vmatprep.mubr.bf16.mxu0 %v7355_v38 }
 0x25b   : > { %v6430_v41 = vpop.permute.xlu1 %2360 }
 0x25c   : > { %v6457_v47 = vpop.permute.xlu0 %2405 }
 0x25d   : > { %7377 = vst [vmem:[#allocation28_spill] sm:$0xff] %v6457_v47 }
 0x25f   : > { %v6436_v2 = vpop.permute.xlu1 %2370 }
 0x260   : > { %v6466_v53 = vpop.permute.xlu0 %3269 }
 0x261   : > { %2849 = vmatmul.mubr.bf16.gmra.mxu0 %v7358_v33  ;;  %7381 = vst [vmem:[#allocation34_spill] sm:$0xff] %v6466_v53 }
 0x262   : > { %2858 = vmatprep.mubr.bf16.mxu0 %v7359_v61 }
 0x263   : > { %v6442_v31 = vpop.permute.xlu1 %2380 }
 0x267   : > { %v6448_v40 = vpop.permute.xlu1 %2390 }
 0x268   : > { %7372 = vst [vmem:[#allocation38_spill] sm:$0xff] %v6448_v40 }
 0x269   : > { %2859 = vmatmul.mubr.bf16.gmra.mxu0 %v7362_v60 }
 0x26a   : > { %2868 = vmatprep.mubr.bf16.mxu0 %v7363_v56 }
 0x26b   : > { %v6452_v7 = vpop.permute.xlu1 %2400 }
 0x26c   : > { %7374 = vst [vmem:[#allocation40_spill] sm:$0xff] %v6452_v7 }
 0x26f   : > { %v6460_v45 = vpop.permute.xlu1 %2410 }
 0x270   : > { %7378 = vst [vmem:[#allocation26_spill] sm:$0xff] %v6460_v45 }
 0x271   : > { %2869 = vmatmul.mubr.bf16.gmra.mxu0 %v7365_v34 }
 0x272   : > { %2878 = vmatprep.mubr.bf16.mxu0 %v7366_v21 }
 0x273   : > { %v6469_v61 = vpop.permute.xlu1 %3274 }
 0x274   : > { %7382 = vst [vmem:[#allocation14_spill] sm:$0xff] %v6469_v61 }
 0x279   : > { %2879 = vmatmul.mubr.bf16.gmra.mxu0 %v7368_v30 }
 0x27a   : > { %2888 = vmatprep.mubr.bf16.mxu0 %v7369_v39 }
 0x281   : > { %2889 = vmatmul.mubr.bf16.gmra.mxu0 %v7370_v4 }
 0x282   : > { %2898 = vmatprep.mubr.bf16.mxu0 %v7371_v55 }
 0x289   : > { %2899 = vmatmul.mubr.bf16.gmra.mxu0 %v7375_v20 }
 0x28a   : > { %2908 = vmatprep.mubr.bf16.mxu0 %v7376_v35 }
 0x28b   : > { %v2627_v59 = vpop.f32.mrf.mxu1 }
 0x28c   : > { %v2628_v9 = vadd.f32 %v2627_v59, %v6375_v11 }
 0x28d   : > { %v2629_v14 = vpop.f32.mrf.mxu1 }
 0x28e   : > { %v2979_v0 = vmul.f32 0.1, %v2628_v9  ;;  %v2630_v49 = vadd.f32 %v2629_v14, %v6375_v11  ;;  %v6476_v14 = vpop.permute.xlu0 %3279 }
 0x28f   : > { %v2631_v17 = vpop.f32.mrf.mxu1  ;;  %7383 = vst [vmem:[#allocation32_spill] sm:$0xff] %v6476_v14 }
 0x290   : > { %v2980_v13 = vmul.f32 0.1, %v2630_v49  ;;  %v2632_v42 = vadd.f32 %v2631_v17, %v6382_v24  ;;  %v3107_v1 = vmax.f32 %v2628_v9, %v2979_v0  ;;  %v7384_v17 = vld [vmem:[#allocation6_spill] sm:$0xff] }
 0x291   : > { %v2633_v58 = vpop.f32.mrf.mxu1  ;;  %2909 = vmatmul.mubr.bf16.gmra.mxu0 %v7379_v15  ;;  %v7385_v15 = vld [vmem:[#allocation8_spill] sm:$0xff] }
 0x292   : > { %v2983_v27 = vmul.f32 0.1, %v2632_v42  ;;  %v2634_v28 = vadd.f32 %v2633_v58, %v6382_v24  ;;  %2918 = vmatprep.mubr.bf16.mxu0 %v7380_v29  ;;  %v3108_v57 = vmax.f32 %v2630_v49, %v2980_v13  ;;  %v3427_v60 = vmul.f32 %v6466_v53, %v3107_v1 }
 0x293   : > { %v2637_v50 = vpop.f32.mrf.mxu1 }
 0x294   : > { %v3111_v36 = vmax.f32 %v2632_v42, %v2983_v27  ;;  %v2984_v38 = vmul.f32 0.1, %v2634_v28  ;;  %v2638_v33 = vadd.f32 %v2637_v50, %v6388_v26  ;;  %v3428_v4 = vmul.f32 %v6466_v53, %v3108_v57 }
 0x295   : > { %v2639_v56 = vpop.f32.mrf.mxu1 }
 0x296   : > { %v3431_v34 = vmul.f32 %v6469_v61, %v3111_v36  ;;  %v3112_v21 = vmax.f32 %v2634_v28, %v2984_v38  ;;  %v2987_v30 = vmul.f32 0.1, %v2638_v33  ;;  %v2640_v39 = vadd.f32 %v2639_v56, %v6388_v26 }
 0x297   : > { %v2641_v55 = vpop.f32.mrf.mxu1 }
 0x298   : > { %v3555_v20 = vadd.f32 %v3431_v34, %v3427_v60  ;;  %v3432_v35 = vmul.f32 %v6469_v61, %v3112_v21  ;;  %v3115_v59 = vmax.f32 %v2638_v33, %v2987_v30  ;;  %v2988_v9 = vmul.f32 0.1, %v2640_v39  ;;  %v6485_v60 = vpop.permute.xlu1 %3284 }
 0x299   : > { %v2642_v0 = vadd.f32 %v2641_v55, %v6392_v18  ;;  %v2643_v49 = vpop.f32.mrf.mxu1  ;;  %2919 = vmatmul.mubr.bf16.gmra.mxu0 %v7384_v17  ;;  %7386 = vst [vmem:[#allocation56_spill] sm:$0xff] %v6485_v60 }
 0x29a   : > { %v3592_v13 = vadd.f32 %v3432_v35, %v3428_v4  ;;  %v3435_v42 = vmul.f32 %v6476_v14, %v3115_v59  ;;  %v3116_v1 = vmax.f32 %v2640_v39, %v2988_v9  ;;  %v2644_v58 = vadd.f32 %v2643_v49, %v6392_v18  ;;  %2928 = vmatprep.mubr.bf16.mxu0 %v7385_v15  ;;  %v6491_v9 = vpop.permute.xlu0 %3289 }
 0x29b   : > { %v2991_v27 = vmul.f32 0.1, %v2642_v0  ;;  %v2647_v28 = vpop.f32.mrf.mxu1  ;;  %7387 = vst [vmem:[#allocation30_spill] sm:$0xff] %v6491_v9 }
 0x29c   : > { %v3556_v29 = vadd.f32 %v3555_v20, %v3435_v42  ;;  %v3436_v57 = vmul.f32 %v6476_v14, %v3116_v1  ;;  %v2992_v50 = vmul.f32 0.1, %v2644_v58  ;;  %v2648_v36 = vadd.f32 %v2647_v28, %v6396_v6 }
 0x29d   : > { %v3119_v38 = vmax.f32 %v2642_v0, %v2991_v27  ;;  %v2649_v33 = vpop.f32.mrf.mxu1 }
 0x29e   : > { %v3593_v56 = vadd.f32 %v3592_v13, %v3436_v57  ;;  %v3120_v34 = vmax.f32 %v2644_v58, %v2992_v50  ;;  %v2995_v21 = vmul.f32 0.1, %v2648_v36  ;;  %v2650_v30 = vadd.f32 %v2649_v33, %v6396_v6 }
 0x29f   : > { %v3439_v39 = vmul.f32 %v6485_v60, %v3119_v38  ;;  %v2651_v4 = vpop.f32.mrf.mxu1 }
 0x2a0   : > { %v3440_v55 = vmul.f32 %v6485_v60, %v3120_v34  ;;  %v3123_v20 = vmax.f32 %v2648_v36, %v2995_v21  ;;  %v2996_v35 = vmul.f32 0.1, %v2650_v30  ;;  %v2652_v59 = vadd.f32 %v2651_v4, %v6398_v10 }
 0x2a1   : > { %v3557_v0 = vadd.f32 %v3556_v29, %v3439_v39  ;;  %v2653_v49 = vpop.f32.mrf.mxu1  ;;  %2929 = vmatmul.mubr.bf16.gmra.mxu0 %v6284_v44  ;;  %v6499_v29 = vpop.permute.xlu1 %3294 }
 0x2a2   : > { %v3594_v17 = vadd.f32 %v3593_v56, %v3440_v55  ;;  %v3443_v13 = vmul.f32 %v6491_v9, %v3123_v20  ;;  %v3124_v42 = vmax.f32 %v2650_v30, %v2996_v35  ;;  %v2999_v1 = vmul.f32 0.1, %v2652_v59  ;;  %2938 = vmatprep.mubr.bf16.mxu0 %v6295_v37  ;;  %7388 = vst [vmem:[#allocation35_spill] sm:$0xff] %v6499_v29  ;;  %v6504_v20 = vpop.permute.xlu0 %3299 }
 0x2a3   : > { %v2654_v58 = vadd.f32 %v2653_v49, %v6398_v10  ;;  %v2657_v15 = vpop.f32.mrf.mxu1  ;;  %7389 = vst [vmem:[#allocation17_spill] sm:$0xff] %v6504_v20 }
 0x2a4   : > { %v3558_v27 = vadd.f32 %v3557_v0, %v3443_v13  ;;  %v3444_v28 = vmul.f32 %v6491_v9, %v3124_v42  ;;  %v3127_v57 = vmax.f32 %v2652_v59, %v2999_v1  ;;  %v2658_v50 = vadd.f32 %v2657_v15, %v6400_v32 }
 0x2a5   : > { %v3000_v36 = vmul.f32 0.1, %v2654_v58  ;;  %v2659_v44 = vpop.f32.mrf.mxu1 }
 0x2a6   : > { %v3595_v38 = vadd.f32 %v3594_v17, %v3444_v28  ;;  %v3447_v33 = vmul.f32 %v6499_v29, %v3127_v57  ;;  %v3003_v56 = vmul.f32 0.1, %v2658_v50  ;;  %v2660_v34 = vadd.f32 %v2659_v44, %v6400_v32  ;;  %v6512_v57 = vpop.permute.xlu1 %3304 }
 0x2a7   : > { %v3128_v37 = vmax.f32 %v2654_v58, %v3000_v36  ;;  %v2661_v21 = vpop.f32.mrf.mxu1  ;;  %7390 = vst [vmem:[#allocation33_spill] sm:$0xff] %v6512_v57 }
 0x2a8   : > { %v3559_v30 = vadd.f32 %v3558_v27, %v3447_v33  ;;  %v3131_v39 = vmax.f32 %v2658_v50, %v3003_v56  ;;  %v3004_v4 = vmul.f32 0.1, %v2660_v34  ;;  %v2662_v55 = vadd.f32 %v2661_v21, %v6404_v8 }
 0x2a9   : > { %v3448_v35 = vmul.f32 %v6499_v29, %v3128_v37  ;;  %v2663_v59 = vpop.f32.mrf.mxu1  ;;  %2939 = vmatmul.mubr.bf16.gmra.mxu0 %v6318_v62 }
 0x2aa   : > { %v3451_v0 = vmul.f32 %v6504_v20, %v3131_v39  ;;  %v3132_v49 = vmax.f32 %v2660_v34, %v3004_v4  ;;  %v3007_v17 = vmul.f32 0.1, %v2662_v55  ;;  %v2664_v13 = vadd.f32 %v2663_v59, %v6404_v8  ;;  %2948 = vmatprep.mubr.bf16.mxu0 %v6327_v12 }
 0x2ab   : > { %v3596_v42 = vadd.f32 %v3595_v38, %v3448_v35  ;;  %v2667_v1 = vpop.f32.mrf.mxu1 }
 0x2ac   : > { %v3560_v58 = vadd.f32 %v3559_v30, %v3451_v0  ;;  %v3452_v15 = vmul.f32 %v6504_v20, %v3132_v49  ;;  %v3135_v27 = vmax.f32 %v2662_v55, %v3007_v17  ;;  %v3008_v28 = vmul.f32 0.1, %v2664_v13  ;;  %v6518_v30 = vpop.permute.xlu0 %3309 }
 0x2ad   : > { %v2668_v50 = vadd.f32 %v2667_v1, %v6406_v25  ;;  %v2669_v62 = vpop.f32.mrf.mxu1  ;;  %7391 = vst [vmem:[#allocation49_spill] sm:$0xff] %v6518_v30 }
 0x2ae   : > { %v3597_v36 = vadd.f32 %v3596_v42, %v3452_v15  ;;  %v3455_v44 = vmul.f32 %v6512_v57, %v3135_v27  ;;  %v3136_v33 = vmax.f32 %v2664_v13, %v3008_v28  ;;  %v6525_v42 = vpop.permute.xlu1 %3314 }
 0x2af   : > { %v3011_v56 = vmul.f32 0.1, %v2668_v50  ;;  %v2671_v34 = vpop.f32.mrf.mxu1  ;;  %7392 = vst [vmem:[#allocation59_spill] sm:$0xff] %v6525_v42 }
 0x2b0   : > { %v3561_v37 = vadd.f32 %v3560_v58, %v3455_v44  ;;  %v3456_v12 = vmul.f32 %v6512_v57, %v3136_v33  ;;  %v6527_v58 = vpop.permute.xlu0 %3319  ;;  %v2670_v33 = vadd.f32 %v2669_v62, %v6406_v25 }
 0x2b1   : > { %v3139_v38 = vmax.f32 %v2668_v50, %v3011_v56  ;;  %v2673_v21 = vpop.f32.mrf.mxu1  ;;  %2949 = vmatmul.mubr.bf16.gmra.mxu0 %v6358_v54  ;;  %7393 = vst [vmem:[#allocation58_spill] sm:$0xff] %v6527_v58 }
 0x2b2   : > { %v6520_v39 = vadd.f32 %v3597_v36, %v3456_v12  ;;  %v6529_v27 = vpop.permute.xlu1 %3324  ;;  %v3012_v29 = vmul.f32 0.1, %v2670_v33 }
 0x2b3   : > { %v3459_v4 = vmul.f32 %v6518_v30, %v3139_v38  ;;  %v2677_v55 = vpop.f32.mrf.mxu1 }
 0x2b4   : > { %v6531_v50 = vpop.permute.xlu0 %3329  ;;  %v2678_v57 = vadd.f32 %v2677_v55, %v6412_v22  ;;  %v3140_v53 = vmax.f32 %v2670_v33, %v3012_v29 }
 0x2b5   : > { %v6523_v35 = vadd.f32 %v3561_v37, %v3459_v4  ;;  %v2679_v59 = vpop.f32.mrf.mxu1  ;;  %v2672_v37 = vadd.f32 %v2671_v34, %v6408_v51  ;;  %v2674_v4 = vadd.f32 %v2673_v21, %v6408_v51 }
 0x2b6   : > { %v6534_v56 = vpop.permute.xlu1 %3334  ;;  %v2680_v60 = vadd.f32 %v2679_v59, %v6412_v22  ;;  %v3019_v32 = vmul.f32 0.1, %v2678_v57  ;;  %v3460_v11 = vmul.f32 %v6518_v30, %v3140_v53 }
 0x2b7   : > { %v2681_v0 = vpop.f32.mrf.mxu1  ;;  %7394 = vst [vmem:[#allocation19_spill] sm:$0xff] %v6534_v56  ;;  %v3015_v9 = vmul.f32 0.1, %v2672_v37  ;;  %v3016_v25 = vmul.f32 0.1, %v2674_v4 }
 0x2b8   : > { %v6537_v38 = vpop.permute.xlu0 %3339  ;;  %v2682_v14 = vadd.f32 %v2681_v0, %v6414_v52  ;;  %v3020_v51 = vmul.f32 0.1, %v2680_v60  ;;  %v3147_v18 = vmax.f32 %v2678_v57, %v3019_v32 }
 0x2b9   : > { %v2683_v49 = vpop.f32.mrf.mxu1  ;;  %v3143_v55 = vmax.f32 %v2672_v37, %v3015_v9  ;;  %v3144_v22 = vmax.f32 %v2674_v4, %v3016_v25 }
 0x2ba   : > { %v6543_v62 = vpop.permute.xlu1 %3344  ;;  %v2684_v21 = vadd.f32 %v2683_v49, %v6414_v52  ;;  %v3023_v59 = vmul.f32 0.1, %v2682_v14  ;;  %v3148_v49 = vmax.f32 %v2680_v60, %v3020_v51 }
 0x2bb   : > { %v2687_v17 = vpop.f32.mrf.mxu1  ;;  %v3463_v9 = vmul.f32 %v6525_v42, %v3143_v55 }
 0x2bc   : > { %v6547_v61 = vpop.permute.xlu0 %3349  ;;  %v2688_v10 = vadd.f32 %v2687_v17, %v6418_v23  ;;  %v3024_v45 = vmul.f32 0.1, %v2684_v21  ;;  %v3151_v32 = vmax.f32 %v2682_v14, %v3023_v59  ;;  %v3468_v14 = vmul.f32 %v6527_v58, %v3148_v49 }
 0x2bd   : > { %v2689_v13 = vpop.f32.mrf.mxu1 }
 0x2be   : > { %v2690_v0 = vadd.f32 %v2689_v13, %v6418_v23  ;;  %v6556_v29 = vpop.permute.xlu1 %3354  ;;  %v3027_v33 = vmul.f32 0.1, %v2688_v10  ;;  %v3464_v13 = vmul.f32 %v6525_v42, %v3144_v22  ;;  %v3599_v23 = vadd.f32 %v6520_v39, %v3460_v11 }
 0x2bf   : > { %v2691_v1 = vpop.f32.mrf.mxu1  ;;  %v3152_v55 = vmax.f32 %v2684_v21, %v3024_v45  ;;  %v3471_v22 = vmul.f32 %v6529_v27, %v3151_v32 }
 0x2c0   : > { %v2692_v26 = vadd.f32 %v2691_v1, %v6420_v5  ;;  %v6560_v25 = vpop.permute.xlu0 %3359  ;;  %v3467_v1 = vmul.f32 %v6527_v58, %v3147_v18  ;;  %v3028_v53 = vmul.f32 0.1, %v2690_v0  ;;  %v3155_v59 = vmax.f32 %v2688_v10, %v3027_v33 }
 0x2c1   : > { %v2693_v54 = vpop.f32.mrf.mxu1  ;;  %7395 = vst [vmem:[#allocation46_spill] sm:$0xff] %v6560_v25  ;;  %v3600_v45 = vadd.f32 %v3599_v23, %v3464_v13  ;;  %v3472_v10 = vmul.f32 %v6529_v27, %v3152_v55 }
 0x2c2   : > { %v2694_v17 = vadd.f32 %v2693_v54, %v6420_v5  ;;  %v3031_v4 = vmul.f32 0.1, %v2692_v26  ;;  %v3563_v54 = vadd.f32 %v6523_v35, %v3463_v9  ;;  %v6573_v11 = vpop.permute.xlu1 %3364 }
 0x2c3   : > { %v2697_v15 = vpop.f32.mrf.mxu1  ;;  %7396 = vst [vmem:[#allocation16_spill] sm:$0xff] %v6573_v11  ;;  %v3601_v32 = vadd.f32 %v3600_v45, %v3468_v14 }
 0x2c4   : > { %v2698_v57 = vadd.f32 %v2697_v15, %v6422_v19  ;;  %v3032_v15 = vmul.f32 0.1, %v2694_v17  ;;  %v3564_v39 = vadd.f32 %v3563_v54, %v3467_v1  ;;  %v6575_v35 = vpop.permute.xlu0 %3369 }
 0x2c5   : > { %v2699_v28 = vpop.f32.mrf.mxu1  ;;  %7397 = vst [vmem:[#allocation37_spill] sm:$0xff] %v6575_v35  ;;  %v3602_v54 = vadd.f32 %v3601_v32, %v3472_v10 }
 0x2c6   : > { %v2700_v51 = vadd.f32 %v2699_v28, %v6422_v19  ;;  %v3035_v18 = vmul.f32 0.1, %v2698_v57  ;;  %v3156_v28 = vmax.f32 %v2690_v0, %v3028_v53  ;;  %v3565_v23 = vadd.f32 %v3564_v39, %v3471_v22 }
 0x2c7   : > { %v2701_v36 = vpop.f32.mrf.mxu1 }
 0x2c8   : > { %v2702_v60 = vadd.f32 %v2701_v36, %v6426_v3  ;;  %v3159_v36 = vmax.f32 %v2692_v26, %v3031_v4  ;;  %v3036_v9 = vmul.f32 0.1, %v2700_v51  ;;  %v3163_v13 = vmax.f32 %v2698_v57, %v3035_v18  ;;  %v6591_v39 = vpop.permute.xlu0 %3379 }
 0x2c9   : > { %v2703_v44 = vpop.f32.mrf.mxu1  ;;  %v3476_v1 = vmul.f32 %v6531_v50, %v3156_v28  ;;  %7399 = vst [vmem:[#allocation24_spill] sm:$0xff] %v6591_v39 }
 0x2ca   : > { %v2704_v42 = vadd.f32 %v2703_v44, %v6426_v3  ;;  %v3039_v49 = vmul.f32 0.1, %v2702_v60  ;;  %v3475_v44 = vmul.f32 %v6531_v50, %v3155_v59  ;;  %v3160_v3 = vmax.f32 %v2694_v17, %v3032_v15 }
 0x2cb   : > { %v2707_v12 = vpop.f32.mrf.mxu1  ;;  %v3479_v53 = vmul.f32 %v6534_v56, %v3159_v36  ;;  %v3164_v14 = vmax.f32 %v2700_v51, %v3036_v9 }
 0x2cc   : > { %v2708_v52 = vadd.f32 %v2707_v12, %v6428_v63  ;;  %v3040_v0 = vmul.f32 0.1, %v2704_v42  ;;  %v3167_v17 = vmax.f32 %v2702_v60, %v3039_v49  ;;  %v3566_v15 = vadd.f32 %v3565_v23, %v3475_v44 }
 0x2cd   : > { %v2709_v20 = vpop.f32.mrf.mxu1  ;;  %v3480_v57 = vmul.f32 %v6534_v56, %v3160_v3  ;;  %v3603_v60 = vadd.f32 %v3602_v54, %v3476_v1  ;;  %v3484_v3 = vmul.f32 %v6537_v38, %v3164_v14 }
 0x2ce   : > { %v2710_v33 = vadd.f32 %v2709_v20, %v6428_v63  ;;  %v3043_v26 = vmul.f32 0.1, %v2708_v52  ;;  %v3567_v36 = vadd.f32 %v3566_v15, %v3479_v53  ;;  %v3487_v32 = vmul.f32 %v6543_v62, %v3167_v17 }
 0x2cf   : > { %v2711_v8 = vpop.f32.mrf.mxu1  ;;  %v3604_v23 = vadd.f32 %v3603_v60, %v3480_v57 }
 0x2d0   : > { %v2712_v12 = vadd.f32 %v2711_v8, %v6430_v41  ;;  %v3044_v59 = vmul.f32 0.1, %v2710_v33  ;;  %v6586_v8 = vpop.permute.xlu1 %3374  ;;  %v3171_v28 = vmax.f32 %v2708_v52, %v3043_v26 }
 0x2d1   : > { %v6545_v34 = vpop.f32.mrf.mxu1  ;;  %7398 = vst [vmem:[#allocation22_spill] sm:$0xff] %v6586_v8  ;;  %v3605_v17 = vadd.f32 %v3604_v23, %v3484_v3 }
 0x2d2   : > { %v2714_v4 = vadd.f32 %v6545_v34, %v6430_v41  ;;  %v3047_v22 = vmul.f32 0.1, %v2712_v12  ;;  %v3483_v34 = vmul.f32 %v6537_v38, %v3163_v13  ;;  %v3172_v44 = vmax.f32 %v2710_v33, %v3044_v59 }
 0x2d3   : > { %v2717_v6 = vpop.f32.mrf.mxu1 }
 0x2d4   : > { %v2718_v20 = vadd.f32 %v2717_v6, %v6434_v16  ;;  %v3168_v6 = vmax.f32 %v2704_v42, %v3040_v0  ;;  %v3048_v10 = vmul.f32 0.1, %v2714_v4  ;;  %v3568_v13 = vadd.f32 %v3567_v36, %v3483_v34  ;;  %v6601_v1 = vpop.permute.xlu1 %3384 }
 0x2d5   : > { %v6553_v24 = vpop.f32.mrf.mxu1  ;;  %v3491_v0 = vmul.f32 %v6547_v61, %v3171_v28  ;;  %7400 = vst [vmem:[#allocation54_spill] sm:$0xff] %v6601_v1  ;;  %v3492_v59 = vmul.f32 %v6547_v61, %v3172_v44 }
 0x2d6   : > { %v2720_v18 = vadd.f32 %v6553_v24, %v6434_v16  ;;  %v3051_v9 = vmul.f32 0.1, %v2718_v20  ;;  %v3175_v16 = vmax.f32 %v2712_v12, %v3047_v22  ;;  %v3176_v53 = vmax.f32 %v2714_v4, %v3048_v10  ;;  %v6605_v12 = vpop.permute.xlu0 %3389 }
 0x2d7   : > { %v2721_v37 = vpop.f32.mrf.mxu1  ;;  %7401 = vst [vmem:[#allocation55_spill] sm:$0xff] %v6605_v12 }
 0x2d8   : > { %v2722_v51 = vadd.f32 %v2721_v37, %v6436_v2  ;;  %v3052_v56 = vmul.f32 0.1, %v2720_v18  ;;  %v3488_v37 = vmul.f32 %v6543_v62, %v3168_v6  ;;  %v3179_v54 = vmax.f32 %v2718_v20, %v3051_v9 }
 0x2d9   : > { %v2723_v30 = vpop.f32.mrf.mxu1  ;;  %v3495_v57 = vmul.f32 %v6556_v29, %v3175_v16  ;;  %v3496_v60 = vmul.f32 %v6556_v29, %v3176_v53 }
 0x2da   : > { %v2724_v24 = vadd.f32 %v2723_v30, %v6436_v2  ;;  %v3055_v26 = vmul.f32 0.1, %v2722_v51  ;;  %v3180_v22 = vmax.f32 %v2720_v18, %v3052_v56  ;;  %v3606_v20 = vadd.f32 %v3605_v17, %v3488_v37  ;;  %v6618_v37 = vpop.permute.xlu0 %3394 }
 0x2db   : > { %v2727_v5 = vpop.f32.mrf.mxu1  ;;  %v3499_v36 = vmul.f32 %v6560_v25, %v3179_v54  ;;  %7402 = vst [vmem:[#allocation15_spill] sm:$0xff] %v6618_v37 }
 0x2dc   : > { %v2728_v42 = vadd.f32 %v2727_v5, %v6440_v48  ;;  %v3569_v5 = vadd.f32 %v3568_v13, %v3487_v32  ;;  %v3056_v15 = vmul.f32 0.1, %v2724_v24  ;;  %v3607_v32 = vadd.f32 %v3606_v20, %v3492_v59 }
 0x2dd   : > { %v2729_v21 = vpop.f32.mrf.mxu1 }
 0x2de   : > { %v2730_v33 = vadd.f32 %v2729_v21, %v6440_v48  ;;  %v3059_v34 = vmul.f32 0.1, %v2728_v42  ;;  %v3570_v28 = vadd.f32 %v3569_v5, %v3491_v0  ;;  %v3183_v21 = vmax.f32 %v2722_v51, %v3055_v26 }
 0x2df   : > { %v2731_v58 = vpop.f32.mrf.mxu1  ;;  %v3184_v44 = vmax.f32 %v2724_v24, %v3056_v15  ;;  %v3500_v51 = vmul.f32 %v6560_v25, %v3180_v22 }
 0x2e0   : > { %v2732_v30 = vadd.f32 %v2731_v58, %v6442_v31  ;;  %v3060_v10 = vmul.f32 0.1, %v2730_v33  ;;  %v3571_v18 = vadd.f32 %v3570_v28, %v3495_v57  ;;  %v3187_v23 = vmax.f32 %v2728_v42, %v3059_v34 }
 0x2e1   : > { %v2733_v55 = vpop.f32.mrf.mxu1  ;;  %v3503_v0 = vmul.f32 %v6573_v11, %v3183_v21  ;;  %v3504_v59 = vmul.f32 %v6573_v11, %v3184_v44  ;;  %v6633_v44 = vpop.permute.xlu0 %3399 }
 0x2e2   : > { %v2734_v6 = vadd.f32 %v2733_v55, %v6442_v31  ;;  %v3063_v9 = vmul.f32 0.1, %v2732_v30  ;;  %v6615_v55 = vpop.permute.xlu1 %2415  ;;  %v3572_v54 = vadd.f32 %v3571_v18, %v3499_v36  ;;  %v3507_v34 = vmul.f32 %v6575_v35, %v3187_v23  ;;  %7404 = vst [vmem:[#allocation12_spill] sm:$0xff] %v6633_v44 }
 0x2e3   : > { %v2737_v45 = vpop.f32.mrf.mxu1 }
 0x2e4   : > { %v2738_v58 = vadd.f32 %v2737_v45, %v6444_v43  ;;  %v3064_v45 = vmul.f32 0.1, %v2734_v6  ;;  %v3191_v17 = vmax.f32 %v2732_v30, %v3063_v9  ;;  %v3573_v21 = vadd.f32 %v3572_v54, %v3503_v0 }
 0x2e5   : > { %v2739_v49 = vpop.f32.mrf.mxu1 }
 0x2e6   : > { %v2740_v16 = vadd.f32 %v2739_v49, %v6444_v43  ;;  %v3067_v26 = vmul.f32 0.1, %v2738_v58  ;;  %v3608_v49 = vadd.f32 %v3607_v32, %v3496_v60  ;;  %v3192_v20 = vmax.f32 %v2734_v6, %v3064_v45 }
 0x2e7   : > { %v2741_v52 = vpop.f32.mrf.mxu1 }
 0x2e8   : > { %v2742_v56 = vadd.f32 %v2741_v52, %v6448_v40  ;;  %v3188_v52 = vmax.f32 %v2730_v33, %v3060_v10  ;;  %v3068_v15 = vmul.f32 0.1, %v2740_v16  ;;  %v3609_v22 = vadd.f32 %v3608_v49, %v3500_v51  ;;  %v6627_v33 = vpop.permute.xlu1 %2420 }
 0x2e9   : > { %v2743_v14 = vpop.f32.mrf.mxu1  ;;  %7403 = vst [vmem:[#allocation57_spill] sm:$0xff] %v6627_v33  ;;  %v3511_v10 = vmul.f32 %v6586_v8, %v3191_v17  ;;  %v3512_v45 = vmul.f32 %v6586_v8, %v3192_v20  ;;  %v7405_v17 = vld [vmem:[#allocation26_spill] sm:$0xff] }
 0x2ea   : > { %v2744_v53 = vadd.f32 %v2743_v14, %v6448_v40  ;;  %v3071_v42 = vmul.f32 0.1, %v2742_v56  ;;  %v3508_v30 = vmul.f32 %v6575_v35, %v3188_v52  ;;  %v3610_v6 = vadd.f32 %v3609_v22, %v3504_v59  ;;  %v7426_v35 = vld [vmem:[#allocation14_spill] sm:$0xff]  ;;  %v7427_v40 = vld [vmem:[#allocation53_spill] sm:$0xff] }
 0x2eb   : > { %v2747_v4 = vpop.f32.mrf.mxu1  ;;  %v3196_v18 = vmax.f32 %v2740_v16, %v3068_v15 }
 0x2ec   : > { %v2748_v24 = vadd.f32 %v2747_v4, %v6450_v46  ;;  %v3195_v4 = vmax.f32 %v2738_v58, %v3067_v26  ;;  %v3072_v60 = vmul.f32 0.1, %v2744_v53  ;;  %v3199_v51 = vmax.f32 %v2742_v56, %v3071_v42 }
 0x2ed   : > { %v2749_v3 = vpop.f32.mrf.mxu1  ;;  %v3574_v58 = vadd.f32 %v3573_v21, %v3507_v34  ;;  %v3516_v56 = vmul.f32 %v6591_v39, %v3196_v18  ;;  %v6642_v34 = vpop.permute.xlu1 %2425 }
 0x2ee   : > { %v2750_v57 = vadd.f32 %v2749_v3, %v6450_v46  ;;  %v3075_v36 = vmul.f32 0.1, %v2748_v24  ;;  %v3515_v49 = vmul.f32 %v6591_v39, %v3195_v4  ;;  %v3200_v54 = vmax.f32 %v2744_v53, %v3072_v60  ;;  %7406 = vst [vmem:[#allocation31_spill] sm:$0xff] %v6642_v34  ;;  %v6644_v4 = vpop.permute.xlu0 %3404  ;;  %v7424_v39 = vld [vmem:[#allocation18_spill] sm:$0xff] }
 0x2ef   : > { %v2751_v13 = vpop.f32.mrf.mxu1  ;;  %v3519_v15 = vmul.f32 %v6601_v1, %v3199_v51  ;;  %7407 = vst [vmem:[#allocation13_spill] sm:$0xff] %v6644_v4 }
 0x2f0   : > { %v2752_v28 = vadd.f32 %v2751_v13, %v6452_v7  ;;  %v3076_v23 = vmul.f32 0.1, %v2750_v57  ;;  %v3203_v52 = vmax.f32 %v2748_v24, %v3075_v36 }
 0x2f1   : > { %v2753_v5 = vpop.f32.mrf.mxu1 }
 0x2f2   : > { %v2754_v9 = vadd.f32 %v2753_v5, %v6452_v7  ;;  %v3079_v13 = vmul.f32 0.1, %v2752_v28  ;;  %v3575_v7 = vadd.f32 %v3574_v58, %v3511_v10  ;;  %v3204_v42 = vmax.f32 %v2750_v57, %v3076_v23 }
 0x2f3   : > { %v2757_v14 = vpop.f32.mrf.mxu1  ;;  %v3523_v10 = vmul.f32 %v6605_v12, %v3203_v52 }
 0x2f4   : > { %v2758_v3 = vadd.f32 %v2757_v14, %v6457_v47  ;;  %v3611_v14 = vadd.f32 %v3610_v6, %v3508_v30  ;;  %v3080_v46 = vmul.f32 0.1, %v2754_v9  ;;  %v3207_v20 = vmax.f32 %v2752_v28, %v3079_v13 }
 0x2f5   : > { %v2759_v32 = vpop.f32.mrf.mxu1  ;;  %v3576_v36 = vadd.f32 %v3575_v7, %v3515_v49  ;;  %v3520_v30 = vmul.f32 %v6601_v1, %v3200_v54  ;;  %v3524_v28 = vmul.f32 %v6605_v12, %v3204_v42 }
 0x2f6   : > { %v2760_v0 = vadd.f32 %v2759_v32, %v6457_v47  ;;  %v3083_v59 = vmul.f32 0.1, %v2758_v3  ;;  %v3612_v60 = vadd.f32 %v3611_v14, %v3512_v45  ;;  %v3208_v32 = vmax.f32 %v2754_v9, %v3080_v46 }
 0x2f7   : > { %v2761_v26 = vpop.f32.mrf.mxu1  ;;  %v3577_v58 = vadd.f32 %v3576_v36, %v3519_v15 }
 0x2f8   : > { %v2762_v5 = vadd.f32 %v2761_v26, %v7405_v17  ;;  %v3084_v21 = vmul.f32 0.1, %v2760_v0  ;;  %v3211_v6 = vmax.f32 %v2758_v3, %v3083_v59  ;;  %v3613_v23 = vadd.f32 %v3612_v60, %v3516_v56  ;;  %v6653_v3 = vpop.permute.xlu1 %2430 }
 0x2f9   : > { %v2763_v16 = vpop.f32.mrf.mxu1  ;;  %v3527_v26 = vmul.f32 %v6618_v37, %v3207_v20  ;;  %v3578_v52 = vadd.f32 %v3577_v58, %v3523_v10  ;;  %7408 = vst [vmem:[#allocation20_spill] sm:$0xff] %v6653_v3  ;;  %v3528_v59 = vmul.f32 %v6618_v37, %v3208_v32 }
 0x2fa   : > { %v2764_v22 = vadd.f32 %v2763_v16, %v7405_v17  ;;  %v3087_v53 = vmul.f32 0.1, %v2762_v5  ;;  %v3212_v45 = vmax.f32 %v2760_v0, %v3084_v21  ;;  %v3614_v14 = vadd.f32 %v3613_v23, %v3520_v30 }
 0x2fb   : > { %v2767_v24 = vpop.f32.mrf.mxu1  ;;  %v3531_v16 = vmul.f32 %v6633_v44, %v3211_v6  ;;  %v3579_v21 = vadd.f32 %v3578_v52, %v3527_v26 }
 0x2fc   : > { %v3088_v18 = vmul.f32 0.1, %v2764_v22  ;;  %v2768_v57 = vadd.f32 %v2767_v24, %v6615_v55  ;;  %v3215_v7 = vmax.f32 %v2762_v5, %v3087_v53  ;;  %v6657_v24 = vpop.permute.xlu0 %3409  ;;  %v3615_v20 = vadd.f32 %v3614_v14, %v3524_v28  ;;  %v6665_v26 = vpop.permute.xlu1 %3414 }
 0x2fd   : > { %v2769_v51 = vpop.f32.mrf.mxu1  ;;  %7409 = vst [vmem:[#allocation10_spill] sm:$0xff] %v6657_v24  ;;  %v3532_v53 = vmul.f32 %v6633_v44, %v3212_v45  ;;  %7410 = vst [vmem:[#allocation11_spill] sm:$0xff] %v6665_v26 }
 0x2fe   : > { %v2770_v13 = vadd.f32 %v2769_v51, %v6615_v55  ;;  %v3091_v49 = vmul.f32 0.1, %v2768_v57  ;;  %v3216_v56 = vmax.f32 %v2764_v22, %v3088_v18  ;;  %v3535_v60 = vmul.f32 %v6644_v4, %v3215_v7 }
 0x2ff   : > { %v2771_v54 = vpop.f32.mrf.mxu1  ;;  %v3616_v22 = vadd.f32 %v3615_v20, %v3528_v59  ;;  %v3580_v18 = vadd.f32 %v3579_v21, %v3531_v16 }
 0x300   : > { %v3092_v46 = vmul.f32 0.1, %v2770_v13  ;;  %v2772_v9 = vadd.f32 %v2771_v54, %v6627_v33  ;;  %v3219_v15 = vmax.f32 %v2768_v57, %v3091_v49  ;;  %v3536_v57 = vmul.f32 %v6644_v4, %v3216_v56  ;;  %v6668_v54 = vpop.permute.xlu0 %3419 }
 0x301   : > { %v2773_v42 = vpop.f32.mrf.mxu1  ;;  %v3617_v45 = vadd.f32 %v3616_v22, %v3532_v53  ;;  %v3581_v49 = vadd.f32 %v3580_v18, %v3535_v60  ;;  %7411 = vst [vmem:[#allocation7_spill] sm:$0xff] %v6668_v54 }
 0x302   : > { %v3095_v0 = vmul.f32 0.1, %v2772_v9  ;;  %v2774_v5 = vadd.f32 %v2773_v42, %v6627_v33  ;;  %v3220_v30 = vmax.f32 %v2770_v13, %v3092_v46  ;;  %v3539_v51 = vmul.f32 %v6657_v24, %v3219_v15 }
 0x303   : > { %v2777_v36 = vpop.f32.mrf.mxu1  ;;  %v3618_v59 = vadd.f32 %v3617_v45, %v3536_v57 }
 0x304   : > { %v3223_v10 = vmax.f32 %v2772_v9, %v3095_v0  ;;  %v3096_v32 = vmul.f32 0.1, %v2774_v5  ;;  %v2778_v6 = vadd.f32 %v2777_v36, %v6642_v34  ;;  %v3540_v14 = vmul.f32 %v6657_v24, %v3220_v30 }
 0x305   : > { %v2779_v23 = vpop.f32.mrf.mxu1  ;;  %v3582_v16 = vadd.f32 %v3581_v49, %v3539_v51 }
 0x306   : > { %v3224_v58 = vmax.f32 %v2774_v5, %v3096_v32  ;;  %v3099_v28 = vmul.f32 0.1, %v2778_v6  ;;  %v2780_v7 = vadd.f32 %v2779_v23, %v6642_v34  ;;  %v3543_v52 = vmul.f32 %v6665_v26, %v3223_v10 }
 0x307   : > { %v2781_v13 = vpop.f32.mrf.mxu1  ;;  %v3619_v36 = vadd.f32 %v3618_v59, %v3540_v14 }
 0x308   : > { %v3227_v46 = vmax.f32 %v2778_v6, %v3099_v28  ;;  %v2782_v9 = vadd.f32 %v2781_v13, %v6653_v3  ;;  %v3100_v56 = vmul.f32 0.1, %v2780_v7  ;;  %v3544_v0 = vmul.f32 %v6665_v26, %v3224_v58  ;;  %v6676_v6 = vpop.permute.xlu1 %3424 }
 0x309   : > { %v2783_v15 = vpop.f32.mrf.mxu1  ;;  %v2820_v42 = vpop.f32.mrf.mxu0  ;;  %v3583_v30 = vadd.f32 %v3582_v16, %v3543_v52  ;;  %7412 = vst [vmem:[#allocation39_spill] sm:$0xff] %v6676_v6 }
 0x30a   : > { %v3547_v5 = vmul.f32 %v6668_v54, %v3227_v46  ;;  %v3103_v20 = vmul.f32 0.1, %v2782_v9  ;;  %v2784_v21 = vadd.f32 %v2783_v15, %v6653_v3  ;;  %v3228_v53 = vmax.f32 %v2780_v7, %v3100_v56 }
 0x30b   : > { %v2822_v60 = vpop.f32.mrf.mxu0  ;;  %v3620_v57 = vadd.f32 %v3619_v36, %v3544_v0  ;;  %v7104_v0 = vlaneseq }
 0x30c   : > { %v3231_v10 = vmax.f32 %v2782_v9, %v3103_v20  ;;  %v3104_v32 = vmul.f32 0.1, %v2784_v21  ;;  %v3548_v22 = vmul.f32 %v6668_v54, %v3228_v53  ;;  %v3584_v51 = vadd.f32 %v3583_v30, %v3547_v5  ;;  %v7419_v54 = vld [vmem:[#allocation47_spill] sm:$0xff] }
 0x30d   : > { %v2824_v18 = vpop.f32.mrf.mxu0  ;;  %v6682_v30 = vshrl.u32 %v7104_v0, 7 }
 0x30e   : > { %v3551_v23 = vmul.f32 %v6676_v6, %v3231_v10  ;;  %v3232_v58 = vmax.f32 %v2784_v21, %v3104_v32  ;;  %v3621_v45 = vadd.f32 %v3620_v57, %v3548_v22 }
 0x30f   : > { %v2826_v28 = vpop.f32.mrf.mxu0  ;;  %7413 = vst [vmem:[#allocation23_spill] sm:$0xff] %v6682_v30 }
 0x310   : > { %v3585_v49 = vadd.f32 %v3584_v51, %v3551_v23  ;;  %v3552_v7 = vmul.f32 %v6676_v6, %v3232_v58  ;;  %v3711_v51 = vsub.s32 0, %v6682_v30  ;;  %v2960_v30 = vpop.f32.mrf.mxu1 }
 0x311   : > { %v2830_v13 = vpop.f32.mrf.mxu0 }
 0x312   : > { %v3586_v14 = vrot.slane %v3585_v49, 4  ;;  %v3622_v52 = vadd.f32 %v3621_v45, %v3552_v7  ;;  %v3707_v45 = vpop.permute.xlu0 %3706  ;;  %v2831_v26 = vadd.f32 %v2830_v13, %v7419_v54  ;;  %v7422_v13 = vld [vmem:[#allocation43_spill] sm:$0xff] }
 0x313   : > { %v2832_v46 = vpop.f32.mrf.mxu0 }
 0x314   : > { %v3623_v9 = vrot.slane %v3622_v52, 4  ;;  %v3587_v59 = vadd.f32 %v3586_v14, %v3585_v49  ;;  %v6685_v14 = vrot.slane %v3707_v45, %v3711_v51  ;;  %v7417_v51 = vld [vmem:[#allocation50_spill] sm:$0xff]  ;;  %v2989_v17 = vmul.f32 0.1, %v2831_v26 }
 0x315   : > { %v2834_v16 = vpop.f32.mrf.mxu0 }
 0x316   : > { %v3624_v56 = vadd.f32 %v3623_v9, %v3622_v52  ;;  %v3588_v5 = vrot.slane %v3587_v59, 2  ;;  %7414 = vst [vmem:[#allocation9_spill] sm:$0xff] %v6685_v14 }
 0x317   : > { %v2836_v15 = vpop.f32.mrf.mxu0 }
 0x318   : > { %v3625_v20 = vrot.slane %v3624_v56, 2  ;;  %v3589_v10 = vadd.f32 %v3588_v5, %v3587_v59 }
 0x319   : > { %v2840_v53 = vpop.f32.mrf.mxu0 }
 0x31a   : > { %v3626_v36 = vadd.f32 %v3625_v20, %v3624_v56  ;;  %v3590_v23 = vrot.slane %v3589_v10, 1 }
 0x31b   : > { %v2842_v21 = vpop.f32.mrf.mxu0 }
 0x31c   : > { %v3627_v22 = vrot.slane %v3626_v36, 1  ;;  %v3591_v52 = vadd.f32 %v3590_v23, %v3589_v10  ;;  %v2821_v10 = vadd.f32 %v2820_v42, %v7417_v51  ;;  %v7418_v23 = vld [vmem:[#allocation52_spill] sm:$0xff]  ;;  %v2833_v42 = vadd.f32 %v2832_v46, %v7419_v54 }
 0x31d   : > { %v2844_v32 = vpop.f32.mrf.mxu0  ;;  %v2825_v45 = vadd.f32 %v2824_v18, %v7418_v23  ;;  %v2827_v6 = vadd.f32 %v2826_v28, %v7418_v23  ;;  %v7421_v18 = vld [vmem:[#allocation48_spill] sm:$0xff]  ;;  %v2962_v23 = vpop.f32.mrf.mxu1 }
 0x31e   : > { %v3628_v49 = vadd.f32 %v3627_v22, %v3626_v36  ;;  %v6693_v59 = vadd.f32 %v6685_v14, %v3591_v52  ;;  %v2981_v24 = vmul.f32 0.1, %v2821_v10  ;;  %v2990_v54 = vmul.f32 0.1, %v2833_v42 }
 0x31f   : > { %v2846_v57 = vpop.f32.mrf.mxu0  ;;  %v2985_v4 = vmul.f32 0.1, %v2825_v45  ;;  %v2986_v44 = vmul.f32 0.1, %v2827_v6  ;;  %v6730_v47 = vadd.f32 %v2962_v23, %v6615_v55  ;;  %v2845_v8 = vadd.f32 %v2844_v32, %v7424_v39  ;;  %v7429_v23 = vld [vmem:[#allocation21_spill] sm:$0xff] }
 0x320   : > { %v6688_v56 = vadd.f32 %v6685_v14, %v3628_v49  ;;  %7416 = vst [vmem:[#allocation8_spill] sm:$0xff] %v6693_v59  ;;  %v2823_v14 = vadd.f32 %v2822_v60, %v7417_v51  ;;  %v2835_v59 = vadd.f32 %v2834_v16, %v7421_v18  ;;  %v2837_v60 = vadd.f32 %v2836_v15, %v7421_v18 }
 0x321   : > { %v2850_v58 = vpop.f32.mrf.mxu0  ;;  %v2841_v51 = vadd.f32 %v2840_v53, %v7422_v13  ;;  %v3109_v37 = vmax.f32 %v2821_v10, %v2981_v24  ;;  %v3113_v34 = vmax.f32 %v2825_v45, %v2985_v4  ;;  %v2843_v16 = vadd.f32 %v2842_v21, %v7422_v13  ;;  %v7425_v45 = vld [vmem:[#allocation34_spill] sm:$0xff] }
 0x322   : > { %7415 = vst [vmem:[#allocation6_spill] sm:$0xff] %v6688_v56  ;;  %v6715_v56 = vadd.f32 %v2960_v30, %v6615_v55  ;;  %v2982_v28 = vmul.f32 0.1, %v2823_v14  ;;  %v2993_v46 = vmul.f32 0.1, %v2835_v59  ;;  %v3114_v1 = vmax.f32 %v2827_v6, %v2986_v44 }
 0x323   : > { %v2852_v7 = vpop.f32.mrf.mxu0  ;;  %v3117_v24 = vmax.f32 %v2831_v26, %v2989_v17  ;;  %v2994_v4 = vmul.f32 0.1, %v2837_v60  ;;  %v2997_v10 = vmul.f32 0.1, %v2841_v51  ;;  %v3429_v18 = vmul.f32 %v7425_v45, %v3109_v37 }
 0x324   : > { %7420 = vst [vmem:[#allocation50_spill] sm:$0xff] %v6715_v56  ;;  %v6726_v30 = vmul.f32 0.1, %v6715_v56  ;;  %v3110_v53 = vmax.f32 %v2823_v14, %v2982_v28  ;;  %v3433_v33 = vmul.f32 %v7426_v35, %v3113_v34  ;;  %v2847_v11 = vadd.f32 %v2846_v57, %v7424_v39  ;;  %v7428_v39 = vld [vmem:[#allocation32_spill] sm:$0xff] }
 0x325   : > { %v2854_v9 = vpop.f32.mrf.mxu0  ;;  %v2851_v21 = vadd.f32 %v2850_v58, %v7427_v40  ;;  %v3118_v44 = vmax.f32 %v2833_v42, %v2990_v54  ;;  %v3121_v6 = vmax.f32 %v2835_v59, %v2993_v46  ;;  %v2998_v32 = vmul.f32 0.1, %v2843_v16 }
 0x326   : > { %7423 = vst [vmem:[#allocation52_spill] sm:$0xff] %v6726_v30  ;;  %v6744_v17 = vmul.f32 0.1, %v6730_v47  ;;  %v3434_v26 = vmul.f32 %v7426_v35, %v3114_v1  ;;  %v3001_v37 = vmul.f32 0.1, %v2845_v8  ;;  %v2853_v34 = vadd.f32 %v2852_v7, %v7427_v40  ;;  %v7430_v1 = vld [vmem:[#allocation56_spill] sm:$0xff] }
 0x327   : > { %v6690_v20 = vpop.f32.mrf.mxu0  ;;  %v3437_v57 = vmul.f32 %v7428_v39, %v3117_v24  ;;  %v3122_v58 = vmax.f32 %v2837_v60, %v2994_v4  ;;  %v3125_v28 = vmax.f32 %v2841_v51, %v2997_v10  ;;  %v2855_v25 = vadd.f32 %v2854_v9, %v7429_v23  ;;  %v7431_v4 = vld [vmem:[#allocation36_spill] sm:$0xff] }
 0x328   : > { %v3430_v42 = vmul.f32 %v7425_v45, %v3110_v53  ;;  %v3629_v59 = vadd.f32 %v3433_v33, %v3429_v18  ;;  %v3002_v54 = vmul.f32 0.1, %v2847_v11  ;;  %v3005_v46 = vmul.f32 0.1, %v2851_v21  ;;  %v7432_v45 = vld [vmem:[#allocation30_spill] sm:$0xff] }
 0x329   : > { %v6695_v5 = vpop.f32.mrf.mxu0  ;;  %v3438_v35 = vmul.f32 %v7428_v39, %v3118_v44  ;;  %v3441_v30 = vmul.f32 %v7430_v1, %v3121_v6  ;;  %v3126_v40 = vmax.f32 %v2843_v16, %v2998_v32  ;;  %v2857_v7 = vadd.f32 %v6690_v20, %v7429_v23  ;;  %v7433_v6 = vld [vmem:[#allocation42_spill] sm:$0xff] }
 0x32a   : > { %v3666_v24 = vadd.f32 %v3434_v26, %v3430_v42  ;;  %v3129_v60 = vmax.f32 %v2845_v8, %v3001_v37  ;;  %v3006_v51 = vmul.f32 0.1, %v2853_v34  ;;  %v2861_v9 = vadd.f32 %v6695_v5, %v7431_v4 }
 0x32b   : > { %v6697_v0 = vpop.f32.mrf.mxu0  ;;  %v3630_v33 = vadd.f32 %v3629_v59, %v3437_v57  ;;  %v3442_v10 = vmul.f32 %v7430_v1, %v3122_v58  ;;  %v3445_v18 = vmul.f32 %v7432_v45, %v3125_v28  ;;  %v3009_v56 = vmul.f32 0.1, %v2855_v25  ;;  %v7434_v57 = vld [vmem:[#allocation35_spill] sm:$0xff] }
 0x32c   : > { %v3130_v44 = vmax.f32 %v2847_v11, %v3002_v54  ;;  %v3133_v39 = vmax.f32 %v2851_v21, %v3005_v46  ;;  %v2863_v16 = vadd.f32 %v6697_v0, %v7431_v4  ;;  %v3667_v32 = vadd.f32 %v3666_v24, %v3438_v35  ;;  %v7435_v54 = vld [vmem:[#allocation41_spill] sm:$0xff] }
 0x32d   : > { %v6701_v22 = vpop.f32.mrf.mxu0  ;;  %v3631_v26 = vadd.f32 %v3630_v33, %v3441_v30  ;;  %v3446_v5 = vmul.f32 %v7432_v45, %v3126_v40  ;;  %v3010_v37 = vmul.f32 0.1, %v2857_v7  ;;  %v3449_v23 = vmul.f32 %v7434_v57, %v3129_v60  ;;  %v7436_v30 = vld [vmem:[#allocation17_spill] sm:$0xff] }
 0x32e   : > { %v2865_v20 = vadd.f32 %v6701_v22, %v7433_v6  ;;  %v3134_v58 = vmax.f32 %v2853_v34, %v3006_v51  ;;  %v3013_v42 = vmul.f32 0.1, %v2861_v9  ;;  %v3668_v28 = vadd.f32 %v3667_v32, %v3442_v10  ;;  %v7438_v45 = vld [vmem:[#allocation33_spill] sm:$0xff] }
 0x32f   : > { %v6705_v49 = vpop.f32.mrf.mxu0  ;;  %v3632_v59 = vadd.f32 %v3631_v26, %v3445_v18  ;;  %v3137_v0 = vmax.f32 %v2855_v25, %v3009_v56  ;;  %v3450_v46 = vmul.f32 %v7434_v57, %v3130_v44  ;;  %v3453_v35 = vmul.f32 %v7436_v30, %v3133_v39 }
 0x330   : > { %v2867_v11 = vadd.f32 %v6705_v49, %v7433_v6  ;;  %v3014_v1 = vmul.f32 0.1, %v2863_v16  ;;  %v3017_v40 = vmul.f32 0.1, %v2865_v20  ;;  %v3669_v60 = vadd.f32 %v3668_v28, %v3446_v5  ;;  %v7437_v49 = vld [vmem:[#allocation51_spill] sm:$0xff]  ;;  %v7439_v6 = vld [vmem:[#allocation29_spill] sm:$0xff] }
 0x331   : > { %v6708_v52 = vpop.f32.mrf.mxu0  ;;  %v3138_v34 = vmax.f32 %v2857_v7, %v3010_v37  ;;  %v3633_v33 = vadd.f32 %v3632_v59, %v3449_v23  ;;  %v3454_v25 = vmul.f32 %v7436_v30, %v3134_v58  ;;  %v3141_v56 = vmax.f32 %v2861_v9, %v3013_v42  ;;  %v7440_v42 = vld [vmem:[#allocation49_spill] sm:$0xff] }
 0x332   : > { %v2871_v22 = vadd.f32 %v6708_v52, %v7435_v54  ;;  %v3018_v52 = vmul.f32 0.1, %v2867_v11  ;;  %v3457_v18 = vmul.f32 %v7438_v45, %v3137_v0  ;;  %v3670_v32 = vadd.f32 %v3669_v60, %v3450_v46 }
 0x333   : > { %v6712_v36 = vpop.f32.mrf.mxu0  ;;  %v3142_v26 = vmax.f32 %v2863_v16, %v3014_v1  ;;  %v3145_v5 = vmax.f32 %v2865_v20, %v3017_v40  ;;  %v3458_v37 = vmul.f32 %v7438_v45, %v3138_v34  ;;  %v3461_v28 = vmul.f32 %v7440_v42, %v3141_v56  ;;  %v7443_v45 = vld [vmem:[#allocation58_spill] sm:$0xff] }
 0x334   : > { %v2873_v51 = vadd.f32 %v6712_v36, %v7435_v54  ;;  %v3021_v44 = vmul.f32 0.1, %v2871_v22  ;;  %v3634_v36 = vadd.f32 %v3633_v33, %v3453_v35  ;;  %v3671_v58 = vadd.f32 %v3670_v32, %v3454_v25  ;;  %v7442_v35 = vld [vmem:[#allocation59_spill] sm:$0xff]  ;;  %v7444_v32 = vld [vmem:[#allocation45_spill] sm:$0xff] }
 0x335   : > { %v6719_v3 = vpop.f32.mrf.mxu0  ;;  %v3146_v59 = vmax.f32 %v2867_v11, %v3018_v52  ;;  %v3462_v30 = vmul.f32 %v7440_v42, %v3142_v26  ;;  %v3465_v1 = vmul.f32 %v7442_v35, %v3145_v5 }
 0x336   : > { %v2875_v4 = vadd.f32 %v6719_v3, %v7437_v49  ;;  %v3022_v57 = vmul.f32 0.1, %v2873_v51  ;;  %v3635_v54 = vadd.f32 %v3634_v36, %v3457_v18  ;;  %v3149_v46 = vmax.f32 %v2871_v22, %v3021_v44 }
 0x337   : > { %v6723_v12 = vpop.f32.mrf.mxu0  ;;  %v3672_v34 = vadd.f32 %v3671_v58, %v3458_v37  ;;  %v3466_v25 = vmul.f32 %v7442_v35, %v3146_v59 }
 0x338   : > { %v2877_v39 = vadd.f32 %v6723_v12, %v7437_v49  ;;  %v3025_v9 = vmul.f32 0.1, %v2875_v4  ;;  %v7441_v12 = vld [vmem:[#allocation25_spill] sm:$0xff]  ;;  %v3150_v11 = vmax.f32 %v2873_v51, %v3022_v57  ;;  %v3469_v18 = vmul.f32 %v7443_v45, %v3149_v46 }
 0x339   : > { %v6733_v15 = vpop.f32.mrf.mxu0  ;;  %v3673_v36 = vadd.f32 %v3672_v34, %v3462_v30 }
 0x33a   : > { %v2881_v7 = vadd.f32 %v6733_v15, %v7439_v6  ;;  %v3026_v16 = vmul.f32 0.1, %v2877_v39  ;;  %v3153_v49 = vmax.f32 %v2875_v4, %v3025_v9  ;;  %v3470_v4 = vmul.f32 %v7443_v45, %v3150_v11 }
 0x33b   : > { %v6739_v13 = vpop.f32.mrf.mxu0 }
 0x33c   : > { %v2883_v23 = vadd.f32 %v6739_v13, %v7439_v6  ;;  %v3029_v20 = vmul.f32 0.1, %v2881_v7  ;;  %v3154_v44 = vmax.f32 %v2877_v39, %v3026_v16  ;;  %v3473_v37 = vmul.f32 %v6529_v27, %v3153_v49 }
 0x33d   : > { %v6748_v14 = vpop.f32.mrf.mxu0 }
 0x33e   : > { %v2885_v0 = vadd.f32 %v6748_v14, %v7441_v12  ;;  %v3030_v33 = vmul.f32 0.1, %v2883_v23  ;;  %v3636_v14 = vadd.f32 %v3635_v54, %v3461_v28  ;;  %v3157_v6 = vmax.f32 %v2881_v7, %v3029_v20 }
 0x33f   : > { %v6753_v55 = vpop.f32.mrf.mxu0 }
 0x340   : > { %v2887_v40 = vadd.f32 %v6753_v55, %v7441_v12  ;;  %v3033_v22 = vmul.f32 0.1, %v2885_v0  ;;  %v3158_v57 = vmax.f32 %v2883_v23, %v3030_v33  ;;  %v3477_v28 = vmul.f32 %v6531_v50, %v3157_v6  ;;  %v7446_v33 = vld [vmem:[#allocation44_spill] sm:$0xff] }
 0x341   : > { %v2890_v53 = vpop.f32.mrf.mxu0 }
 0x342   : > { %v2891_v13 = vadd.f32 %v2890_v53, %v6422_v19  ;;  %v3637_v53 = vadd.f32 %v3636_v14, %v3465_v1  ;;  %v3034_v26 = vmul.f32 0.1, %v2887_v40 }
 0x343   : > { %v2892_v8 = vpop.f32.mrf.mxu0 }
 0x344   : > { %v2893_v56 = vadd.f32 %v2892_v8, %v6422_v19  ;;  %v3037_v5 = vmul.f32 0.1, %v2891_v13  ;;  %v3674_v19 = vadd.f32 %v3673_v36, %v3466_v25  ;;  %v3161_v8 = vmax.f32 %v2885_v0, %v3033_v22 }
 0x345   : > { %v2894_v21 = vpop.f32.mrf.mxu0  ;;  %v3638_v42 = vadd.f32 %v3637_v53, %v3469_v18  ;;  %v3162_v12 = vmax.f32 %v2887_v40, %v3034_v26  ;;  %v3478_v0 = vmul.f32 %v6531_v50, %v3158_v57 }
 0x346   : > { %v2895_v55 = vadd.f32 %v2894_v21, %v7444_v32  ;;  %v3038_v58 = vmul.f32 0.1, %v2893_v56  ;;  %v3474_v21 = vmul.f32 %v6529_v27, %v3154_v44  ;;  %v3165_v54 = vmax.f32 %v2891_v13, %v3037_v5 }
 0x347   : > { %v2896_v24 = vpop.f32.mrf.mxu0  ;;  %v3639_v20 = vadd.f32 %v3638_v42, %v3473_v37  ;;  %v2964_v42 = vpop.f32.mrf.mxu1 }
 0x348   : > { %v2897_v9 = vadd.f32 %v2896_v24, %v7444_v32  ;;  %v3041_v59 = vmul.f32 0.1, %v2895_v55  ;;  %v3675_v24 = vadd.f32 %v3674_v19, %v3470_v4  ;;  %v3166_v1 = vmax.f32 %v2893_v56, %v3038_v58 }
 0x349   : > { %v2900_v10 = vpop.f32.mrf.mxu0  ;;  %v3640_v40 = vadd.f32 %v3639_v20, %v3477_v28 }
 0x34a   : > { %v2901_v39 = vadd.f32 %v2900_v10, %v6428_v63  ;;  %v3042_v30 = vmul.f32 0.1, %v2897_v9  ;;  %v7445_v10 = vld [vmem:[#allocation19_spill] sm:$0xff]  ;;  %v3676_v49 = vadd.f32 %v3675_v24, %v3474_v21  ;;  %v3169_v13 = vmax.f32 %v2895_v55, %v3041_v59 }
 0x34b   : > { %v2902_v3 = vpop.f32.mrf.mxu0  ;;  %v3481_v35 = vmul.f32 %v7445_v10, %v3161_v8 }
 0x34c   : > { %v2903_v46 = vadd.f32 %v2902_v3, %v6428_v63  ;;  %v3045_v34 = vmul.f32 0.1, %v2901_v39  ;;  %v3482_v3 = vmul.f32 %v7445_v10, %v3162_v12  ;;  %v3677_v22 = vadd.f32 %v3676_v49, %v3478_v0 }
 0x34d   : > { %v2904_v15 = vpop.f32.mrf.mxu0  ;;  %v3170_v45 = vmax.f32 %v2897_v9, %v3042_v30 }
 0x34e   : > { %v2905_v23 = vadd.f32 %v2904_v15, %v6430_v41  ;;  %v3485_v15 = vmul.f32 %v6537_v38, %v3165_v54  ;;  %v3046_v14 = vmul.f32 0.1, %v2903_v46  ;;  %v3173_v44 = vmax.f32 %v2901_v39, %v3045_v34 }
 0x34f   : > { %v2906_v60 = vpop.f32.mrf.mxu0  ;;  %v3678_v26 = vadd.f32 %v3677_v22, %v3482_v3  ;;  %v3490_v57 = vmul.f32 %v6543_v62, %v3170_v45  ;;  %v7450_v45 = vld [vmem:[#allocation57_spill] sm:$0xff] }
 0x350   : > { %v2907_v27 = vadd.f32 %v2906_v60, %v6430_v41  ;;  %v3049_v25 = vmul.f32 0.1, %v2905_v23  ;;  %v3641_v41 = vadd.f32 %v3640_v40, %v3481_v35  ;;  %v3486_v60 = vmul.f32 %v6537_v38, %v3166_v1  ;;  %v7448_v40 = vld [vmem:[#allocation38_spill] sm:$0xff] }
 0x351   : > { %v2910_v52 = vpop.f32.mrf.mxu0  ;;  %v3174_v4 = vmax.f32 %v2903_v46, %v3046_v14  ;;  %v3493_v58 = vmul.f32 %v6547_v61, %v3173_v44 }
 0x352   : > { %v2911_v63 = vadd.f32 %v2910_v52, %v7446_v33  ;;  %v3050_v6 = vmul.f32 0.1, %v2907_v27  ;;  %v3489_v52 = vmul.f32 %v6543_v62, %v3169_v13  ;;  %v3642_v5 = vadd.f32 %v3641_v41, %v3485_v15 }
 0x353   : > { %v2912_v51 = vpop.f32.mrf.mxu0  ;;  %v3177_v37 = vmax.f32 %v2905_v23, %v3049_v25  ;;  %v3679_v8 = vadd.f32 %v3678_v26, %v3486_v60  ;;  %v3494_v54 = vmul.f32 %v6547_v61, %v3174_v4  ;;  %v7447_v61 = vld [vmem:[#allocation46_spill] sm:$0xff] }
 0x354   : > { %v2913_v56 = vadd.f32 %v2912_v51, %v7446_v33  ;;  %v3053_v55 = vmul.f32 0.1, %v2911_v63  ;;  %v3178_v39 = vmax.f32 %v2907_v27, %v3050_v6  ;;  %v3643_v21 = vadd.f32 %v3642_v5, %v3489_v52  ;;  %v6830_v27 = vpop.f32.mrf.mxu1 }
 0x355   : > { %v2914_v7 = vpop.f32.mrf.mxu0  ;;  %v3497_v62 = vmul.f32 %v6556_v29, %v3177_v37  ;;  %v7452_v37 = vld [vmem:[#allocation27_spill] sm:$0xff] }
 0x356   : > { %v2915_v18 = vadd.f32 %v2914_v7, %v6436_v2  ;;  %v3054_v9 = vmul.f32 0.1, %v2913_v56  ;;  %v3181_v28 = vmax.f32 %v2911_v63, %v3053_v55  ;;  %v3644_v30 = vadd.f32 %v3643_v21, %v3493_v58  ;;  %v2970_v6 = vpop.f32.mrf.mxu1  ;;  %v7453_v58 = vld [vmem:[#allocation22_spill] sm:$0xff] }
 0x357   : > { %v2916_v16 = vpop.f32.mrf.mxu0  ;;  %v3498_v10 = vmul.f32 %v6556_v29, %v3178_v39  ;;  %v7449_v29 = vld [vmem:[#allocation16_spill] sm:$0xff] }
 0x358   : > { %v2917_v36 = vadd.f32 %v2916_v16, %v6436_v2  ;;  %v3057_v19 = vmul.f32 0.1, %v2915_v18  ;;  %v3680_v16 = vadd.f32 %v3679_v8, %v3490_v57  ;;  %v3182_v24 = vmax.f32 %v2913_v56, %v3054_v9 }
 0x359   : > { %v2920_v11 = vpop.f32.mrf.mxu0  ;;  %v3645_v63 = vadd.f32 %v3644_v30, %v3497_v62  ;;  %v6838_v56 = vadd.f32 %v2964_v42, %v7450_v45  ;;  %v7454_v62 = vld [vmem:[#allocation40_spill] sm:$0xff]  ;;  %v3222_v30 = vmax.f32 %v6730_v47, %v6744_v17 }
 0x35a   : > { %v2921_v53 = vadd.f32 %v2920_v11, %v6440_v48  ;;  %v3058_v59 = vmul.f32 0.1, %v2917_v36  ;;  %v3185_v20 = vmax.f32 %v2915_v18, %v3057_v19  ;;  %v3501_v11 = vmul.f32 %v7447_v61, %v3181_v28  ;;  %v2972_v28 = vpop.f32.mrf.mxu1 }
 0x35b   : > { %v2922_v50 = vpop.f32.mrf.mxu0  ;;  %v3681_v33 = vadd.f32 %v3680_v16, %v3494_v54  ;;  %v3502_v25 = vmul.f32 %v7447_v61, %v3182_v24 }
 0x35c   : > { %v2923_v38 = vadd.f32 %v2922_v50, %v6440_v48  ;;  %v3061_v12 = vmul.f32 0.1, %v2921_v53  ;;  %v3186_v49 = vmax.f32 %v2917_v36, %v3058_v59  ;;  %v3505_v50 = vmul.f32 %v7449_v29, %v3185_v20  ;;  %v7451_v36 = vld [vmem:[#allocation37_spill] sm:$0xff] }
 0x35d   : > { %v2924_v32 = vpop.f32.mrf.mxu0  ;;  %v3646_v52 = vadd.f32 %v3645_v63, %v3501_v11 }
 0x35e   : > { %v2925_v7 = vadd.f32 %v2924_v32, %v6442_v31  ;;  %v3062_v0 = vmul.f32 0.1, %v2923_v38  ;;  %v3682_v32 = vadd.f32 %v3681_v33, %v3498_v10  ;;  %v3506_v55 = vmul.f32 %v7449_v29, %v3186_v49  ;;  %v7456_v49 = vld [vmem:[#allocation54_spill] sm:$0xff] }
 0x35f   : > { %v2926_v51 = vpop.f32.mrf.mxu0  ;;  %v3647_v19 = vadd.f32 %v3646_v52, %v3505_v50  ;;  %v6852_v10 = vmul.f32 0.1, %v6838_v56 }
 0x360   : > { %v2927_v46 = vadd.f32 %v2926_v51, %v6442_v31  ;;  %v3065_v35 = vmul.f32 0.1, %v2925_v7  ;;  %v3189_v31 = vmax.f32 %v2921_v53, %v3061_v12  ;;  %v3190_v22 = vmax.f32 %v2923_v38, %v3062_v0 }
 0x361   : > { %v2930_v2 = vpop.f32.mrf.mxu0  ;;  %v3683_v9 = vadd.f32 %v3682_v32, %v3502_v25 }
 0x362   : > { %v2931_v48 = vadd.f32 %v2930_v2, %v6444_v43  ;;  %v3066_v3 = vmul.f32 0.1, %v2927_v46  ;;  %v3193_v18 = vmax.f32 %v2925_v7, %v3065_v35  ;;  %v3509_v53 = vmul.f32 %v7451_v36, %v3189_v31 }
 0x363   : > { %v2932_v23 = vpop.f32.mrf.mxu0  ;;  %v3510_v38 = vmul.f32 %v7451_v36, %v3190_v22  ;;  %v3684_v59 = vadd.f32 %v3683_v9, %v3506_v55  ;;  %v7458_v22 = vld [vmem:[#allocation55_spill] sm:$0xff] }
 0x364   : > { %v2933_v1 = vadd.f32 %v2932_v23, %v6444_v43  ;;  %v3069_v15 = vmul.f32 0.1, %v2931_v48  ;;  %v3194_v26 = vmax.f32 %v2927_v46, %v3066_v3  ;;  %v3513_v39 = vmul.f32 %v7453_v58, %v3193_v18  ;;  %v7455_v23 = vld [vmem:[#allocation24_spill] sm:$0xff] }
 0x365   : > { %v2934_v34 = vpop.f32.mrf.mxu0  ;;  %v3648_v12 = vadd.f32 %v3647_v19, %v3509_v53  ;;  %v7461_v19 = vld [vmem:[#allocation26_spill] sm:$0xff] }
 0x366   : > { %v2935_v13 = vadd.f32 %v2934_v34, %v7448_v40  ;;  %v3070_v41 = vmul.f32 0.1, %v2933_v1  ;;  %v3197_v5 = vmax.f32 %v2931_v48, %v3069_v15  ;;  %v3514_v48 = vmul.f32 %v7453_v58, %v3194_v26  ;;  %v7457_v15 = vld [vmem:[#allocation28_spill] sm:$0xff] }
 0x367   : > { %v2936_v14 = vpop.f32.mrf.mxu0  ;;  %v3685_v34 = vadd.f32 %v3684_v59, %v3510_v38  ;;  %v3649_v61 = vadd.f32 %v3648_v12, %v3513_v39 }
 0x368   : > { %v2937_v43 = vadd.f32 %v2936_v14, %v7448_v40  ;;  %v3073_v60 = vmul.f32 0.1, %v2935_v13  ;;  %v3198_v7 = vmax.f32 %v2933_v1, %v3070_v41  ;;  %v3517_v16 = vmul.f32 %v7455_v23, %v3197_v5 }
 0x369   : > { %v2940_v44 = vpop.f32.mrf.mxu0  ;;  %v3686_v25 = vadd.f32 %v3685_v34, %v3514_v48  ;;  %v2967_v41 = vadd.f32 %v6830_v27, %v7450_v45  ;;  %v7462_v27 = vld [vmem:[#allocation20_spill] sm:$0xff] }
 0x36a   : > { %v3074_v4 = vmul.f32 0.1, %v2937_v43  ;;  %v2941_v51 = vadd.f32 %v2940_v44, %v7452_v37  ;;  %v3201_v2 = vmax.f32 %v2935_v13, %v3073_v60  ;;  %v3518_v11 = vmul.f32 %v7455_v23, %v3198_v7  ;;  %v2974_v13 = vpop.f32.mrf.mxu1  ;;  %v7459_v60 = vld [vmem:[#allocation31_spill] sm:$0xff] }
 0x36b   : > { %v2942_v57 = vpop.f32.mrf.mxu0  ;;  %v3650_v29 = vadd.f32 %v3649_v61, %v3517_v16  ;;  %v2971_v44 = vadd.f32 %v2970_v6, %v7459_v60  ;;  %v2973_v55 = vadd.f32 %v2972_v28, %v7459_v60  ;;  %v2975_v45 = vadd.f32 %v2974_v13, %v7462_v27  ;;  %v7464_v61 = vld [vmem:[#allocation13_spill] sm:$0xff] }
 0x36c   : > { %v2943_v8 = vadd.f32 %v2942_v57, %v7452_v37  ;;  %v3077_v42 = vmul.f32 0.1, %v2941_v51  ;;  %v3202_v24 = vmax.f32 %v2937_v43, %v3074_v4  ;;  %v3521_v31 = vmul.f32 %v7456_v49, %v3201_v2  ;;  %v2976_v4 = vpop.f32.mrf.mxu1  ;;  %v7463_v2 = vld [vmem:[#allocation12_spill] sm:$0xff] }
 0x36d   : > { %v2944_v21 = vpop.f32.mrf.mxu0  ;;  %v3687_v36 = vadd.f32 %v3686_v25, %v3518_v11  ;;  %v3098_v59 = vmul.f32 0.1, %v2967_v41  ;;  %v3101_v12 = vmul.f32 0.1, %v2971_v44 }
 0x36e   : > { %v3078_v54 = vmul.f32 0.1, %v2943_v8  ;;  %v2945_v46 = vadd.f32 %v2944_v21, %v7454_v62  ;;  %v3205_v20 = vmax.f32 %v2941_v51, %v3077_v42  ;;  %v3522_v50 = vmul.f32 %v7456_v49, %v3202_v24  ;;  %v7460_v51 = vld [vmem:[#allocation15_spill] sm:$0xff] }
 0x36f   : > { %v2946_v0 = vpop.f32.mrf.mxu0  ;;  %v3651_v53 = vadd.f32 %v3650_v29, %v3521_v31  ;;  %v3225_v24 = vmax.f32 %v6838_v56, %v6852_v10  ;;  %v7465_v31 = vld [vmem:[#allocation50_spill] sm:$0xff] }
 0x370   : > { %v3081_v35 = vmul.f32 0.1, %v2945_v46  ;;  %v2947_v1 = vadd.f32 %v2946_v0, %v7454_v62  ;;  %v3206_v33 = vmax.f32 %v2943_v8, %v3078_v54  ;;  %v3525_v43 = vmul.f32 %v7458_v22, %v3205_v20 }
 0x371   : > { %v2950_v40 = vpop.f32.mrf.mxu0  ;;  %v3688_v6 = vadd.f32 %v3687_v36, %v3522_v50  ;;  %v2977_v54 = vadd.f32 %v2976_v4, %v7462_v27  ;;  %v3102_v20 = vmul.f32 0.1, %v2973_v55  ;;  %v3105_v0 = vmul.f32 0.1, %v2975_v45  ;;  %v7469_v50 = vld [vmem:[#allocation11_spill] sm:$0xff] }
 0x372   : > { %v3209_v63 = vmax.f32 %v2945_v46, %v3081_v35  ;;  %v3082_v3 = vmul.f32 0.1, %v2947_v1  ;;  %v2951_v14 = vadd.f32 %v2950_v40, %v7457_v15  ;;  %v3526_v37 = vmul.f32 %v7458_v22, %v3206_v33  ;;  %v7466_v40 = vld [vmem:[#allocation52_spill] sm:$0xff]  ;;  %v7468_v33 = vld [vmem:[#allocation10_spill] sm:$0xff]  ;;  %v7471_v4 = vld [vmem:[#allocation39_spill] sm:$0xff] }
 0x373   : > { %v2952_v18 = vpop.f32.mrf.mxu0  ;;  %v3652_v8 = vadd.f32 %v3651_v53, %v3525_v43  ;;  %v7467_v13 = vmax.f32 %v7465_v31, %v7466_v40  ;;  %v3542_v10 = vmul.f32 %v7468_v33, %v3222_v30  ;;  %v3545_v22 = vmul.f32 %v7469_v50, %v3225_v24  ;;  %v7475_v24 = vld [vmem:[#allocation6_spill] sm:$0xff] }
 0x374   : > { %v3210_v32 = vmax.f32 %v2947_v1, %v3082_v3  ;;  %v3085_v52 = vmul.f32 0.1, %v2951_v14  ;;  %v2953_v26 = vadd.f32 %v2952_v18, %v7457_v15  ;;  %v3529_v57 = vmul.f32 %v7460_v51, %v3209_v63 }
 0x375   : > { %v2954_v5 = vpop.f32.mrf.mxu0  ;;  %v3689_v46 = vadd.f32 %v3688_v6, %v3526_v37  ;;  %v3541_v63 = vmul.f32 %v7468_v33, %v7467_v13  ;;  %v3226_v3 = vmax.f32 %v2967_v41, %v3098_v59  ;;  %v3229_v15 = vmax.f32 %v2971_v44, %v3101_v12  ;;  %v7470_v41 = vld [vmem:[#allocation7_spill] sm:$0xff] }
 0x376   : > { %v3213_v9 = vmax.f32 %v2951_v14, %v3085_v52  ;;  %v2955_v38 = vadd.f32 %v2954_v5, %v7461_v19  ;;  %v3086_v58 = vmul.f32 0.1, %v2953_v26  ;;  %v3530_v7 = vmul.f32 %v7460_v51, %v3210_v32  ;;  %v7472_v12 = vld [vmem:[#allocation23_spill] sm:$0xff] }
 0x377   : > { %v2956_v39 = vpop.f32.mrf.mxu0  ;;  %v3653_v48 = vadd.f32 %v3652_v8, %v3529_v57  ;;  %v3106_v14 = vmul.f32 0.1, %v2977_v54  ;;  %v3230_v43 = vmax.f32 %v2973_v55, %v3102_v20  ;;  %v3233_v18 = vmax.f32 %v2975_v45, %v3105_v0 }
 0x378   : > { %v3533_v42 = vmul.f32 %v7463_v2, %v3213_v9  ;;  %v3089_v21 = vmul.f32 0.1, %v2955_v38  ;;  %v2957_v28 = vadd.f32 %v2956_v39, %v7461_v19  ;;  %v3214_v62 = vmax.f32 %v2953_v26, %v3086_v58 }
 0x379   : > { %v3690_v1 = vadd.f32 %v3689_v46, %v3530_v7  ;;  %v3546_v52 = vmul.f32 %v7469_v50, %v3226_v3  ;;  %v3549_v44 = vmul.f32 %v7470_v41, %v3229_v15  ;;  %v3234_v36 = vmax.f32 %v2977_v54, %v3106_v14 }
 0x37a   : > { %v3217_v23 = vmax.f32 %v2955_v38, %v3089_v21  ;;  %v3090_v16 = vmul.f32 0.1, %v2957_v28  ;;  %v3534_v35 = vmul.f32 %v7463_v2, %v3214_v62  ;;  %v3654_v34 = vadd.f32 %v3653_v48, %v3533_v42  ;;  %v7473_v62 = vld [vmem:[#allocation9_spill] sm:$0xff] }
 0x37b   : > { %v3550_v5 = vmul.f32 %v7470_v41, %v3230_v43  ;;  %v3553_v37 = vmul.f32 %v7471_v4, %v3233_v18  ;;  %v3554_v30 = vmul.f32 %v7471_v4, %v3234_v36  ;;  %v4259_v6 = vmov 1966171168  }
 0x37c   : > { %v3537_v11 = vmul.f32 %v7464_v61, %v3217_v23  ;;  %v3218_v49 = vmax.f32 %v2957_v28, %v3090_v16  ;;  %v3691_v25 = vadd.f32 %v3690_v1, %v3534_v35  ;;  %v3724_v8 = vunpack.c.l.s4 %v4259_v6  ;;  %v7474_v16 = vld [vmem:[#allocation8_spill] sm:$0xff] }
 0x37d   : > { %v7476_v20 = vcombine.low %v7474_v16, %v7475_v24 }
 0x37e   : > { %v3655_v29 = vadd.f32 %v3654_v34, %v3537_v11  ;;  %v3538_v56 = vmul.f32 %v7464_v61, %v3218_v49  ;;  %v3725_v42 = vunpack.c.0.s8 %v3724_v8  ;;  %v7477_v34 = vlaneseq }
 0x380   : > { %v3656_v60 = vadd.f32 %v3655_v29, %v3541_v63  ;;  %v3692_v32 = vadd.f32 %v3691_v25, %v3538_v56  ;;  %v3728_v54 = vsub.s32 %v3725_v42, %v7472_v12  ;;  %vm3748_vm2 = vcmp.lt.s32.totalorder %v7477_v34, 512 }
 0x382   : > { %v3657_v53 = vadd.f32 %v3656_v60, %v3545_v22  ;;  %v3693_v26 = vadd.f32 %v3692_v32, %v3542_v10  ;;  %v3729_v0 = vrot.slane %v7476_v20, %v3728_v54 }
 0x384   : > { %v3658_v47 = vadd.f32 %v3657_v53, %v3549_v44  ;;  %v3694_v17 = vadd.f32 %v3693_v26, %v3546_v52 }
 0x386   : > { %v3659_v55 = vadd.f32 %v3658_v47, %v3553_v37  ;;  %v3695_v51 = vadd.f32 %v3694_v17, %v3550_v5 }
 0x388   : > { %v3660_v57 = vrot.slane %v3659_v55, 4  ;;  %v3696_v9 = vadd.f32 %v3695_v51, %v3554_v30 }
 0x38a   : > { %v3661_v19 = vadd.f32 %v3660_v57, %v3659_v55  ;;  %v3697_v38 = vrot.slane %v3696_v9, 4 }
 0x38c   : > { %v3662_v27 = vrot.slane %v3661_v19, 2  ;;  %v3698_v45 = vadd.f32 %v3697_v38, %v3696_v9 }
 0x38e   : > { %v3663_v58 = vadd.f32 %v3662_v27, %v3661_v19  ;;  %v3699_v39 = vrot.slane %v3698_v45, 2 }
 0x390   : > { %v3700_v7 = vadd.f32 %v3699_v39, %v3698_v45  ;;  %v3664_v2 = vrot.slane %v3663_v58, 1 }
 0x392   : > { %v3665_v21 = vadd.f32 %v3664_v2, %v3663_v58  ;;  %v3701_v28 = vrot.slane %v3700_v7, 1 }
 0x394   : > { %v3702_v59 = vadd.f32 %v3701_v28, %v3700_v7  ;;  %v3715_v46 = vadd.f32 %v7473_v62, %v3665_v21 }
 0x396   : > { %v3716_v48 = vadd.f32 %v7473_v62, %v3702_v59 }
 0x398   : > { %v3722_v23 = vcombine.low %v3715_v46, %v3716_v48 }
 0x39a   : > { %v3736_v35 = vrot.slane %v3722_v23, %v3728_v54 }
 0x39c   : > { %v3737_v1 = vcombine.low %v3729_v0, %v3736_v35 }
 0x39e   : > { %v3744_v61 = vrot.slane %v3737_v1, %v3728_v54 }
 0x3a0   : > { %3750 = vst.msk [vmem:[%s298_s13] sm:$0xf] %vm3748_vm2, %v3744_v61 }
 0x3a1   : > { %4193 = shalt.err (!%p4190_p5)
}
 0x3a2   : > { %s4194_s24 = scalar_lea.hbm %s3766_s18, 64  ;;  %s4198_s9 = scalar_lea.hbm %s6945_s7, 128 }
 0x3a3   : > { %p4195_p6 = scmp.ne.s32.totalorder %s3766_s18, %s4194_s24  ;;  %p4199_p10 = scmp.lt.s32.totalorder %s3766_s18, %s6945_s7 }
 0x3a4   : > { %p4200_p11 = scmp.lt.s32.totalorder %s4198_s9, %s4194_s24 }
 0x3a5   : > { %p4196_p7 = pnand %p4195_p6, %p4344_p4 }
 0x3a6   : > { %p4201_p12 = por %p4200_p11, %p4199_p10 }
 0x3a7   : > { %p4197_p9 = pneg %p4196_p7 }
 0x3a9   : > { %p4202_p13 = pnand %p4201_p12, %p4197_p9 }
 0x3ab   : > { %4205 = shalt.err (!%p4202_p13)
}
 0x3ac   : > { %4004 = dma.vmem_to_hbm [thread:$0]  (%p4344_p4), %s3769_s16, 64, %s3766_s18, %s3752_s19  }
 0x3ad PF: > { %p4010_p0 = scmp.ge.s32.totalorder %s4256_s8, 2  ;;  %s3780_s17 = sand.u32 1, %s4236_s26  }
 0x3ae   : > { %s3781_s20 = scalar_lea.sflag [#allocation4], %s3780_s17 }
 0x3af   : > { %p4007_p1 = pnand %p4010_p0, %p4351_p8 }
 0x3b1   : > { %p4008_p2 = pneg %p4007_p1 }
 0x3b3   : > { %4231 = dma.done.wait (%p4008_p2), %s3781_s20, 64  }
 0x3b4   : > { %4233 = vsyncadd (%p4008_p2), %s3781_s20, 4294967232  ;;  %s22_s8 = sadd.s32 1, %s4256_s8   ;;  %s7478_s26 = smov %s4240_s27 }
 0x3b5   : > { %p19_p3 = scmp.ge.s32.totalorder %s22_s8, 4   ;;  %s7479_s27 = smov %s4244_s28 }
 0x3b6   : > { %s7480_s28 = smov %s4357_s15  ;;  %s7481_s29 = smov %s4252_s30 }
 0x3b7   : > { %s7482_s30 = smov %s7484_s10  ;;  %21 = sbr.rel (!%p19_p3) target bundleno = 7 (0x7), region = 83 }
 0x3bc   :  { %3786 = vsyncpa [#allocation4], 1 }
 0x3bd   :  { %3788 = vsyncpa [#allocation4 + $0x1], 1 }

</bundles_post_ra>
